<compile_context>
chip_gen: v7x
topology: tpu7x:2x2x1
jax: 0.10.0
libtpu: 0.0.40
codegen_flags: <defaults>
</compile_context>

<pallas_src>
import math
from functools import partial

import jax
import jax.numpy as jnp
from jax.experimental import pallas as pl
from jax.experimental.pallas import tpu as pltpu

LAYER_NORM_EPS = 1e-5


def _vmem_specs(n):
    return [pl.BlockSpec(memory_space=pltpu.MemorySpace.VMEM) for _ in range(n)]


# -------------------- in-kernel helpers (values, not refs) -------------------

def _linear(x, w, b):
    return jnp.dot(x, w, preferred_element_type=jnp.float32) + b


def _layer_norm(x, g, b):
    mean = jnp.mean(x, axis=-1, keepdims=True)
    var = jnp.mean(jnp.square(x - mean), axis=-1, keepdims=True)
    return (x - mean) * jax.lax.rsqrt(var + LAYER_NORM_EPS) * g + b


def _attention_core(q, k, v, N, Lq, Lkv, H):
    """Multi-head attention on batch-major 2-D activations.

    q: (N*Lq, E), k/v: (N*Lkv, E).  Heads are split with static column slices
    so E stays in the lane dimension; each (batch, head) pair is a pair of 2-D
    MXU matmuls.  Softmax denominator goes through the EUP reciprocal.
    """
    E = q.shape[-1]
    Dh = E // H
    scale = 1.0 / math.sqrt(Dh)
    batch_rows = []
    for n in range(N):
        qn = q[n * Lq:(n + 1) * Lq, :] * scale
        kn = k[n * Lkv:(n + 1) * Lkv, :]
        vn = v[n * Lkv:(n + 1) * Lkv, :]
        heads = []
        for h in range(H):
            qh = qn[:, h * Dh:(h + 1) * Dh]
            kh = kn[:, h * Dh:(h + 1) * Dh]
            vh = vn[:, h * Dh:(h + 1) * Dh]
            s = jax.lax.dot_general(qh, kh, (((1,), (1,)), ((), ())),
                                    preferred_element_type=jnp.float32)
            s = s - jnp.max(s, axis=-1, keepdims=True)
            e = jnp.exp(s)
            denom = jnp.sum(e, axis=-1, keepdims=True)
            p = e * pl.reciprocal(denom, approx=True)
            heads.append(jnp.dot(p, vh, preferred_element_type=jnp.float32))
        batch_rows.append(jnp.concatenate(heads, axis=-1))
    return jnp.concatenate(batch_rows, axis=0)            # (N*Lq, E)


# ------------------------------ fused kernels --------------------------------

def _encoder_layer_kernel(x_ref, in_w_ref, in_b_ref, ow_ref, ob_ref,
                          n1g_ref, n1b_ref, l1w_ref, l1b_ref,
                          l2w_ref, l2b_ref, n2g_ref, n2b_ref, o_ref,
                          *, N, L, H):
    x = x_ref[...]                                         # (N*L, E)
    E = x.shape[-1]
    # fused QKV projection: one (N*L, E) x (E, 3E) MXU pass
    qkv = _linear(x, in_w_ref[...], in_b_ref[...])
    a = _attention_core(qkv[:, :E], qkv[:, E:2 * E], qkv[:, 2 * E:], N, L, L, H)
    a = _linear(a, ow_ref[...], ob_ref[...])
    x2 = _layer_norm(x + a, n1g_ref[...], n1b_ref[...])
    hdn = jnp.maximum(_linear(x2, l1w_ref[...], l1b_ref[...]), 0.0)
    ffn = _linear(hdn, l2w_ref[...], l2b_ref[...])
    o_ref[...] = _layer_norm(x2 + ffn, n2g_ref[...], n2b_ref[...])


def _decoder_layer_kernel(x_ref, mem_ref,
                          sa_iw_ref, sa_ib_ref, sa_ow_ref, sa_ob_ref,
                          n1g_ref, n1b_ref,
                          ca_iw_ref, ca_ib_ref, ca_ow_ref, ca_ob_ref,
                          n2g_ref, n2b_ref,
                          l1w_ref, l1b_ref, l2w_ref, l2b_ref,
                          n3g_ref, n3b_ref, o_ref, *, N, L, S, H):
    x = x_ref[...]                                         # (N*L, E)
    mem = mem_ref[...]                                     # (N*S, E)
    E = x.shape[-1]
    # self-attention (fused QKV)
    qkv = _linear(x, sa_iw_ref[...], sa_ib_ref[...])
    a = _attention_core(qkv[:, :E], qkv[:, E:2 * E], qkv[:, 2 * E:], N, L, L, H)
    a = _linear(a, sa_ow_ref[...], sa_ob_ref[...])
    x2 = _layer_norm(x + a, n1g_ref[...], n1b_ref[...])
    # cross-attention: Q from decoder state, fused K/V from encoder memory
    ca_iw = ca_iw_ref[...]
    ca_ib = ca_ib_ref[...]
    q = _linear(x2, ca_iw[:, :E], ca_ib[:, :E])
    kv = _linear(mem, ca_iw[:, E:], ca_ib[:, E:])
    c = _attention_core(q, kv[:, :E], kv[:, E:], N, L, S, H)
    c = _linear(c, ca_ow_ref[...], ca_ob_ref[...])
    x3 = _layer_norm(x2 + c, n2g_ref[...], n2b_ref[...])
    # feed-forward
    hdn = jnp.maximum(_linear(x3, l1w_ref[...], l1b_ref[...]), 0.0)
    ffn = _linear(hdn, l2w_ref[...], l2b_ref[...])
    o_ref[...] = _layer_norm(x3 + ffn, n3g_ref[...], n3b_ref[...])


def _layernorm_kernel(x_ref, g_ref, b_ref, o_ref):
    o_ref[...] = _layer_norm(x_ref[...], g_ref[...], b_ref[...])


def _norm_fc_kernel(x_ref, g_ref, b_ref, w_ref, fb_ref, o_ref):
    xn = _layer_norm(x_ref[...], g_ref[...], b_ref[...])
    o_ref[...] = _linear(xn, w_ref[...], fb_ref[...])


# ------------------------------ kernel wrappers -------------------------------

def pallas_encoder_layer(x2d, p, N, L, H):
    M, E = x2d.shape
    sa = p['sa']
    args = (x2d,
            sa['in_w'].T, sa['in_b'].reshape(1, -1),
            sa['out_w'].T, sa['out_b'].reshape(1, -1),
            p['n1_g'].reshape(1, -1), p['n1_b'].reshape(1, -1),
            p['l1_w'].T, p['l1_b'].reshape(1, -1),
            p['l2_w'].T, p['l2_b'].reshape(1, -1),
            p['n2_g'].reshape(1, -1), p['n2_b'].reshape(1, -1))
    return pl.pallas_call(
        partial(_encoder_layer_kernel, N=N, L=L, H=H),
        out_shape=jax.ShapeDtypeStruct((M, E), jnp.float32),
        in_specs=_vmem_specs(len(args)),
        out_specs=pl.BlockSpec(memory_space=pltpu.MemorySpace.VMEM),
    )(*args)


def pallas_decoder_layer(x2d, mem2d, p, N, L, S, H):
    M, E = x2d.shape
    sa, ca = p['sa'], p['ca']
    args = (x2d, mem2d,
            sa['in_w'].T, sa['in_b'].reshape(1, -1),
            sa['out_w'].T, sa['out_b'].reshape(1, -1),
            p['n1_g'].reshape(1, -1), p['n1_b'].reshape(1, -1),
            ca['in_w'].T, ca['in_b'].reshape(1, -1),
            ca['out_w'].T, ca['out_b'].reshape(1, -1),
            p['n2_g'].reshape(1, -1), p['n2_b'].reshape(1, -1),
            p['l1_w'].T, p['l1_b'].reshape(1, -1),
            p['l2_w'].T, p['l2_b'].reshape(1, -1),
            p['n3_g'].reshape(1, -1), p['n3_b'].reshape(1, -1))
    return pl.pallas_call(
        partial(_decoder_layer_kernel, N=N, L=L, S=S, H=H),
        out_shape=jax.ShapeDtypeStruct((M, E), jnp.float32),
        in_specs=_vmem_specs(len(args)),
        out_specs=pl.BlockSpec(memory_space=pltpu.MemorySpace.VMEM),
    )(*args)


def pallas_layernorm(x2d, g, b):
    M, E = x2d.shape
    return pl.pallas_call(
        _layernorm_kernel,
        out_shape=jax.ShapeDtypeStruct((M, E), jnp.float32),
        in_specs=_vmem_specs(3),
        out_specs=pl.BlockSpec(memory_space=pltpu.MemorySpace.VMEM),
    )(x2d, g.reshape(1, E), b.reshape(1, E))


def pallas_norm_fc(x2d, g, b, w, bias):
    M, E = x2d.shape
    V = w.shape[0]
    return pl.pallas_call(
        _norm_fc_kernel,
        out_shape=jax.ShapeDtypeStruct((M, V), jnp.float32),
        in_specs=_vmem_specs(5),
        out_specs=pl.BlockSpec(memory_space=pltpu.MemorySpace.VMEM),
    )(x2d, g.reshape(1, E), b.reshape(1, E), w.T, bias.reshape(1, V))


# ------------------------------- full forward ---------------------------------

def llama_model2_forward(params, x_ids, num_heads):
    S, N = x_ids.shape
    # Embedding lookup (gather) in plain JAX glue.
    # TODO(synk): at production sizes, do the gather in a Pallas kernel with a
    # PrefetchScalarGridSpec / pl.Element row-gather index_map.
    emb = params['embedding'][x_ids]                       # (S, N, E)
    E = emb.shape[-1]
    # batch-major 2-D layout: rows ordered (n, l); E stays in the lane dim.
    x2d = emb.transpose(1, 0, 2).reshape(N * S, E)

    # encoder stack (one fused pallas_call per layer) + final encoder norm
    mem = x2d
    for p in params['enc_layers']:
        mem = pallas_encoder_layer(mem, p, N, S, num_heads)
    mem = pallas_layernorm(mem, params['enc_norm_g'], params['enc_norm_b'])

    # decoder stack (tgt = same embedded sequence) + fused final norm + fc
    out = x2d
    for p in params['dec_layers']:
        out = pallas_decoder_layer(out, mem, p, N, S, S, num_heads)
    logits = pallas_norm_fc(out, params['dec_norm_g'], params['dec_norm_b'],
                            params['fc_w'], params['fc_b'])

    V = params['fc_w'].shape[0]
    return logits.reshape(N, S, V).transpose(1, 0, 2)      # (S, N, V)


# ----------------------------- deterministic init -----------------------------

def _init_mha(key, E):
    k1, k2 = jax.random.split(key)
    return {
        'in_w': 0.02 * jax.random.normal(k1, (3 * E, E), jnp.float32),
        'in_b': jnp.zeros((3 * E,), jnp.float32),
        'out_w': 0.02 * jax.random.normal(k2, (E, E), jnp.float32),
        'out_b': jnp.zeros((E,), jnp.float32),
    }


def _init_enc_layer(key, E, F):
    ks = jax.random.split(key, 3)
    return {
        'sa': _init_mha(ks[0], E),
        'l1_w': 0.02 * jax.random.normal(ks[1], (F, E), jnp.float32),
        'l1_b': jnp.zeros((F,), jnp.float32),
        'l2_w': 0.02 * jax.random.normal(ks[2], (E, F), jnp.float32),
        'l2_b': jnp.zeros((E,), jnp.float32),
        'n1_g': jnp.ones((E,), jnp.float32), 'n1_b': jnp.zeros((E,), jnp.float32),
        'n2_g': jnp.ones((E,), jnp.float32), 'n2_b': jnp.zeros((E,), jnp.float32),
    }


def _init_dec_layer(key, E, F):
    ks = jax.random.split(key, 4)
    p = {
        'sa': _init_mha(ks[0], E),
        'ca': _init_mha(ks[1], E),
        'l1_w': 0.02 * jax.random.normal(ks[2], (F, E), jnp.float32),
        'l1_b': jnp.zeros((F,), jnp.float32),
        'l2_w': 0.02 * jax.random.normal(ks[3], (E, F), jnp.float32),
        'l2_b': jnp.zeros((E,), jnp.float32),
    }
    for n in ('n1', 'n2', 'n3'):
        p[n + '_g'] = jnp.ones((E,), jnp.float32)
        p[n + '_b'] = jnp.zeros((E,), jnp.float32)
    return p


def init_params(key, vocab_size, embed_dim, hidden_dim, num_layers):
    keys = jax.random.split(key, 2 * num_layers + 2)
    return {
        'embedding': 0.02 * jax.random.normal(
            keys[0], (vocab_size, embed_dim), jnp.float32),
        'enc_layers': [_init_enc_layer(keys[1 + i], embed_dim, hidden_dim)
                       for i in range(num_layers)],
        'dec_layers': [_init_dec_layer(keys[1 + num_layers + i], embed_dim, hidden_dim)
                       for i in range(num_layers)],
        'enc_norm_g': jnp.ones((embed_dim,), jnp.float32),
        'enc_norm_b': jnp.zeros((embed_dim,), jnp.float32),
        'dec_norm_g': jnp.ones((embed_dim,), jnp.float32),
        'dec_norm_b': jnp.zeros((embed_dim,), jnp.float32),
        'fc_w': 0.02 * jax.random.normal(
            keys[-1], (vocab_size, embed_dim), jnp.float32),
        'fc_b': jnp.zeros((vocab_size,), jnp.float32),
    }


# ------------------------------------ main -------------------------------------

if __name__ == "__main__":
    vocab_size, embed_dim, hidden_dim = 64, 32, 64
    num_layers, num_heads = 2, 4
    seq_len, batch = 8, 2            # (S, N) token ids, seq-first

    root = jax.random.PRNGKey(0)
    k_param, k_data = jax.random.split(root)
    params = init_params(k_param, vocab_size, embed_dim, hidden_dim, num_layers)
    x_ids = jax.random.randint(k_data, (seq_len, batch), 0, vocab_size,
                               dtype=jnp.int32)

    fwd = jax.jit(partial(llama_model2_forward, num_heads=num_heads))
    logits = fwd(params, x_ids)
    jax.block_until_ready(logits)

    assert logits.shape == (seq_len, batch, vocab_size), logits.shape
    assert bool(jnp.all(jnp.isfinite(logits)))
    print("KERNEL_OK")
</pallas_src>

<mosaic_0001>
module attributes {stable_mosaic.version = 11 : i64} {
  func.func @_layernorm_kernel(%arg0: memref<16x32xf32, #tpu.memory_space<vmem>>, %arg1: memref<1x32xf32, #tpu.memory_space<vmem>>, %arg2: memref<1x32xf32, #tpu.memory_space<vmem>>, %arg3: memref<16x32xf32, #tpu.memory_space<vmem>>) attributes {dimension_semantics = [], scalar_prefetch = 0 : i64, scratch_operands = 0 : i64, tpu.core_type = #tpu.core_type<tc>} {
    %c0 = arith.constant 0 : index
    %c0_0 = arith.constant 0 : index
    %0 = vector.load %arg0[%c0, %c0_0] : memref<16x32xf32, #tpu.memory_space<vmem>>, vector<16x32xf32>
    %c0_1 = arith.constant 0 : index
    %c0_2 = arith.constant 0 : index
    %1 = vector.load %arg1[%c0_1, %c0_2] : memref<1x32xf32, #tpu.memory_space<vmem>>, vector<1x32xf32>
    %c0_3 = arith.constant 0 : index
    %c0_4 = arith.constant 0 : index
    %2 = vector.load %arg2[%c0_3, %c0_4] : memref<1x32xf32, #tpu.memory_space<vmem>>, vector<1x32xf32>
    %cst = arith.constant dense<0.000000e+00> : vector<16xf32>
    %3 = vector.multi_reduction <add>, %0, %cst [1] : vector<16x32xf32> to vector<16xf32>
    %4 = vector.shape_cast %3 : vector<16xf32> to vector<16x1xf32>
    %cst_5 = arith.constant 3.200000e+01 : f32
    %5 = vector.broadcast %cst_5 : f32 to vector<16x1xf32>
    %6 = arith.divf %4, %5 : vector<16x1xf32>
    %7 = vector.broadcast %6 : vector<16x1xf32> to vector<16x32xf32>
    %8 = arith.subf %0, %7 : vector<16x32xf32>
    %9 = arith.mulf %8, %8 : vector<16x32xf32>
    %cst_6 = arith.constant dense<0.000000e+00> : vector<16xf32>
    %10 = vector.multi_reduction <add>, %9, %cst_6 [1] : vector<16x32xf32> to vector<16xf32>
    %11 = vector.shape_cast %10 : vector<16xf32> to vector<16x1xf32>
    %cst_7 = arith.constant 3.200000e+01 : f32
    %12 = vector.broadcast %cst_7 : f32 to vector<16x1xf32>
    %13 = arith.divf %11, %12 : vector<16x1xf32>
    %14 = vector.broadcast %6 : vector<16x1xf32> to vector<16x32xf32>
    %15 = arith.subf %0, %14 : vector<16x32xf32>
    %cst_8 = arith.constant 9.99999974E-6 : f32
    %16 = vector.broadcast %cst_8 : f32 to vector<16x1xf32>
    %17 = arith.addf %13, %16 : vector<16x1xf32>
    %18 = math.rsqrt %17 : vector<16x1xf32>
    %19 = vector.broadcast %18 : vector<16x1xf32> to vector<16x32xf32>
    %20 = arith.mulf %15, %19 : vector<16x32xf32>
    %21 = vector.broadcast %1 : vector<1x32xf32> to vector<16x32xf32>
    %22 = arith.mulf %20, %21 : vector<16x32xf32>
    %23 = vector.broadcast %2 : vector<1x32xf32> to vector<16x32xf32>
    %24 = arith.addf %22, %23 : vector<16x32xf32>
    %c0_9 = arith.constant 0 : index
    %c0_10 = arith.constant 0 : index
    %25 = vector.load %arg3[%c0_9, %c0_10] : memref<16x32xf32, #tpu.memory_space<vmem>>, vector<16x32xf32>
    tpu.vector_store %arg3[%c0_9, %c0_10], %24 {strides = array<i32>} : memref<16x32xf32, #tpu.memory_space<vmem>>, vector<16x32xf32>,
    return
  }
}

module attributes {stable_mosaic.version = 11 : i64} {
  func.func @_norm_fc_kernel(%arg0: memref<16x32xf32, #tpu.memory_space<vmem>>, %arg1: memref<1x32xf32, #tpu.memory_space<vmem>>, %arg2: memref<1x32xf32, #tpu.memory_space<vmem>>, %arg3: memref<32x64xf32, #tpu.memory_space<vmem>>, %arg4: memref<1x64xf32, #tpu.memory_space<vmem>>, %arg5: memref<16x64xf32, #tpu.memory_space<vmem>>) attributes {dimension_semantics = [], scalar_prefetch = 0 : i64, scratch_operands = 0 : i64, tpu.core_type = #tpu.core_type<tc>} {
    %c0 = arith.constant 0 : index
    %c0_0 = arith.constant 0 : index
    %0 = vector.load %arg0[%c0, %c0_0] : memref<16x32xf32, #tpu.memory_space<vmem>>, vector<16x32xf32>
    %c0_1 = arith.constant 0 : index
    %c0_2 = arith.constant 0 : index
    %1 = vector.load %arg1[%c0_1, %c0_2] : memref<1x32xf32, #tpu.memory_space<vmem>>, vector<1x32xf32>
    %c0_3 = arith.constant 0 : index
    %c0_4 = arith.constant 0 : index
    %2 = vector.load %arg2[%c0_3, %c0_4] : memref<1x32xf32, #tpu.memory_space<vmem>>, vector<1x32xf32>
    %cst = arith.constant dense<0.000000e+00> : vector<16xf32>
    %3 = vector.multi_reduction <add>, %0, %cst [1] : vector<16x32xf32> to vector<16xf32>
    %4 = vector.shape_cast %3 : vector<16xf32> to vector<16x1xf32>
    %cst_5 = arith.constant 3.200000e+01 : f32
    %5 = vector.broadcast %cst_5 : f32 to vector<16x1xf32>
    %6 = arith.divf %4, %5 : vector<16x1xf32>
    %7 = vector.broadcast %6 : vector<16x1xf32> to vector<16x32xf32>
    %8 = arith.subf %0, %7 : vector<16x32xf32>
    %9 = arith.mulf %8, %8 : vector<16x32xf32>
    %cst_6 = arith.constant dense<0.000000e+00> : vector<16xf32>
    %10 = vector.multi_reduction <add>, %9, %cst_6 [1] : vector<16x32xf32> to vector<16xf32>
    %11 = vector.shape_cast %10 : vector<16xf32> to vector<16x1xf32>
    %cst_7 = arith.constant 3.200000e+01 : f32
    %12 = vector.broadcast %cst_7 : f32 to vector<16x1xf32>
    %13 = arith.divf %11, %12 : vector<16x1xf32>
    %14 = vector.broadcast %6 : vector<16x1xf32> to vector<16x32xf32>
    %15 = arith.subf %0, %14 : vector<16x32xf32>
    %cst_8 = arith.constant 9.99999974E-6 : f32
    %16 = vector.broadcast %cst_8 : f32 to vector<16x1xf32>
    %17 = arith.addf %13, %16 : vector<16x1xf32>
    %18 = math.rsqrt %17 : vector<16x1xf32>
    %19 = vector.broadcast %18 : vector<16x1xf32> to vector<16x32xf32>
    %20 = arith.mulf %15, %19 : vector<16x32xf32>
    %21 = vector.broadcast %1 : vector<1x32xf32> to vector<16x32xf32>
    %22 = arith.mulf %20, %21 : vector<16x32xf32>
    %23 = vector.broadcast %2 : vector<1x32xf32> to vector<16x32xf32>
    %24 = arith.addf %22, %23 : vector<16x32xf32>
    %c0_9 = arith.constant 0 : index
    %c0_10 = arith.constant 0 : index
    %25 = vector.load %arg3[%c0_9, %c0_10] : memref<32x64xf32, #tpu.memory_space<vmem>>, vector<32x64xf32>
    %c0_11 = arith.constant 0 : index
    %c0_12 = arith.constant 0 : index
    %26 = vector.load %arg4[%c0_11, %c0_12] : memref<1x64xf32, #tpu.memory_space<vmem>>, vector<1x64xf32>
    %cst_13 = arith.constant dense<0.000000e+00> : vector<16x64xf32>
    %27 = tpu.matmul %24, %25, %cst_13 {dimension_numbers = #tpu.dot_dimension_numbers<[1], [0], [0], [1], [0, 0, 1, 1], [], []>} : vector<16x32xf32>, vector<32x64xf32>, vector<16x64xf32> -> vector<16x64xf32>
    %28 = vector.broadcast %26 : vector<1x64xf32> to vector<16x64xf32>
    %29 = arith.addf %27, %28 : vector<16x64xf32>
    %c0_14 = arith.constant 0 : index
    %c0_15 = arith.constant 0 : index
    %30 = vector.load %arg5[%c0_14, %c0_15] : memref<16x64xf32, #tpu.memory_space<vmem>>, vector<16x64xf32>
    tpu.vector_store %arg5[%c0_14, %c0_15], %29 {strides = array<i32>} : memref<16x64xf32, #tpu.memory_space<vmem>>, vector<16x64xf32>,
    return
  }
}

module attributes {stable_mosaic.version = 11 : i64} {
  func.func @_decoder_layer_kernel(%arg0: memref<16x32xf32, #tpu.memory_space<vmem>>, %arg1: memref<16x32xf32, #tpu.memory_space<vmem>>, %arg2: memref<32x96xf32, #tpu.memory_space<vmem>>, %arg3: memref<1x96xf32, #tpu.memory_space<vmem>>, %arg4: memref<32x32xf32, #tpu.memory_space<vmem>>, %arg5: memref<1x32xf32, #tpu.memory_space<vmem>>, %arg6: memref<1x32xf32, #tpu.memory_space<vmem>>, %arg7: memref<1x32xf32, #tpu.memory_space<vmem>>, %arg8: memref<32x96xf32, #tpu.memory_space<vmem>>, %arg9: memref<1x96xf32, #tpu.memory_space<vmem>>, %arg10: memref<32x32xf32, #tpu.memory_space<vmem>>, %arg11: memref<1x32xf32, #tpu.memory_space<vmem>>, %arg12: memref<1x32xf32, #tpu.memory_space<vmem>>, %arg13: memref<1x32xf32, #tpu.memory_space<vmem>>, %arg14: memref<32x64xf32, #tpu.memory_space<vmem>>, %arg15: memref<1x64xf32, #tpu.memory_space<vmem>>, %arg16: memref<64x32xf32, #tpu.memory_space<vmem>>, %arg17: memref<1x32xf32, #tpu.memory_space<vmem>>, %arg18: memref<1x32xf32, #tpu.memory_space<vmem>>, %arg19: memref<1x32xf32, #tpu.memory_space<vmem>>, %arg20: memref<16x32xf32, #tpu.memory_space<vmem>>) attributes {dimension_semantics = [], scalar_prefetch = 0 : i64, scratch_operands = 0 : i64, tpu.core_type = #tpu.core_type<tc>} {
    %c0 = arith.constant 0 : index
    %c0_0 = arith.constant 0 : index
    %0 = vector.load %arg0[%c0, %c0_0] : memref<16x32xf32, #tpu.memory_space<vmem>>, vector<16x32xf32>
    %c0_1 = arith.constant 0 : index
    %c0_2 = arith.constant 0 : index
    %1 = vector.load %arg1[%c0_1, %c0_2] : memref<16x32xf32, #tpu.memory_space<vmem>>, vector<16x32xf32>
    %c0_3 = arith.constant 0 : index
    %c0_4 = arith.constant 0 : index
    %2 = vector.load %arg2[%c0_3, %c0_4] : memref<32x96xf32, #tpu.memory_space<vmem>>, vector<32x96xf32>
    %c0_5 = arith.constant 0 : index
    %c0_6 = arith.constant 0 : index
    %3 = vector.load %arg3[%c0_5, %c0_6] : memref<1x96xf32, #tpu.memory_space<vmem>>, vector<1x96xf32>
    %cst = arith.constant dense<0.000000e+00> : vector<16x96xf32>
    %4 = tpu.matmul %0, %2, %cst {dimension_numbers = #tpu.dot_dimension_numbers<[1], [0], [0], [1], [0, 0, 1, 1], [], []>} : vector<16x32xf32>, vector<32x96xf32>, vector<16x96xf32> -> vector<16x96xf32>
    %5 = vector.broadcast %3 : vector<1x96xf32> to vector<16x96xf32>
    %6 = arith.addf %4, %5 : vector<16x96xf32>
    %7 = vector.extract_strided_slice %6 {offsets = [0, 0], sizes = [16, 32], strides = [1, 1]} : vector<16x96xf32> to vector<16x32xf32>
    %8 = vector.extract_strided_slice %6 {offsets = [0, 32], sizes = [16, 32], strides = [1, 1]} : vector<16x96xf32> to vector<16x32xf32>
    %9 = vector.extract_strided_slice %6 {offsets = [0, 64], sizes = [16, 32], strides = [1, 1]} : vector<16x96xf32> to vector<16x32xf32>
    %10 = vector.extract_strided_slice %7 {offsets = [0, 0], sizes = [8, 32], strides = [1, 1]} : vector<16x32xf32> to vector<8x32xf32>
    %cst_7 = arith.constant 0.353553385 : f32
    %11 = vector.broadcast %cst_7 : f32 to vector<8x32xf32>
    %12 = arith.mulf %10, %11 : vector<8x32xf32>
    %13 = vector.extract_strided_slice %8 {offsets = [0, 0], sizes = [8, 32], strides = [1, 1]} : vector<16x32xf32> to vector<8x32xf32>
    %14 = vector.extract_strided_slice %9 {offsets = [0, 0], sizes = [8, 32], strides = [1, 1]} : vector<16x32xf32> to vector<8x32xf32>
    %15 = vector.extract_strided_slice %12 {offsets = [0, 0], sizes = [8, 8], strides = [1, 1]} : vector<8x32xf32> to vector<8x8xf32>
    %16 = vector.extract_strided_slice %13 {offsets = [0, 0], sizes = [8, 8], strides = [1, 1]} : vector<8x32xf32> to vector<8x8xf32>
    %17 = vector.extract_strided_slice %14 {offsets = [0, 0], sizes = [8, 8], strides = [1, 1]} : vector<8x32xf32> to vector<8x8xf32>
    %cst_8 = arith.constant dense<0.000000e+00> : vector<8x8xf32>
    %18 = tpu.matmul %15, %16, %cst_8 {dimension_numbers = #tpu.dot_dimension_numbers<[1], [1], [0], [0], [0, 0, 1, 0], [], []>} : vector<8x8xf32>, vector<8x8xf32>, vector<8x8xf32> -> vector<8x8xf32>
    %cst_9 = arith.constant dense<0xFF800000> : vector<8xf32>
    %19 = vector.multi_reduction <maximumf>, %18, %cst_9 [1] : vector<8x8xf32> to vector<8xf32>
    %20 = vector.shape_cast %19 : vector<8xf32> to vector<8x1xf32>
    %21 = vector.broadcast %20 : vector<8x1xf32> to vector<8x8xf32>
    %22 = arith.subf %18, %21 : vector<8x8xf32>
    %23 = math.exp %22 : vector<8x8xf32>
    %cst_10 = arith.constant dense<0.000000e+00> : vector<8xf32>
    %24 = vector.multi_reduction <add>, %23, %cst_10 [1] : vector<8x8xf32> to vector<8xf32>
    %25 = vector.shape_cast %24 : vector<8xf32> to vector<8x1xf32>
    %26 = tpu.reciprocal %25 {approx = true} : vector<8x1xf32> -> vector<8x1xf32>
    %27 = vector.broadcast %26 : vector<8x1xf32> to vector<8x8xf32>
    %28 = arith.mulf %23, %27 : vector<8x8xf32>
    %cst_11 = arith.constant dense<0.000000e+00> : vector<8x8xf32>
    %29 = tpu.matmul %28, %17, %cst_11 {dimension_numbers = #tpu.dot_dimension_numbers<[1], [0], [0], [1], [0, 0, 1, 1], [], []>} : vector<8x8xf32>, vector<8x8xf32>, vector<8x8xf32> -> vector<8x8xf32>
    %30 = vector.extract_strided_slice %12 {offsets = [0, 8], sizes = [8, 8], strides = [1, 1]} : vector<8x32xf32> to vector<8x8xf32>
    %31 = vector.extract_strided_slice %13 {offsets = [0, 8], sizes = [8, 8], strides = [1, 1]} : vector<8x32xf32> to vector<8x8xf32>
    %32 = vector.extract_strided_slice %14 {offsets = [0, 8], sizes = [8, 8], strides = [1, 1]} : vector<8x32xf32> to vector<8x8xf32>
    %cst_12 = arith.constant dense<0.000000e+00> : vector<8x8xf32>
    %33 = tpu.matmul %30, %31, %cst_12 {dimension_numbers = #tpu.dot_dimension_numbers<[1], [1], [0], [0], [0, 0, 1, 0], [], []>} : vector<8x8xf32>, vector<8x8xf32>, vector<8x8xf32> -> vector<8x8xf32>
    %cst_13 = arith.constant dense<0xFF800000> : vector<8xf32>
    %34 = vector.multi_reduction <maximumf>, %33, %cst_13 [1] : vector<8x8xf32> to vector<8xf32>
    %35 = vector.shape_cast %34 : vector<8xf32> to vector<8x1xf32>
    %36 = vector.broadcast %35 : vector<8x1xf32> to vector<8x8xf32>
    %37 = arith.subf %33, %36 : vector<8x8xf32>
    %38 = math.exp %37 : vector<8x8xf32>
    %cst_14 = arith.constant dense<0.000000e+00> : vector<8xf32>
    %39 = vector.multi_reduction <add>, %38, %cst_14 [1] : vector<8x8xf32> to vector<8xf32>
    %40 = vector.shape_cast %39 : vector<8xf32> to vector<8x1xf32>
    %41 = tpu.reciprocal %40 {approx = true} : vector<8x1xf32> -> vector<8x1xf32>
    %42 = vector.broadcast %41 : vector<8x1xf32> to vector<8x8xf32>
    %43 = arith.mulf %38, %42 : vector<8x8xf32>
    %cst_15 = arith.constant dense<0.000000e+00> : vector<8x8xf32>
    %44 = tpu.matmul %43, %32, %cst_15 {dimension_numbers = #tpu.dot_dimension_numbers<[1], [0], [0], [1], [0, 0, 1, 1], [], []>} : vector<8x8xf32>, vector<8x8xf32>, vector<8x8xf32> -> vector<8x8xf32>
    %45 = vector.extract_strided_slice %12 {offsets = [0, 16], sizes = [8, 8], strides = [1, 1]} : vector<8x32xf32> to vector<8x8xf32>
    %46 = vector.extract_strided_slice %13 {offsets = [0, 16], sizes = [8, 8], strides = [1, 1]} : vector<8x32xf32> to vector<8x8xf32>
    %47 = vector.extract_strided_slice %14 {offsets = [0, 16], sizes = [8, 8], strides = [1, 1]} : vector<8x32xf32> to vector<8x8xf32>
    %cst_16 = arith.constant dense<0.000000e+00> : vector<8x8xf32>
    %48 = tpu.matmul %45, %46, %cst_16 {dimension_numbers = #tpu.dot_dimension_numbers<[1], [1], [0], [0], [0, 0, 1, 0], [], []>} : vector<8x8xf32>, vector<8x8xf32>, vector<8x8xf32> -> vector<8x8xf32>
    %cst_17 = arith.constant dense<0xFF800000> : vector<8xf32>
    %49 = vector.multi_reduction <maximumf>, %48, %cst_17 [1] : vector<8x8xf32> to vector<8xf32>
    %50 = vector.shape_cast %49 : vector<8xf32> to vector<8x1xf32>
    %51 = vector.broadcast %50 : vector<8x1xf32> to vector<8x8xf32>
    %52 = arith.subf %48, %51 : vector<8x8xf32>
    %53 = math.exp %52 : vector<8x8xf32>
    %cst_18 = arith.constant dense<0.000000e+00> : vector<8xf32>
    %54 = vector.multi_reduction <add>, %53, %cst_18 [1] : vector<8x8xf32> to vector<8xf32>
    %55 = vector.shape_cast %54 : vector<8xf32> to vector<8x1xf32>
    %56 = tpu.reciprocal %55 {approx = true} : vector<8x1xf32> -> vector<8x1xf32>
    %57 = vector.broadcast %56 : vector<8x1xf32> to vector<8x8xf32>
    %58 = arith.mulf %53, %57 : vector<8x8xf32>
    %cst_19 = arith.constant dense<0.000000e+00> : vector<8x8xf32>
    %59 = tpu.matmul %58, %47, %cst_19 {dimension_numbers = #tpu.dot_dimension_numbers<[1], [0], [0], [1], [0, 0, 1, 1], [], []>} : vector<8x8xf32>, vector<8x8xf32>, vector<8x8xf32> -> vector<8x8xf32>
    %60 = vector.extract_strided_slice %12 {offsets = [0, 24], sizes = [8, 8], strides = [1, 1]} : vector<8x32xf32> to vector<8x8xf32>
    %61 = vector.extract_strided_slice %13 {offsets = [0, 24], sizes = [8, 8], strides = [1, 1]} : vector<8x32xf32> to vector<8x8xf32>
    %62 = vector.extract_strided_slice %14 {offsets = [0, 24], sizes = [8, 8], strides = [1, 1]} : vector<8x32xf32> to vector<8x8xf32>
    %cst_20 = arith.constant dense<0.000000e+00> : vector<8x8xf32>
    %63 = tpu.matmul %60, %61, %cst_20 {dimension_numbers = #tpu.dot_dimension_numbers<[1], [1], [0], [0], [0, 0, 1, 0], [], []>} : vector<8x8xf32>, vector<8x8xf32>, vector<8x8xf32> -> vector<8x8xf32>
    %cst_21 = arith.constant dense<0xFF800000> : vector<8xf32>
    %64 = vector.multi_reduction <maximumf>, %63, %cst_21 [1] : vector<8x8xf32> to vector<8xf32>
    %65 = vector.shape_cast %64 : vector<8xf32> to vector<8x1xf32>
    %66 = vector.broadcast %65 : vector<8x1xf32> to vector<8x8xf32>
    %67 = arith.subf %63, %66 : vector<8x8xf32>
    %68 = math.exp %67 : vector<8x8xf32>
    %cst_22 = arith.constant dense<0.000000e+00> : vector<8xf32>
    %69 = vector.multi_reduction <add>, %68, %cst_22 [1] : vector<8x8xf32> to vector<8xf32>
    %70 = vector.shape_cast %69 : vector<8xf32> to vector<8x1xf32>
    %71 = tpu.reciprocal %70 {approx = true} : vector<8x1xf32> -> vector<8x1xf32>
    %72 = vector.broadcast %71 : vector<8x1xf32> to vector<8x8xf32>
    %73 = arith.mulf %68, %72 : vector<8x8xf32>
    %cst_23 = arith.constant dense<0.000000e+00> : vector<8x8xf32>
    %74 = tpu.matmul %73, %62, %cst_23 {dimension_numbers = #tpu.dot_dimension_numbers<[1], [0], [0], [1], [0, 0, 1, 1], [], []>} : vector<8x8xf32>, vector<8x8xf32>, vector<8x8xf32> -> vector<8x8xf32>
    %75 = tpu.concatenate %29, %44, %59, %74 in 1 : vector<8x8xf32>, vector<8x8xf32>, vector<8x8xf32>, vector<8x8xf32> -> vector<8x32xf32>
    %76 = vector.extract_strided_slice %7 {offsets = [8, 0], sizes = [8, 32], strides = [1, 1]} : vector<16x32xf32> to vector<8x32xf32>
    %cst_24 = arith.constant 0.353553385 : f32
    %77 = vector.broadcast %cst_24 : f32 to vector<8x32xf32>
    %78 = arith.mulf %76, %77 : vector<8x32xf32>
    %79 = vector.extract_strided_slice %8 {offsets = [8, 0], sizes = [8, 32], strides = [1, 1]} : vector<16x32xf32> to vector<8x32xf32>
    %80 = vector.extract_strided_slice %9 {offsets = [8, 0], sizes = [8, 32], strides = [1, 1]} : vector<16x32xf32> to vector<8x32xf32>
    %81 = vector.extract_strided_slice %78 {offsets = [0, 0], sizes = [8, 8], strides = [1, 1]} : vector<8x32xf32> to vector<8x8xf32>
    %82 = vector.extract_strided_slice %79 {offsets = [0, 0], sizes = [8, 8], strides = [1, 1]} : vector<8x32xf32> to vector<8x8xf32>
    %83 = vector.extract_strided_slice %80 {offsets = [0, 0], sizes = [8, 8], strides = [1, 1]} : vector<8x32xf32> to vector<8x8xf32>
    %cst_25 = arith.constant dense<0.000000e+00> : vector<8x8xf32>
    %84 = tpu.matmul %81, %82, %cst_25 {dimension_numbers = #tpu.dot_dimension_numbers<[1], [1], [0], [0], [0, 0, 1, 0], [], []>} : vector<8x8xf32>, vector<8x8xf32>, vector<8x8xf32> -> vector<8x8xf32>
    %cst_26 = arith.constant dense<0xFF800000> : vector<8xf32>
    %85 = vector.multi_reduction <maximumf>, %84, %cst_26 [1] : vector<8x8xf32> to vector<8xf32>
    %86 = vector.shape_cast %85 : vector<8xf32> to vector<8x1xf32>
    %87 = vector.broadcast %86 : vector<8x1xf32> to vector<8x8xf32>
    %88 = arith.subf %84, %87 : vector<8x8xf32>
    %89 = math.exp %88 : vector<8x8xf32>
    %cst_27 = arith.constant dense<0.000000e+00> : vector<8xf32>
    %90 = vector.multi_reduction <add>, %89, %cst_27 [1] : vector<8x8xf32> to vector<8xf32>
    %91 = vector.shape_cast %90 : vector<8xf32> to vector<8x1xf32>
    %92 = tpu.reciprocal %91 {approx = true} : vector<8x1xf32> -> vector<8x1xf32>
    %93 = vector.broadcast %92 : vector<8x1xf32> to vector<8x8xf32>
    %94 = arith.mulf %89, %93 : vector<8x8xf32>
    %cst_28 = arith.constant dense<0.000000e+00> : vector<8x8xf32>
    %95 = tpu.matmul %94, %83, %cst_28 {dimension_numbers = #tpu.dot_dimension_numbers<[1], [0], [0], [1], [0, 0, 1, 1], [], []>} : vector<8x8xf32>, vector<8x8xf32>, vector<8x8xf32> -> vector<8x8xf32>
    %96 = vector.extract_strided_slice %78 {offsets = [0, 8], sizes = [8, 8], strides = [1, 1]} : vector<8x32xf32> to vector<8x8xf32>
    %97 = vector.extract_strided_slice %79 {offsets = [0, 8], sizes = [8, 8], strides = [1, 1]} : vector<8x32xf32> to vector<8x8xf32>
    %98 = vector.extract_strided_slice %80 {offsets = [0, 8], sizes = [8, 8], strides = [1, 1]} : vector<8x32xf32> to vector<8x8xf32>
    %cst_29 = arith.constant dense<0.000000e+00> : vector<8x8xf32>
    %99 = tpu.matmul %96, %97, %cst_29 {dimension_numbers = #tpu.dot_dimension_numbers<[1], [1], [0], [0], [0, 0, 1, 0], [], []>} : vector<8x8xf32>, vector<8x8xf32>, vector<8x8xf32> -> vector<8x8xf32>
    %cst_30 = arith.constant dense<0xFF800000> : vector<8xf32>
    %100 = vector.multi_reduction <maximumf>, %99, %cst_30 [1] : vector<8x8xf32> to vector<8xf32>
    %101 = vector.shape_cast %100 : vector<8xf32> to vector<8x1xf32>
    %102 = vector.broadcast %101 : vector<8x1xf32> to vector<8x8xf32>
    %103 = arith.subf %99, %102 : vector<8x8xf32>
    %104 = math.exp %103 : vector<8x8xf32>
    %cst_31 = arith.constant dense<0.000000e+00> : vector<8xf32>
    %105 = vector.multi_reduction <add>, %104, %cst_31 [1] : vector<8x8xf32> to vector<8xf32>
    %106 = vector.shape_cast %105 : vector<8xf32> to vector<8x1xf32>
    %107 = tpu.reciprocal %106 {approx = true} : vector<8x1xf32> -> vector<8x1xf32>
    %108 = vector.broadcast %107 : vector<8x1xf32> to vector<8x8xf32>
    %109 = arith.mulf %104, %108 : vector<8x8xf32>
    %cst_32 = arith.constant dense<0.000000e+00> : vector<8x8xf32>
    %110 = tpu.matmul %109, %98, %cst_32 {dimension_numbers = #tpu.dot_dimension_numbers<[1], [0], [0], [1], [0, 0, 1, 1], [], []>} : vector<8x8xf32>, vector<8x8xf32>, vector<8x8xf32> -> vector<8x8xf32>
    %111 = vector.extract_strided_slice %78 {offsets = [0, 16], sizes = [8, 8], strides = [1, 1]} : vector<8x32xf32> to vector<8x8xf32>
    %112 = vector.extract_strided_slice %79 {offsets = [0, 16], sizes = [8, 8], strides = [1, 1]} : vector<8x32xf32> to vector<8x8xf32>
    %113 = vector.extract_strided_slice %80 {offsets = [0, 16], sizes = [8, 8], strides = [1, 1]} : vector<8x32xf32> to vector<8x8xf32>
    %cst_33 = arith.constant dense<0.000000e+00> : vector<8x8xf32>
    %114 = tpu.matmul %111, %112, %cst_33 {dimension_numbers = #tpu.dot_dimension_numbers<[1], [1], [0], [0], [0, 0, 1, 0], [], []>} : vector<8x8xf32>, vector<8x8xf32>, vector<8x8xf32> -> vector<8x8xf32>
    %cst_34 = arith.constant dense<0xFF800000> : vector<8xf32>
    %115 = vector.multi_reduction <maximumf>, %114, %cst_34 [1] : vector<8x8xf32> to vector<8xf32>
    %116 = vector.shape_cast %115 : vector<8xf32> to vector<8x1xf32>
    %117 = vector.broadcast %116 : vector<8x1xf32> to vector<8x8xf32>
    %118 = arith.subf %114, %117 : vector<8x8xf32>
    %119 = math.exp %118 : vector<8x8xf32>
    %cst_35 = arith.constant dense<0.000000e+00> : vector<8xf32>
    %120 = vector.multi_reduction <add>, %119, %cst_35 [1] : vector<8x8xf32> to vector<8xf32>
    %121 = vector.shape_cast %120 : vector<8xf32> to vector<8x1xf32>
    %122 = tpu.reciprocal %121 {approx = true} : vector<8x1xf32> -> vector<8x1xf32>
    %123 = vector.broadcast %122 : vector<8x1xf32> to vector<8x8xf32>
    %124 = arith.mulf %119, %123 : vector<8x8xf32>
    %cst_36 = arith.constant dense<0.000000e+00> : vector<8x8xf32>
    %125 = tpu.matmul %124, %113, %cst_36 {dimension_numbers = #tpu.dot_dimension_numbers<[1], [0], [0], [1], [0, 0, 1, 1], [], []>} : vector<8x8xf32>, vector<8x8xf32>, vector<8x8xf32> -> vector<8x8xf32>
    %126 = vector.extract_strided_slice %78 {offsets = [0, 24], sizes = [8, 8], strides = [1, 1]} : vector<8x32xf32> to vector<8x8xf32>
    %127 = vector.extract_strided_slice %79 {offsets = [0, 24], sizes = [8, 8], strides = [1, 1]} : vector<8x32xf32> to vector<8x8xf32>
    %128 = vector.extract_strided_slice %80 {offsets = [0, 24], sizes = [8, 8], strides = [1, 1]} : vector<8x32xf32> to vector<8x8xf32>
    %cst_37 = arith.constant dense<0.000000e+00> : vector<8x8xf32>
    %129 = tpu.matmul %126, %127, %cst_37 {dimension_numbers = #tpu.dot_dimension_numbers<[1], [1], [0], [0], [0, 0, 1, 0], [], []>} : vector<8x8xf32>, vector<8x8xf32>, vector<8x8xf32> -> vector<8x8xf32>
    %cst_38 = arith.constant dense<0xFF800000> : vector<8xf32>
    %130 = vector.multi_reduction <maximumf>, %129, %cst_38 [1] : vector<8x8xf32> to vector<8xf32>
    %131 = vector.shape_cast %130 : vector<8xf32> to vector<8x1xf32>
    %132 = vector.broadcast %131 : vector<8x1xf32> to vector<8x8xf32>
    %133 = arith.subf %129, %132 : vector<8x8xf32>
    %134 = math.exp %133 : vector<8x8xf32>
    %cst_39 = arith.constant dense<0.000000e+00> : vector<8xf32>
    %135 = vector.multi_reduction <add>, %134, %cst_39 [1] : vector<8x8xf32> to vector<8xf32>
    %136 = vector.shape_cast %135 : vector<8xf32> to vector<8x1xf32>
    %137 = tpu.reciprocal %136 {approx = true} : vector<8x1xf32> -> vector<8x1xf32>
    %138 = vector.broadcast %137 : vector<8x1xf32> to vector<8x8xf32>
    %139 = arith.mulf %134, %138 : vector<8x8xf32>
    %cst_40 = arith.constant dense<0.000000e+00> : vector<8x8xf32>
    %140 = tpu.matmul %139, %128, %cst_40 {dimension_numbers = #tpu.dot_dimension_numbers<[1], [0], [0], [1], [0, 0, 1, 1], [], []>} : vector<8x8xf32>, vector<8x8xf32>, vector<8x8xf32> -> vector<8x8xf32>
    %141 = tpu.concatenate %95, %110, %125, %140 in 1 : vector<8x8xf32>, vector<8x8xf32>, vector<8x8xf32>, vector<8x8xf32> -> vector<8x32xf32>
    %142 = tpu.concatenate %75, %141 in 0 : vector<8x32xf32>, vector<8x32xf32> -> vector<16x32xf32>
    %c0_41 = arith.constant 0 : index
    %c0_42 = arith.constant 0 : index
    %143 = vector.load %arg4[%c0_41, %c0_42] : memref<32x32xf32, #tpu.memory_space<vmem>>, vector<32x32xf32>
    %c0_43 = arith.constant 0 : index
    %c0_44 = arith.constant 0 : index
    %144 = vector.load %arg5[%c0_43, %c0_44] : memref<1x32xf32, #tpu.memory_space<vmem>>, vector<1x32xf32>
    %cst_45 = arith.constant dense<0.000000e+00> : vector<16x32xf32>
    %145 = tpu.matmul %142, %143, %cst_45 {dimension_numbers = #tpu.dot_dimension_numbers<[1], [0], [0], [1], [0, 0, 1, 1], [], []>} : vector<16x32xf32>, vector<32x32xf32>, vector<16x32xf32> -> vector<16x32xf32>
    %146 = vector.broadcast %144 : vector<1x32xf32> to vector<16x32xf32>
    %147 = arith.addf %145, %146 : vector<16x32xf32>
    %148 = arith.addf %0, %147 : vector<16x32xf32>
    %c0_46 = arith.constant 0 : index
    %c0_47 = arith.constant 0 : index
    %149 = vector.load %arg6[%c0_46, %c0_47] : memref<1x32xf32, #tpu.memory_space<vmem>>, vector<1x32xf32>
    %c0_48 = arith.constant 0 : index
    %c0_49 = arith.constant 0 : index
    %150 = vector.load %arg7[%c0_48, %c0_49] : memref<1x32xf32, #tpu.memory_space<vmem>>, vector<1x32xf32>
    %cst_50 = arith.constant dense<0.000000e+00> : vector<16xf32>
    %151 = vector.multi_reduction <add>, %148, %cst_50 [1] : vector<16x32xf32> to vector<16xf32>
    %152 = vector.shape_cast %151 : vector<16xf32> to vector<16x1xf32>
    %cst_51 = arith.constant 3.200000e+01 : f32
    %153 = vector.broadcast %cst_51 : f32 to vector<16x1xf32>
    %154 = arith.divf %152, %153 : vector<16x1xf32>
    %155 = vector.broadcast %154 : vector<16x1xf32> to vector<16x32xf32>
    %156 = arith.subf %148, %155 : vector<16x32xf32>
    %157 = arith.mulf %156, %156 : vector<16x32xf32>
    %cst_52 = arith.constant dense<0.000000e+00> : vector<16xf32>
    %158 = vector.multi_reduction <add>, %157, %cst_52 [1] : vector<16x32xf32> to vector<16xf32>
    %159 = vector.shape_cast %158 : vector<16xf32> to vector<16x1xf32>
    %cst_53 = arith.constant 3.200000e+01 : f32
    %160 = vector.broadcast %cst_53 : f32 to vector<16x1xf32>
    %161 = arith.divf %159, %160 : vector<16x1xf32>
    %162 = vector.broadcast %154 : vector<16x1xf32> to vector<16x32xf32>
    %163 = arith.subf %148, %162 : vector<16x32xf32>
    %cst_54 = arith.constant 9.99999974E-6 : f32
    %164 = vector.broadcast %cst_54 : f32 to vector<16x1xf32>
    %165 = arith.addf %161, %164 : vector<16x1xf32>
    %166 = math.rsqrt %165 : vector<16x1xf32>
    %167 = vector.broadcast %166 : vector<16x1xf32> to vector<16x32xf32>
    %168 = arith.mulf %163, %167 : vector<16x32xf32>
    %169 = vector.broadcast %149 : vector<1x32xf32> to vector<16x32xf32>
    %170 = arith.mulf %168, %169 : vector<16x32xf32>
    %171 = vector.broadcast %150 : vector<1x32xf32> to vector<16x32xf32>
    %172 = arith.addf %170, %171 : vector<16x32xf32>
    %c0_55 = arith.constant 0 : index
    %c0_56 = arith.constant 0 : index
    %173 = vector.load %arg8[%c0_55, %c0_56] : memref<32x96xf32, #tpu.memory_space<vmem>>, vector<32x96xf32>
    %c0_57 = arith.constant 0 : index
    %c0_58 = arith.constant 0 : index
    %174 = vector.load %arg9[%c0_57, %c0_58] : memref<1x96xf32, #tpu.memory_space<vmem>>, vector<1x96xf32>
    %175 = vector.extract_strided_slice %173 {offsets = [0, 0], sizes = [32, 32], strides = [1, 1]} : vector<32x96xf32> to vector<32x32xf32>
    %176 = vector.extract_strided_slice %174 {offsets = [0, 0], sizes = [1, 32], strides = [1, 1]} : vector<1x96xf32> to vector<1x32xf32>
    %cst_59 = arith.constant dense<0.000000e+00> : vector<16x32xf32>
    %177 = tpu.matmul %172, %175, %cst_59 {dimension_numbers = #tpu.dot_dimension_numbers<[1], [0], [0], [1], [0, 0, 1, 1], [], []>} : vector<16x32xf32>, vector<32x32xf32>, vector<16x32xf32> -> vector<16x32xf32>
    %178 = vector.broadcast %176 : vector<1x32xf32> to vector<16x32xf32>
    %179 = arith.addf %177, %178 : vector<16x32xf32>
    %180 = vector.extract_strided_slice %173 {offsets = [0, 32], sizes = [32, 64], strides = [1, 1]} : vector<32x96xf32> to vector<32x64xf32>
    %181 = vector.extract_strided_slice %174 {offsets = [0, 32], sizes = [1, 64], strides = [1, 1]} : vector<1x96xf32> to vector<1x64xf32>
    %cst_60 = arith.constant dense<0.000000e+00> : vector<16x64xf32>
    %182 = tpu.matmul %1, %180, %cst_60 {dimension_numbers = #tpu.dot_dimension_numbers<[1], [0], [0], [1], [0, 0, 1, 1], [], []>} : vector<16x32xf32>, vector<32x64xf32>, vector<16x64xf32> -> vector<16x64xf32>
    %183 = vector.broadcast %181 : vector<1x64xf32> to vector<16x64xf32>
    %184 = arith.addf %182, %183 : vector<16x64xf32>
    %185 = vector.extract_strided_slice %184 {offsets = [0, 0], sizes = [16, 32], strides = [1, 1]} : vector<16x64xf32> to vector<16x32xf32>
    %186 = vector.extract_strided_slice %184 {offsets = [0, 32], sizes = [16, 32], strides = [1, 1]} : vector<16x64xf32> to vector<16x32xf32>
    %187 = vector.extract_strided_slice %179 {offsets = [0, 0], sizes = [8, 32], strides = [1, 1]} : vector<16x32xf32> to vector<8x32xf32>
    %cst_61 = arith.constant 0.353553385 : f32
    %188 = vector.broadcast %cst_61 : f32 to vector<8x32xf32>
    %189 = arith.mulf %187, %188 : vector<8x32xf32>
    %190 = vector.extract_strided_slice %185 {offsets = [0, 0], sizes = [8, 32], strides = [1, 1]} : vector<16x32xf32> to vector<8x32xf32>
    %191 = vector.extract_strided_slice %186 {offsets = [0, 0], sizes = [8, 32], strides = [1, 1]} : vector<16x32xf32> to vector<8x32xf32>
    %192 = vector.extract_strided_slice %189 {offsets = [0, 0], sizes = [8, 8], strides = [1, 1]} : vector<8x32xf32> to vector<8x8xf32>
    %193 = vector.extract_strided_slice %190 {offsets = [0, 0], sizes = [8, 8], strides = [1, 1]} : vector<8x32xf32> to vector<8x8xf32>
    %194 = vector.extract_strided_slice %191 {offsets = [0, 0], sizes = [8, 8], strides = [1, 1]} : vector<8x32xf32> to vector<8x8xf32>
    %cst_62 = arith.constant dense<0.000000e+00> : vector<8x8xf32>
    %195 = tpu.matmul %192, %193, %cst_62 {dimension_numbers = #tpu.dot_dimension_numbers<[1], [1], [0], [0], [0, 0, 1, 0], [], []>} : vector<8x8xf32>, vector<8x8xf32>, vector<8x8xf32> -> vector<8x8xf32>
    %cst_63 = arith.constant dense<0xFF800000> : vector<8xf32>
    %196 = vector.multi_reduction <maximumf>, %195, %cst_63 [1] : vector<8x8xf32> to vector<8xf32>
    %197 = vector.shape_cast %196 : vector<8xf32> to vector<8x1xf32>
    %198 = vector.broadcast %197 : vector<8x1xf32> to vector<8x8xf32>
    %199 = arith.subf %195, %198 : vector<8x8xf32>
    %200 = math.exp %199 : vector<8x8xf32>
    %cst_64 = arith.constant dense<0.000000e+00> : vector<8xf32>
    %201 = vector.multi_reduction <add>, %200, %cst_64 [1] : vector<8x8xf32> to vector<8xf32>
    %202 = vector.shape_cast %201 : vector<8xf32> to vector<8x1xf32>
    %203 = tpu.reciprocal %202 {approx = true} : vector<8x1xf32> -> vector<8x1xf32>
    %204 = vector.broadcast %203 : vector<8x1xf32> to vector<8x8xf32>
    %205 = arith.mulf %200, %204 : vector<8x8xf32>
    %cst_65 = arith.constant dense<0.000000e+00> : vector<8x8xf32>
    %206 = tpu.matmul %205, %194, %cst_65 {dimension_numbers = #tpu.dot_dimension_numbers<[1], [0], [0], [1], [0, 0, 1, 1], [], []>} : vector<8x8xf32>, vector<8x8xf32>, vector<8x8xf32> -> vector<8x8xf32>
    %207 = vector.extract_strided_slice %189 {offsets = [0, 8], sizes = [8, 8], strides = [1, 1]} : vector<8x32xf32> to vector<8x8xf32>
    %208 = vector.extract_strided_slice %190 {offsets = [0, 8], sizes = [8, 8], strides = [1, 1]} : vector<8x32xf32> to vector<8x8xf32>
    %209 = vector.extract_strided_slice %191 {offsets = [0, 8], sizes = [8, 8], strides = [1, 1]} : vector<8x32xf32> to vector<8x8xf32>
    %cst_66 = arith.constant dense<0.000000e+00> : vector<8x8xf32>
    %210 = tpu.matmul %207, %208, %cst_66 {dimension_numbers = #tpu.dot_dimension_numbers<[1], [1], [0], [0], [0, 0, 1, 0], [], []>} : vector<8x8xf32>, vector<8x8xf32>, vector<8x8xf32> -> vector<8x8xf32>
    %cst_67 = arith.constant dense<0xFF800000> : vector<8xf32>
    %211 = vector.multi_reduction <maximumf>, %210, %cst_67 [1] : vector<8x8xf32> to vector<8xf32>
    %212 = vector.shape_cast %211 : vector<8xf32> to vector<8x1xf32>
    %213 = vector.broadcast %212 : vector<8x1xf32> to vector<8x8xf32>
    %214 = arith.subf %210, %213 : vector<8x8xf32>
    %215 = math.exp %214 : vector<8x8xf32>
    %cst_68 = arith.constant dense<0.000000e+00> : vector<8xf32>
    %216 = vector.multi_reduction <add>, %215, %cst_68 [1] : vector<8x8xf32> to vector<8xf32>
    %217 = vector.shape_cast %216 : vector<8xf32> to vector<8x1xf32>
    %218 = tpu.reciprocal %217 {approx = true} : vector<8x1xf32> -> vector<8x1xf32>
    %219 = vector.broadcast %218 : vector<8x1xf32> to vector<8x8xf32>
    %220 = arith.mulf %215, %219 : vector<8x8xf32>
    %cst_69 = arith.constant dense<0.000000e+00> : vector<8x8xf32>
    %221 = tpu.matmul %220, %209, %cst_69 {dimension_numbers = #tpu.dot_dimension_numbers<[1], [0], [0], [1], [0, 0, 1, 1], [], []>} : vector<8x8xf32>, vector<8x8xf32>, vector<8x8xf32> -> vector<8x8xf32>
    %222 = vector.extract_strided_slice %189 {offsets = [0, 16], sizes = [8, 8], strides = [1, 1]} : vector<8x32xf32> to vector<8x8xf32>
    %223 = vector.extract_strided_slice %190 {offsets = [0, 16], sizes = [8, 8], strides = [1, 1]} : vector<8x32xf32> to vector<8x8xf32>
    %224 = vector.extract_strided_slice %191 {offsets = [0, 16], sizes = [8, 8], strides = [1, 1]} : vector<8x32xf32> to vector<8x8xf32>
    %cst_70 = arith.constant dense<0.000000e+00> : vector<8x8xf32>
    %225 = tpu.matmul %222, %223, %cst_70 {dimension_numbers = #tpu.dot_dimension_numbers<[1], [1], [0], [0], [0, 0, 1, 0], [], []>} : vector<8x8xf32>, vector<8x8xf32>, vector<8x8xf32> -> vector<8x8xf32>
    %cst_71 = arith.constant dense<0xFF800000> : vector<8xf32>
    %226 = vector.multi_reduction <maximumf>, %225, %cst_71 [1] : vector<8x8xf32> to vector<8xf32>
    %227 = vector.shape_cast %226 : vector<8xf32> to vector<8x1xf32>
    %228 = vector.broadcast %227 : vector<8x1xf32> to vector<8x8xf32>
    %229 = arith.subf %225, %228 : vector<8x8xf32>
    %230 = math.exp %229 : vector<8x8xf32>
    %cst_72 = arith.constant dense<0.000000e+00> : vector<8xf32>
    %231 = vector.multi_reduction <add>, %230, %cst_72 [1] : vector<8x8xf32> to vector<8xf32>
    %232 = vector.shape_cast %231 : vector<8xf32> to vector<8x1xf32>
    %233 = tpu.reciprocal %232 {approx = true} : vector<8x1xf32> -> vector<8x1xf32>
    %234 = vector.broadcast %233 : vector<8x1xf32> to vector<8x8xf32>
    %235 = arith.mulf %230, %234 : vector<8x8xf32>
    %cst_73 = arith.constant dense<0.000000e+00> : vector<8x8xf32>
    %236 = tpu.matmul %235, %224, %cst_73 {dimension_numbers = #tpu.dot_dimension_numbers<[1], [0], [0], [1], [0, 0, 1, 1], [], []>} : vector<8x8xf32>, vector<8x8xf32>, vector<8x8xf32> -> vector<8x8xf32>
    %237 = vector.extract_strided_slice %189 {offsets = [0, 24], sizes = [8, 8], strides = [1, 1]} : vector<8x32xf32> to vector<8x8xf32>
    %238 = vector.extract_strided_slice %190 {offsets = [0, 24], sizes = [8, 8], strides = [1, 1]} : vector<8x32xf32> to vector<8x8xf32>
    %239 = vector.extract_strided_slice %191 {offsets = [0, 24], sizes = [8, 8], strides = [1, 1]} : vector<8x32xf32> to vector<8x8xf32>
    %cst_74 = arith.constant dense<0.000000e+00> : vector<8x8xf32>
    %240 = tpu.matmul %237, %238, %cst_74 {dimension_numbers = #tpu.dot_dimension_numbers<[1], [1], [0], [0], [0, 0, 1, 0], [], []>} : vector<8x8xf32>, vector<8x8xf32>, vector<8x8xf32> -> vector<8x8xf32>
    %cst_75 = arith.constant dense<0xFF800000> : vector<8xf32>
    %241 = vector.multi_reduction <maximumf>, %240, %cst_75 [1] : vector<8x8xf32> to vector<8xf32>
    %242 = vector.shape_cast %241 : vector<8xf32> to vector<8x1xf32>
    %243 = vector.broadcast %242 : vector<8x1xf32> to vector<8x8xf32>
    %244 = arith.subf %240, %243 : vector<8x8xf32>
    %245 = math.exp %244 : vector<8x8xf32>
    %cst_76 = arith.constant dense<0.000000e+00> : vector<8xf32>
    %246 = vector.multi_reduction <add>, %245, %cst_76 [1] : vector<8x8xf32> to vector<8xf32>
    %247 = vector.shape_cast %246 : vector<8xf32> to vector<8x1xf32>
    %248 = tpu.reciprocal %247 {approx = true} : vector<8x1xf32> -> vector<8x1xf32>
    %249 = vector.broadcast %248 : vector<8x1xf32> to vector<8x8xf32>
    %250 = arith.mulf %245, %249 : vector<8x8xf32>
    %cst_77 = arith.constant dense<0.000000e+00> : vector<8x8xf32>
    %251 = tpu.matmul %250, %239, %cst_77 {dimension_numbers = #tpu.dot_dimension_numbers<[1], [0], [0], [1], [0, 0, 1, 1], [], []>} : vector<8x8xf32>, vector<8x8xf32>, vector<8x8xf32> -> vector<8x8xf32>
    %252 = tpu.concatenate %206, %221, %236, %251 in 1 : vector<8x8xf32>, vector<8x8xf32>, vector<8x8xf32>, vector<8x8xf32> -> vector<8x32xf32>
    %253 = vector.extract_strided_slice %179 {offsets = [8, 0], sizes = [8, 32], strides = [1, 1]} : vector<16x32xf32> to vector<8x32xf32>
    %cst_78 = arith.constant 0.353553385 : f32
    %254 = vector.broadcast %cst_78 : f32 to vector<8x32xf32>
    %255 = arith.mulf %253, %254 : vector<8x32xf32>
    %256 = vector.extract_strided_slice %185 {offsets = [8, 0], sizes = [8, 32], strides = [1, 1]} : vector<16x32xf32> to vector<8x32xf32>
    %257 = vector.extract_strided_slice %186 {offsets = [8, 0], sizes = [8, 32], strides = [1, 1]} : vector<16x32xf32> to vector<8x32xf32>
    %258 = vector.extract_strided_slice %255 {offsets = [0, 0], sizes = [8, 8], strides = [1, 1]} : vector<8x32xf32> to vector<8x8xf32>
    %259 = vector.extract_strided_slice %256 {offsets = [0, 0], sizes = [8, 8], strides = [1, 1]} : vector<8x32xf32> to vector<8x8xf32>
    %260 = vector.extract_strided_slice %257 {offsets = [0, 0], sizes = [8, 8], strides = [1, 1]} : vector<8x32xf32> to vector<8x8xf32>
    %cst_79 = arith.constant dense<0.000000e+00> : vector<8x8xf32>
    %261 = tpu.matmul %258, %259, %cst_79 {dimension_numbers = #tpu.dot_dimension_numbers<[1], [1], [0], [0], [0, 0, 1, 0], [], []>} : vector<8x8xf32>, vector<8x8xf32>, vector<8x8xf32> -> vector<8x8xf32>
    %cst_80 = arith.constant dense<0xFF800000> : vector<8xf32>
    %262 = vector.multi_reduction <maximumf>, %261, %cst_80 [1] : vector<8x8xf32> to vector<8xf32>
    %263 = vector.shape_cast %262 : vector<8xf32> to vector<8x1xf32>
    %264 = vector.broadcast %263 : vector<8x1xf32> to vector<8x8xf32>
    %265 = arith.subf %261, %264 : vector<8x8xf32>
    %266 = math.exp %265 : vector<8x8xf32>
    %cst_81 = arith.constant dense<0.000000e+00> : vector<8xf32>
    %267 = vector.multi_reduction <add>, %266, %cst_81 [1] : vector<8x8xf32> to vector<8xf32>
    %268 = vector.shape_cast %267 : vector<8xf32> to vector<8x1xf32>
    %269 = tpu.reciprocal %268 {approx = true} : vector<8x1xf32> -> vector<8x1xf32>
    %270 = vector.broadcast %269 : vector<8x1xf32> to vector<8x8xf32>
    %271 = arith.mulf %266, %270 : vector<8x8xf32>
    %cst_82 = arith.constant dense<0.000000e+00> : vector<8x8xf32>
    %272 = tpu.matmul %271, %260, %cst_82 {dimension_numbers = #tpu.dot_dimension_numbers<[1], [0], [0], [1], [0, 0, 1, 1], [], []>} : vector<8x8xf32>, vector<8x8xf32>, vector<8x8xf32> -> vector<8x8xf32>
    %273 = vector.extract_strided_slice %255 {offsets = [0, 8], sizes = [8, 8], strides = [1, 1]} : vector<8x32xf32> to vector<8x8xf32>
    %274 = vector.extract_strided_slice %256 {offsets = [0, 8], sizes = [8, 8], strides = [1, 1]} : vector<8x32xf32> to vector<8x8xf32>
    %275 = vector.extract_strided_slice %257 {offsets = [0, 8], sizes = [8, 8], strides = [1, 1]} : vector<8x32xf32> to vector<8x8xf32>
    %cst_83 = arith.constant dense<0.000000e+00> : vector<8x8xf32>
    %276 = tpu.matmul %273, %274, %cst_83 {dimension_numbers = #tpu.dot_dimension_numbers<[1], [1], [0], [0], [0, 0, 1, 0], [], []>} : vector<8x8xf32>, vector<8x8xf32>, vector<8x8xf32> -> vector<8x8xf32>
    %cst_84 = arith.constant dense<0xFF800000> : vector<8xf32>
    %277 = vector.multi_reduction <maximumf>, %276, %cst_84 [1] : vector<8x8xf32> to vector<8xf32>
    %278 = vector.shape_cast %277 : vector<8xf32> to vector<8x1xf32>
    %279 = vector.broadcast %278 : vector<8x1xf32> to vector<8x8xf32>
    %280 = arith.subf %276, %279 : vector<8x8xf32>
    %281 = math.exp %280 : vector<8x8xf32>
    %cst_85 = arith.constant dense<0.000000e+00> : vector<8xf32>
    %282 = vector.multi_reduction <add>, %281, %cst_85 [1] : vector<8x8xf32> to vector<8xf32>
    %283 = vector.shape_cast %282 : vector<8xf32> to vector<8x1xf32>
    %284 = tpu.reciprocal %283 {approx = true} : vector<8x1xf32> -> vector<8x1xf32>
    %285 = vector.broadcast %284 : vector<8x1xf32> to vector<8x8xf32>
    %286 = arith.mulf %281, %285 : vector<8x8xf32>
    %cst_86 = arith.constant dense<0.000000e+00> : vector<8x8xf32>
    %287 = tpu.matmul %286, %275, %cst_86 {dimension_numbers = #tpu.dot_dimension_numbers<[1], [0], [0], [1], [0, 0, 1, 1], [], []>} : vector<8x8xf32>, vector<8x8xf32>, vector<8x8xf32> -> vector<8x8xf32>
    %288 = vector.extract_strided_slice %255 {offsets = [0, 16], sizes = [8, 8], strides = [1, 1]} : vector<8x32xf32> to vector<8x8xf32>
    %289 = vector.extract_strided_slice %256 {offsets = [0, 16], sizes = [8, 8], strides = [1, 1]} : vector<8x32xf32> to vector<8x8xf32>
    %290 = vector.extract_strided_slice %257 {offsets = [0, 16], sizes = [8, 8], strides = [1, 1]} : vector<8x32xf32> to vector<8x8xf32>
    %cst_87 = arith.constant dense<0.000000e+00> : vector<8x8xf32>
    %291 = tpu.matmul %288, %289, %cst_87 {dimension_numbers = #tpu.dot_dimension_numbers<[1], [1], [0], [0], [0, 0, 1, 0], [], []>} : vector<8x8xf32>, vector<8x8xf32>, vector<8x8xf32> -> vector<8x8xf32>
    %cst_88 = arith.constant dense<0xFF800000> : vector<8xf32>
    %292 = vector.multi_reduction <maximumf>, %291, %cst_88 [1] : vector<8x8xf32> to vector<8xf32>
    %293 = vector.shape_cast %292 : vector<8xf32> to vector<8x1xf32>
    %294 = vector.broadcast %293 : vector<8x1xf32> to vector<8x8xf32>
    %295 = arith.subf %291, %294 : vector<8x8xf32>
    %296 = math.exp %295 : vector<8x8xf32>
    %cst_89 = arith.constant dense<0.000000e+00> : vector<8xf32>
    %297 = vector.multi_reduction <add>, %296, %cst_89 [1] : vector<8x8xf32> to vector<8xf32>
    %298 = vector.shape_cast %297 : vector<8xf32> to vector<8x1xf32>
    %299 = tpu.reciprocal %298 {approx = true} : vector<8x1xf32> -> vector<8x1xf32>
    %300 = vector.broadcast %299 : vector<8x1xf32> to vector<8x8xf32>
    %301 = arith.mulf %296, %300 : vector<8x8xf32>
    %cst_90 = arith.constant dense<0.000000e+00> : vector<8x8xf32>
    %302 = tpu.matmul %301, %290, %cst_90 {dimension_numbers = #tpu.dot_dimension_numbers<[1], [0], [0], [1], [0, 0, 1, 1], [], []>} : vector<8x8xf32>, vector<8x8xf32>, vector<8x8xf32> -> vector<8x8xf32>
    %303 = vector.extract_strided_slice %255 {offsets = [0, 24], sizes = [8, 8], strides = [1, 1]} : vector<8x32xf32> to vector<8x8xf32>
    %304 = vector.extract_strided_slice %256 {offsets = [0, 24], sizes = [8, 8], strides = [1, 1]} : vector<8x32xf32> to vector<8x8xf32>
    %305 = vector.extract_strided_slice %257 {offsets = [0, 24], sizes = [8, 8], strides = [1, 1]} : vector<8x32xf32> to vector<8x8xf32>
    %cst_91 = arith.constant dense<0.000000e+00> : vector<8x8xf32>
    %306 = tpu.matmul %303, %304, %cst_91 {dimension_numbers = #tpu.dot_dimension_numbers<[1], [1], [0], [0], [0, 0, 1, 0], [], []>} : vector<8x8xf32>, vector<8x8xf32>, vector<8x8xf32> -> vector<8x8xf32>
    %cst_92 = arith.constant dense<0xFF800000> : vector<8xf32>
    %307 = vector.multi_reduction <maximumf>, %306, %cst_92 [1] : vector<8x8xf32> to vector<8xf32>
    %308 = vector.shape_cast %307 : vector<8xf32> to vector<8x1xf32>
    %309 = vector.broadcast %308 : vector<8x1xf32> to vector<8x8xf32>
    %310 = arith.subf %306, %309 : vector<8x8xf32>
    %311 = math.exp %310 : vector<8x8xf32>
    %cst_93 = arith.constant dense<0.000000e+00> : vector<8xf32>
    %312 = vector.multi_reduction <add>, %311, %cst_93 [1] : vector<8x8xf32> to vector<8xf32>
    %313 = vector.shape_cast %312 : vector<8xf32> to vector<8x1xf32>
    %314 = tpu.reciprocal %313 {approx = true} : vector<8x1xf32> -> vector<8x1xf32>
    %315 = vector.broadcast %314 : vector<8x1xf32> to vector<8x8xf32>
    %316 = arith.mulf %311, %315 : vector<8x8xf32>
    %cst_94 = arith.constant dense<0.000000e+00> : vector<8x8xf32>
    %317 = tpu.matmul %316, %305, %cst_94 {dimension_numbers = #tpu.dot_dimension_numbers<[1], [0], [0], [1], [0, 0, 1, 1], [], []>} : vector<8x8xf32>, vector<8x8xf32>, vector<8x8xf32> -> vector<8x8xf32>
    %318 = tpu.concatenate %272, %287, %302, %317 in 1 : vector<8x8xf32>, vector<8x8xf32>, vector<8x8xf32>, vector<8x8xf32> -> vector<8x32xf32>
    %319 = tpu.concatenate %252, %318 in 0 : vector<8x32xf32>, vector<8x32xf32> -> vector<16x32xf32>
    %c0_95 = arith.constant 0 : index
    %c0_96 = arith.constant 0 : index
    %320 = vector.load %arg10[%c0_95, %c0_96] : memref<32x32xf32, #tpu.memory_space<vmem>>, vector<32x32xf32>
    %c0_97 = arith.constant 0 : index
    %c0_98 = arith.constant 0 : index
    %321 = vector.load %arg11[%c0_97, %c0_98] : memref<1x32xf32, #tpu.memory_space<vmem>>, vector<1x32xf32>
    %cst_99 = arith.constant dense<0.000000e+00> : vector<16x32xf32>
    %322 = tpu.matmul %319, %320, %cst_99 {dimension_numbers = #tpu.dot_dimension_numbers<[1], [0], [0], [1], [0, 0, 1, 1], [], []>} : vector<16x32xf32>, vector<32x32xf32>, vector<16x32xf32> -> vector<16x32xf32>
    %323 = vector.broadcast %321 : vector<1x32xf32> to vector<16x32xf32>
    %324 = arith.addf %322, %323 : vector<16x32xf32>
    %325 = arith.addf %172, %324 : vector<16x32xf32>
    %c0_100 = arith.constant 0 : index
    %c0_101 = arith.constant 0 : index
    %326 = vector.load %arg12[%c0_100, %c0_101] : memref<1x32xf32, #tpu.memory_space<vmem>>, vector<1x32xf32>
    %c0_102 = arith.constant 0 : index
    %c0_103 = arith.constant 0 : index
    %327 = vector.load %arg13[%c0_102, %c0_103] : memref<1x32xf32, #tpu.memory_space<vmem>>, vector<1x32xf32>
    %cst_104 = arith.constant dense<0.000000e+00> : vector<16xf32>
    %328 = vector.multi_reduction <add>, %325, %cst_104 [1] : vector<16x32xf32> to vector<16xf32>
    %329 = vector.shape_cast %328 : vector<16xf32> to vector<16x1xf32>
    %cst_105 = arith.constant 3.200000e+01 : f32
    %330 = vector.broadcast %cst_105 : f32 to vector<16x1xf32>
    %331 = arith.divf %329, %330 : vector<16x1xf32>
    %332 = vector.broadcast %331 : vector<16x1xf32> to vector<16x32xf32>
    %333 = arith.subf %325, %332 : vector<16x32xf32>
    %334 = arith.mulf %333, %333 : vector<16x32xf32>
    %cst_106 = arith.constant dense<0.000000e+00> : vector<16xf32>
    %335 = vector.multi_reduction <add>, %334, %cst_106 [1] : vector<16x32xf32> to vector<16xf32>
    %336 = vector.shape_cast %335 : vector<16xf32> to vector<16x1xf32>
    %cst_107 = arith.constant 3.200000e+01 : f32
    %337 = vector.broadcast %cst_107 : f32 to vector<16x1xf32>
    %338 = arith.divf %336, %337 : vector<16x1xf32>
    %339 = vector.broadcast %331 : vector<16x1xf32> to vector<16x32xf32>
    %340 = arith.subf %325, %339 : vector<16x32xf32>
    %cst_108 = arith.constant 9.99999974E-6 : f32
    %341 = vector.broadcast %cst_108 : f32 to vector<16x1xf32>
    %342 = arith.addf %338, %341 : vector<16x1xf32>
    %343 = math.rsqrt %342 : vector<16x1xf32>
    %344 = vector.broadcast %343 : vector<16x1xf32> to vector<16x32xf32>
    %345 = arith.mulf %340, %344 : vector<16x32xf32>
    %346 = vector.broadcast %326 : vector<1x32xf32> to vector<16x32xf32>
    %347 = arith.mulf %345, %346 : vector<16x32xf32>
    %348 = vector.broadcast %327 : vector<1x32xf32> to vector<16x32xf32>
    %349 = arith.addf %347, %348 : vector<16x32xf32>
    %c0_109 = arith.constant 0 : index
    %c0_110 = arith.constant 0 : index
    %350 = vector.load %arg14[%c0_109, %c0_110] : memref<32x64xf32, #tpu.memory_space<vmem>>, vector<32x64xf32>
    %c0_111 = arith.constant 0 : index
    %c0_112 = arith.constant 0 : index
    %351 = vector.load %arg15[%c0_111, %c0_112] : memref<1x64xf32, #tpu.memory_space<vmem>>, vector<1x64xf32>
    %cst_113 = arith.constant dense<0.000000e+00> : vector<16x64xf32>
    %352 = tpu.matmul %349, %350, %cst_113 {dimension_numbers = #tpu.dot_dimension_numbers<[1], [0], [0], [1], [0, 0, 1, 1], [], []>} : vector<16x32xf32>, vector<32x64xf32>, vector<16x64xf32> -> vector<16x64xf32>
    %353 = vector.broadcast %351 : vector<1x64xf32> to vector<16x64xf32>
    %354 = arith.addf %352, %353 : vector<16x64xf32>
    %cst_114 = arith.constant 0.000000e+00 : f32
    %355 = vector.broadcast %cst_114 : f32 to vector<16x64xf32>
    %356 = arith.maximumf %354, %355 : vector<16x64xf32>
    %c0_115 = arith.constant 0 : index
    %c0_116 = arith.constant 0 : index
    %357 = vector.load %arg16[%c0_115, %c0_116] : memref<64x32xf32, #tpu.memory_space<vmem>>, vector<64x32xf32>
    %c0_117 = arith.constant 0 : index
    %c0_118 = arith.constant 0 : index
    %358 = vector.load %arg17[%c0_117, %c0_118] : memref<1x32xf32, #tpu.memory_space<vmem>>, vector<1x32xf32>
    %cst_119 = arith.constant dense<0.000000e+00> : vector<16x32xf32>
    %359 = tpu.matmul %356, %357, %cst_119 {dimension_numbers = #tpu.dot_dimension_numbers<[1], [0], [0], [1], [0, 0, 1, 1], [], []>} : vector<16x64xf32>, vector<64x32xf32>, vector<16x32xf32> -> vector<16x32xf32>
    %360 = vector.broadcast %358 : vector<1x32xf32> to vector<16x32xf32>
    %361 = arith.addf %359, %360 : vector<16x32xf32>
    %362 = arith.addf %349, %361 : vector<16x32xf32>
    %c0_120 = arith.constant 0 : index
    %c0_121 = arith.constant 0 : index
    %363 = vector.load %arg18[%c0_120, %c0_121] : memref<1x32xf32, #tpu.memory_space<vmem>>, vector<1x32xf32>
    %c0_122 = arith.constant 0 : index
    %c0_123 = arith.constant 0 : index
    %364 = vector.load %arg19[%c0_122, %c0_123] : memref<1x32xf32, #tpu.memory_space<vmem>>, vector<1x32xf32>
    %cst_124 = arith.constant dense<0.000000e+00> : vector<16xf32>
    %365 = vector.multi_reduction <add>, %362, %cst_124 [1] : vector<16x32xf32> to vector<16xf32>
    %366 = vector.shape_cast %365 : vector<16xf32> to vector<16x1xf32>
    %cst_125 = arith.constant 3.200000e+01 : f32
    %367 = vector.broadcast %cst_125 : f32 to vector<16x1xf32>
    %368 = arith.divf %366, %367 : vector<16x1xf32>
    %369 = vector.broadcast %368 : vector<16x1xf32> to vector<16x32xf32>
    %370 = arith.subf %362, %369 : vector<16x32xf32>
    %371 = arith.mulf %370, %370 : vector<16x32xf32>
    %cst_126 = arith.constant dense<0.000000e+00> : vector<16xf32>
    %372 = vector.multi_reduction <add>, %371, %cst_126 [1] : vector<16x32xf32> to vector<16xf32>
    %373 = vector.shape_cast %372 : vector<16xf32> to vector<16x1xf32>
    %cst_127 = arith.constant 3.200000e+01 : f32
    %374 = vector.broadcast %cst_127 : f32 to vector<16x1xf32>
    %375 = arith.divf %373, %374 : vector<16x1xf32>
    %376 = vector.broadcast %368 : vector<16x1xf32> to vector<16x32xf32>
    %377 = arith.subf %362, %376 : vector<16x32xf32>
    %cst_128 = arith.constant 9.99999974E-6 : f32
    %378 = vector.broadcast %cst_128 : f32 to vector<16x1xf32>
    %379 = arith.addf %375, %378 : vector<16x1xf32>
    %380 = math.rsqrt %379 : vector<16x1xf32>
    %381 = vector.broadcast %380 : vector<16x1xf32> to vector<16x32xf32>
    %382 = arith.mulf %377, %381 : vector<16x32xf32>
    %383 = vector.broadcast %363 : vector<1x32xf32> to vector<16x32xf32>
    %384 = arith.mulf %382, %383 : vector<16x32xf32>
    %385 = vector.broadcast %364 : vector<1x32xf32> to vector<16x32xf32>
    %386 = arith.addf %384, %385 : vector<16x32xf32>
    %c0_129 = arith.constant 0 : index
    %c0_130 = arith.constant 0 : index
    %387 = vector.load %arg20[%c0_129, %c0_130] : memref<16x32xf32, #tpu.memory_space<vmem>>, vector<16x32xf32>
    tpu.vector_store %arg20[%c0_129, %c0_130], %386 {strides = array<i32>} : memref<16x32xf32, #tpu.memory_space<vmem>>, vector<16x32xf32>,
    return
  }
}

module attributes {stable_mosaic.version = 11 : i64} {
  func.func @_encoder_layer_kernel(%arg0: memref<16x32xf32, #tpu.memory_space<vmem>>, %arg1: memref<32x96xf32, #tpu.memory_space<vmem>>, %arg2: memref<1x96xf32, #tpu.memory_space<vmem>>, %arg3: memref<32x32xf32, #tpu.memory_space<vmem>>, %arg4: memref<1x32xf32, #tpu.memory_space<vmem>>, %arg5: memref<1x32xf32, #tpu.memory_space<vmem>>, %arg6: memref<1x32xf32, #tpu.memory_space<vmem>>, %arg7: memref<32x64xf32, #tpu.memory_space<vmem>>, %arg8: memref<1x64xf32, #tpu.memory_space<vmem>>, %arg9: memref<64x32xf32, #tpu.memory_space<vmem>>, %arg10: memref<1x32xf32, #tpu.memory_space<vmem>>, %arg11: memref<1x32xf32, #tpu.memory_space<vmem>>, %arg12: memref<1x32xf32, #tpu.memory_space<vmem>>, %arg13: memref<16x32xf32, #tpu.memory_space<vmem>>) attributes {dimension_semantics = [], scalar_prefetch = 0 : i64, scratch_operands = 0 : i64, tpu.core_type = #tpu.core_type<tc>} {
    %c0 = arith.constant 0 : index
    %c0_0 = arith.constant 0 : index
    %0 = vector.load %arg0[%c0, %c0_0] : memref<16x32xf32, #tpu.memory_space<vmem>>, vector<16x32xf32>
    %c0_1 = arith.constant 0 : index
    %c0_2 = arith.constant 0 : index
    %1 = vector.load %arg1[%c0_1, %c0_2] : memref<32x96xf32, #tpu.memory_space<vmem>>, vector<32x96xf32>
    %c0_3 = arith.constant 0 : index
    %c0_4 = arith.constant 0 : index
    %2 = vector.load %arg2[%c0_3, %c0_4] : memref<1x96xf32, #tpu.memory_space<vmem>>, vector<1x96xf32>
    %cst = arith.constant dense<0.000000e+00> : vector<16x96xf32>
    %3 = tpu.matmul %0, %1, %cst {dimension_numbers = #tpu.dot_dimension_numbers<[1], [0], [0], [1], [0, 0, 1, 1], [], []>} : vector<16x32xf32>, vector<32x96xf32>, vector<16x96xf32> -> vector<16x96xf32>
    %4 = vector.broadcast %2 : vector<1x96xf32> to vector<16x96xf32>
    %5 = arith.addf %3, %4 : vector<16x96xf32>
    %6 = vector.extract_strided_slice %5 {offsets = [0, 0], sizes = [16, 32], strides = [1, 1]} : vector<16x96xf32> to vector<16x32xf32>
    %7 = vector.extract_strided_slice %5 {offsets = [0, 32], sizes = [16, 32], strides = [1, 1]} : vector<16x96xf32> to vector<16x32xf32>
    %8 = vector.extract_strided_slice %5 {offsets = [0, 64], sizes = [16, 32], strides = [1, 1]} : vector<16x96xf32> to vector<16x32xf32>
    %9 = vector.extract_strided_slice %6 {offsets = [0, 0], sizes = [8, 32], strides = [1, 1]} : vector<16x32xf32> to vector<8x32xf32>
    %cst_5 = arith.constant 0.353553385 : f32
    %10 = vector.broadcast %cst_5 : f32 to vector<8x32xf32>
    %11 = arith.mulf %9, %10 : vector<8x32xf32>
    %12 = vector.extract_strided_slice %7 {offsets = [0, 0], sizes = [8, 32], strides = [1, 1]} : vector<16x32xf32> to vector<8x32xf32>
    %13 = vector.extract_strided_slice %8 {offsets = [0, 0], sizes = [8, 32], strides = [1, 1]} : vector<16x32xf32> to vector<8x32xf32>
    %14 = vector.extract_strided_slice %11 {offsets = [0, 0], sizes = [8, 8], strides = [1, 1]} : vector<8x32xf32> to vector<8x8xf32>
    %15 = vector.extract_strided_slice %12 {offsets = [0, 0], sizes = [8, 8], strides = [1, 1]} : vector<8x32xf32> to vector<8x8xf32>
    %16 = vector.extract_strided_slice %13 {offsets = [0, 0], sizes = [8, 8], strides = [1, 1]} : vector<8x32xf32> to vector<8x8xf32>
    %cst_6 = arith.constant dense<0.000000e+00> : vector<8x8xf32>
    %17 = tpu.matmul %14, %15, %cst_6 {dimension_numbers = #tpu.dot_dimension_numbers<[1], [1], [0], [0], [0, 0, 1, 0], [], []>} : vector<8x8xf32>, vector<8x8xf32>, vector<8x8xf32> -> vector<8x8xf32>
    %cst_7 = arith.constant dense<0xFF800000> : vector<8xf32>
    %18 = vector.multi_reduction <maximumf>, %17, %cst_7 [1] : vector<8x8xf32> to vector<8xf32>
    %19 = vector.shape_cast %18 : vector<8xf32> to vector<8x1xf32>
    %20 = vector.broadcast %19 : vector<8x1xf32> to vector<8x8xf32>
    %21 = arith.subf %17, %20 : vector<8x8xf32>
    %22 = math.exp %21 : vector<8x8xf32>
    %cst_8 = arith.constant dense<0.000000e+00> : vector<8xf32>
    %23 = vector.multi_reduction <add>, %22, %cst_8 [1] : vector<8x8xf32> to vector<8xf32>
    %24 = vector.shape_cast %23 : vector<8xf32> to vector<8x1xf32>
    %25 = tpu.reciprocal %24 {approx = true} : vector<8x1xf32> -> vector<8x1xf32>
    %26 = vector.broadcast %25 : vector<8x1xf32> to vector<8x8xf32>
    %27 = arith.mulf %22, %26 : vector<8x8xf32>
    %cst_9 = arith.constant dense<0.000000e+00> : vector<8x8xf32>
    %28 = tpu.matmul %27, %16, %cst_9 {dimension_numbers = #tpu.dot_dimension_numbers<[1], [0], [0], [1], [0, 0, 1, 1], [], []>} : vector<8x8xf32>, vector<8x8xf32>, vector<8x8xf32> -> vector<8x8xf32>
    %29 = vector.extract_strided_slice %11 {offsets = [0, 8], sizes = [8, 8], strides = [1, 1]} : vector<8x32xf32> to vector<8x8xf32>
    %30 = vector.extract_strided_slice %12 {offsets = [0, 8], sizes = [8, 8], strides = [1, 1]} : vector<8x32xf32> to vector<8x8xf32>
    %31 = vector.extract_strided_slice %13 {offsets = [0, 8], sizes = [8, 8], strides = [1, 1]} : vector<8x32xf32> to vector<8x8xf32>
    %cst_10 = arith.constant dense<0.000000e+00> : vector<8x8xf32>
    %32 = tpu.matmul %29, %30, %cst_10 {dimension_numbers = #tpu.dot_dimension_numbers<[1], [1], [0], [0], [0, 0, 1, 0], [], []>} : vector<8x8xf32>, vector<8x8xf32>, vector<8x8xf32> -> vector<8x8xf32>
    %cst_11 = arith.constant dense<0xFF800000> : vector<8xf32>
    %33 = vector.multi_reduction <maximumf>, %32, %cst_11 [1] : vector<8x8xf32> to vector<8xf32>
    %34 = vector.shape_cast %33 : vector<8xf32> to vector<8x1xf32>
    %35 = vector.broadcast %34 : vector<8x1xf32> to vector<8x8xf32>
    %36 = arith.subf %32, %35 : vector<8x8xf32>
    %37 = math.exp %36 : vector<8x8xf32>
    %cst_12 = arith.constant dense<0.000000e+00> : vector<8xf32>
    %38 = vector.multi_reduction <add>, %37, %cst_12 [1] : vector<8x8xf32> to vector<8xf32>
    %39 = vector.shape_cast %38 : vector<8xf32> to vector<8x1xf32>
    %40 = tpu.reciprocal %39 {approx = true} : vector<8x1xf32> -> vector<8x1xf32>
    %41 = vector.broadcast %40 : vector<8x1xf32> to vector<8x8xf32>
    %42 = arith.mulf %37, %41 : vector<8x8xf32>
    %cst_13 = arith.constant dense<0.000000e+00> : vector<8x8xf32>
    %43 = tpu.matmul %42, %31, %cst_13 {dimension_numbers = #tpu.dot_dimension_numbers<[1], [0], [0], [1], [0, 0, 1, 1], [], []>} : vector<8x8xf32>, vector<8x8xf32>, vector<8x8xf32> -> vector<8x8xf32>
    %44 = vector.extract_strided_slice %11 {offsets = [0, 16], sizes = [8, 8], strides = [1, 1]} : vector<8x32xf32> to vector<8x8xf32>
    %45 = vector.extract_strided_slice %12 {offsets = [0, 16], sizes = [8, 8], strides = [1, 1]} : vector<8x32xf32> to vector<8x8xf32>
    %46 = vector.extract_strided_slice %13 {offsets = [0, 16], sizes = [8, 8], strides = [1, 1]} : vector<8x32xf32> to vector<8x8xf32>
    %cst_14 = arith.constant dense<0.000000e+00> : vector<8x8xf32>
    %47 = tpu.matmul %44, %45, %cst_14 {dimension_numbers = #tpu.dot_dimension_numbers<[1], [1], [0], [0], [0, 0, 1, 0], [], []>} : vector<8x8xf32>, vector<8x8xf32>, vector<8x8xf32> -> vector<8x8xf32>
    %cst_15 = arith.constant dense<0xFF800000> : vector<8xf32>
    %48 = vector.multi_reduction <maximumf>, %47, %cst_15 [1] : vector<8x8xf32> to vector<8xf32>
    %49 = vector.shape_cast %48 : vector<8xf32> to vector<8x1xf32>
    %50 = vector.broadcast %49 : vector<8x1xf32> to vector<8x8xf32>
    %51 = arith.subf %47, %50 : vector<8x8xf32>
    %52 = math.exp %51 : vector<8x8xf32>
    %cst_16 = arith.constant dense<0.000000e+00> : vector<8xf32>
    %53 = vector.multi_reduction <add>, %52, %cst_16 [1] : vector<8x8xf32> to vector<8xf32>
    %54 = vector.shape_cast %53 : vector<8xf32> to vector<8x1xf32>
    %55 = tpu.reciprocal %54 {approx = true} : vector<8x1xf32> -> vector<8x1xf32>
    %56 = vector.broadcast %55 : vector<8x1xf32> to vector<8x8xf32>
    %57 = arith.mulf %52, %56 : vector<8x8xf32>
    %cst_17 = arith.constant dense<0.000000e+00> : vector<8x8xf32>
    %58 = tpu.matmul %57, %46, %cst_17 {dimension_numbers = #tpu.dot_dimension_numbers<[1], [0], [0], [1], [0, 0, 1, 1], [], []>} : vector<8x8xf32>, vector<8x8xf32>, vector<8x8xf32> -> vector<8x8xf32>
    %59 = vector.extract_strided_slice %11 {offsets = [0, 24], sizes = [8, 8], strides = [1, 1]} : vector<8x32xf32> to vector<8x8xf32>
    %60 = vector.extract_strided_slice %12 {offsets = [0, 24], sizes = [8, 8], strides = [1, 1]} : vector<8x32xf32> to vector<8x8xf32>
    %61 = vector.extract_strided_slice %13 {offsets = [0, 24], sizes = [8, 8], strides = [1, 1]} : vector<8x32xf32> to vector<8x8xf32>
    %cst_18 = arith.constant dense<0.000000e+00> : vector<8x8xf32>
    %62 = tpu.matmul %59, %60, %cst_18 {dimension_numbers = #tpu.dot_dimension_numbers<[1], [1], [0], [0], [0, 0, 1, 0], [], []>} : vector<8x8xf32>, vector<8x8xf32>, vector<8x8xf32> -> vector<8x8xf32>
    %cst_19 = arith.constant dense<0xFF800000> : vector<8xf32>
    %63 = vector.multi_reduction <maximumf>, %62, %cst_19 [1] : vector<8x8xf32> to vector<8xf32>
    %64 = vector.shape_cast %63 : vector<8xf32> to vector<8x1xf32>
    %65 = vector.broadcast %64 : vector<8x1xf32> to vector<8x8xf32>
    %66 = arith.subf %62, %65 : vector<8x8xf32>
    %67 = math.exp %66 : vector<8x8xf32>
    %cst_20 = arith.constant dense<0.000000e+00> : vector<8xf32>
    %68 = vector.multi_reduction <add>, %67, %cst_20 [1] : vector<8x8xf32> to vector<8xf32>
    %69 = vector.shape_cast %68 : vector<8xf32> to vector<8x1xf32>
    %70 = tpu.reciprocal %69 {approx = true} : vector<8x1xf32> -> vector<8x1xf32>
    %71 = vector.broadcast %70 : vector<8x1xf32> to vector<8x8xf32>
    %72 = arith.mulf %67, %71 : vector<8x8xf32>
    %cst_21 = arith.constant dense<0.000000e+00> : vector<8x8xf32>
    %73 = tpu.matmul %72, %61, %cst_21 {dimension_numbers = #tpu.dot_dimension_numbers<[1], [0], [0], [1], [0, 0, 1, 1], [], []>} : vector<8x8xf32>, vector<8x8xf32>, vector<8x8xf32> -> vector<8x8xf32>
    %74 = tpu.concatenate %28, %43, %58, %73 in 1 : vector<8x8xf32>, vector<8x8xf32>, vector<8x8xf32>, vector<8x8xf32> -> vector<8x32xf32>
    %75 = vector.extract_strided_slice %6 {offsets = [8, 0], sizes = [8, 32], strides = [1, 1]} : vector<16x32xf32> to vector<8x32xf32>
    %cst_22 = arith.constant 0.353553385 : f32
    %76 = vector.broadcast %cst_22 : f32 to vector<8x32xf32>
    %77 = arith.mulf %75, %76 : vector<8x32xf32>
    %78 = vector.extract_strided_slice %7 {offsets = [8, 0], sizes = [8, 32], strides = [1, 1]} : vector<16x32xf32> to vector<8x32xf32>
    %79 = vector.extract_strided_slice %8 {offsets = [8, 0], sizes = [8, 32], strides = [1, 1]} : vector<16x32xf32> to vector<8x32xf32>
    %80 = vector.extract_strided_slice %77 {offsets = [0, 0], sizes = [8, 8], strides = [1, 1]} : vector<8x32xf32> to vector<8x8xf32>
    %81 = vector.extract_strided_slice %78 {offsets = [0, 0], sizes = [8, 8], strides = [1, 1]} : vector<8x32xf32> to vector<8x8xf32>
    %82 = vector.extract_strided_slice %79 {offsets = [0, 0], sizes = [8, 8], strides = [1, 1]} : vector<8x32xf32> to vector<8x8xf32>
    %cst_23 = arith.constant dense<0.000000e+00> : vector<8x8xf32>
    %83 = tpu.matmul %80, %81, %cst_23 {dimension_numbers = #tpu.dot_dimension_numbers<[1], [1], [0], [0], [0, 0, 1, 0], [], []>} : vector<8x8xf32>, vector<8x8xf32>, vector<8x8xf32> -> vector<8x8xf32>
    %cst_24 = arith.constant dense<0xFF800000> : vector<8xf32>
    %84 = vector.multi_reduction <maximumf>, %83, %cst_24 [1] : vector<8x8xf32> to vector<8xf32>
    %85 = vector.shape_cast %84 : vector<8xf32> to vector<8x1xf32>
    %86 = vector.broadcast %85 : vector<8x1xf32> to vector<8x8xf32>
    %87 = arith.subf %83, %86 : vector<8x8xf32>
    %88 = math.exp %87 : vector<8x8xf32>
    %cst_25 = arith.constant dense<0.000000e+00> : vector<8xf32>
    %89 = vector.multi_reduction <add>, %88, %cst_25 [1] : vector<8x8xf32> to vector<8xf32>
    %90 = vector.shape_cast %89 : vector<8xf32> to vector<8x1xf32>
    %91 = tpu.reciprocal %90 {approx = true} : vector<8x1xf32> -> vector<8x1xf32>
    %92 = vector.broadcast %91 : vector<8x1xf32> to vector<8x8xf32>
    %93 = arith.mulf %88, %92 : vector<8x8xf32>
    %cst_26 = arith.constant dense<0.000000e+00> : vector<8x8xf32>
    %94 = tpu.matmul %93, %82, %cst_26 {dimension_numbers = #tpu.dot_dimension_numbers<[1], [0], [0], [1], [0, 0, 1, 1], [], []>} : vector<8x8xf32>, vector<8x8xf32>, vector<8x8xf32> -> vector<8x8xf32>
    %95 = vector.extract_strided_slice %77 {offsets = [0, 8], sizes = [8, 8], strides = [1, 1]} : vector<8x32xf32> to vector<8x8xf32>
    %96 = vector.extract_strided_slice %78 {offsets = [0, 8], sizes = [8, 8], strides = [1, 1]} : vector<8x32xf32> to vector<8x8xf32>
    %97 = vector.extract_strided_slice %79 {offsets = [0, 8], sizes = [8, 8], strides = [1, 1]} : vector<8x32xf32> to vector<8x8xf32>
    %cst_27 = arith.constant dense<0.000000e+00> : vector<8x8xf32>
    %98 = tpu.matmul %95, %96, %cst_27 {dimension_numbers = #tpu.dot_dimension_numbers<[1], [1], [0], [0], [0, 0, 1, 0], [], []>} : vector<8x8xf32>, vector<8x8xf32>, vector<8x8xf32> -> vector<8x8xf32>
    %cst_28 = arith.constant dense<0xFF800000> : vector<8xf32>
    %99 = vector.multi_reduction <maximumf>, %98, %cst_28 [1] : vector<8x8xf32> to vector<8xf32>
    %100 = vector.shape_cast %99 : vector<8xf32> to vector<8x1xf32>
    %101 = vector.broadcast %100 : vector<8x1xf32> to vector<8x8xf32>
    %102 = arith.subf %98, %101 : vector<8x8xf32>
    %103 = math.exp %102 : vector<8x8xf32>
    %cst_29 = arith.constant dense<0.000000e+00> : vector<8xf32>
    %104 = vector.multi_reduction <add>, %103, %cst_29 [1] : vector<8x8xf32> to vector<8xf32>
    %105 = vector.shape_cast %104 : vector<8xf32> to vector<8x1xf32>
    %106 = tpu.reciprocal %105 {approx = true} : vector<8x1xf32> -> vector<8x1xf32>
    %107 = vector.broadcast %106 : vector<8x1xf32> to vector<8x8xf32>
    %108 = arith.mulf %103, %107 : vector<8x8xf32>
    %cst_30 = arith.constant dense<0.000000e+00> : vector<8x8xf32>
    %109 = tpu.matmul %108, %97, %cst_30 {dimension_numbers = #tpu.dot_dimension_numbers<[1], [0], [0], [1], [0, 0, 1, 1], [], []>} : vector<8x8xf32>, vector<8x8xf32>, vector<8x8xf32> -> vector<8x8xf32>
    %110 = vector.extract_strided_slice %77 {offsets = [0, 16], sizes = [8, 8], strides = [1, 1]} : vector<8x32xf32> to vector<8x8xf32>
    %111 = vector.extract_strided_slice %78 {offsets = [0, 16], sizes = [8, 8], strides = [1, 1]} : vector<8x32xf32> to vector<8x8xf32>
    %112 = vector.extract_strided_slice %79 {offsets = [0, 16], sizes = [8, 8], strides = [1, 1]} : vector<8x32xf32> to vector<8x8xf32>
    %cst_31 = arith.constant dense<0.000000e+00> : vector<8x8xf32>
    %113 = tpu.matmul %110, %111, %cst_31 {dimension_numbers = #tpu.dot_dimension_numbers<[1], [1], [0], [0], [0, 0, 1, 0], [], []>} : vector<8x8xf32>, vector<8x8xf32>, vector<8x8xf32> -> vector<8x8xf32>
    %cst_32 = arith.constant dense<0xFF800000> : vector<8xf32>
    %114 = vector.multi_reduction <maximumf>, %113, %cst_32 [1] : vector<8x8xf32> to vector<8xf32>
    %115 = vector.shape_cast %114 : vector<8xf32> to vector<8x1xf32>
    %116 = vector.broadcast %115 : vector<8x1xf32> to vector<8x8xf32>
    %117 = arith.subf %113, %116 : vector<8x8xf32>
    %118 = math.exp %117 : vector<8x8xf32>
    %cst_33 = arith.constant dense<0.000000e+00> : vector<8xf32>
    %119 = vector.multi_reduction <add>, %118, %cst_33 [1] : vector<8x8xf32> to vector<8xf32>
    %120 = vector.shape_cast %119 : vector<8xf32> to vector<8x1xf32>
    %121 = tpu.reciprocal %120 {approx = true} : vector<8x1xf32> -> vector<8x1xf32>
    %122 = vector.broadcast %121 : vector<8x1xf32> to vector<8x8xf32>
    %123 = arith.mulf %118, %122 : vector<8x8xf32>
    %cst_34 = arith.constant dense<0.000000e+00> : vector<8x8xf32>
    %124 = tpu.matmul %123, %112, %cst_34 {dimension_numbers = #tpu.dot_dimension_numbers<[1], [0], [0], [1], [0, 0, 1, 1], [], []>} : vector<8x8xf32>, vector<8x8xf32>, vector<8x8xf32> -> vector<8x8xf32>
    %125 = vector.extract_strided_slice %77 {offsets = [0, 24], sizes = [8, 8], strides = [1, 1]} : vector<8x32xf32> to vector<8x8xf32>
    %126 = vector.extract_strided_slice %78 {offsets = [0, 24], sizes = [8, 8], strides = [1, 1]} : vector<8x32xf32> to vector<8x8xf32>
    %127 = vector.extract_strided_slice %79 {offsets = [0, 24], sizes = [8, 8], strides = [1, 1]} : vector<8x32xf32> to vector<8x8xf32>
    %cst_35 = arith.constant dense<0.000000e+00> : vector<8x8xf32>
    %128 = tpu.matmul %125, %126, %cst_35 {dimension_numbers = #tpu.dot_dimension_numbers<[1], [1], [0], [0], [0, 0, 1, 0], [], []>} : vector<8x8xf32>, vector<8x8xf32>, vector<8x8xf32> -> vector<8x8xf32>
    %cst_36 = arith.constant dense<0xFF800000> : vector<8xf32>
    %129 = vector.multi_reduction <maximumf>, %128, %cst_36 [1] : vector<8x8xf32> to vector<8xf32>
    %130 = vector.shape_cast %129 : vector<8xf32> to vector<8x1xf32>
    %131 = vector.broadcast %130 : vector<8x1xf32> to vector<8x8xf32>
    %132 = arith.subf %128, %131 : vector<8x8xf32>
    %133 = math.exp %132 : vector<8x8xf32>
    %cst_37 = arith.constant dense<0.000000e+00> : vector<8xf32>
    %134 = vector.multi_reduction <add>, %133, %cst_37 [1] : vector<8x8xf32> to vector<8xf32>
    %135 = vector.shape_cast %134 : vector<8xf32> to vector<8x1xf32>
    %136 = tpu.reciprocal %135 {approx = true} : vector<8x1xf32> -> vector<8x1xf32>
    %137 = vector.broadcast %136 : vector<8x1xf32> to vector<8x8xf32>
    %138 = arith.mulf %133, %137 : vector<8x8xf32>
    %cst_38 = arith.constant dense<0.000000e+00> : vector<8x8xf32>
    %139 = tpu.matmul %138, %127, %cst_38 {dimension_numbers = #tpu.dot_dimension_numbers<[1], [0], [0], [1], [0, 0, 1, 1], [], []>} : vector<8x8xf32>, vector<8x8xf32>, vector<8x8xf32> -> vector<8x8xf32>
    %140 = tpu.concatenate %94, %109, %124, %139 in 1 : vector<8x8xf32>, vector<8x8xf32>, vector<8x8xf32>, vector<8x8xf32> -> vector<8x32xf32>
    %141 = tpu.concatenate %74, %140 in 0 : vector<8x32xf32>, vector<8x32xf32> -> vector<16x32xf32>
    %c0_39 = arith.constant 0 : index
    %c0_40 = arith.constant 0 : index
    %142 = vector.load %arg3[%c0_39, %c0_40] : memref<32x32xf32, #tpu.memory_space<vmem>>, vector<32x32xf32>
    %c0_41 = arith.constant 0 : index
    %c0_42 = arith.constant 0 : index
    %143 = vector.load %arg4[%c0_41, %c0_42] : memref<1x32xf32, #tpu.memory_space<vmem>>, vector<1x32xf32>
    %cst_43 = arith.constant dense<0.000000e+00> : vector<16x32xf32>
    %144 = tpu.matmul %141, %142, %cst_43 {dimension_numbers = #tpu.dot_dimension_numbers<[1], [0], [0], [1], [0, 0, 1, 1], [], []>} : vector<16x32xf32>, vector<32x32xf32>, vector<16x32xf32> -> vector<16x32xf32>
    %145 = vector.broadcast %143 : vector<1x32xf32> to vector<16x32xf32>
    %146 = arith.addf %144, %145 : vector<16x32xf32>
    %147 = arith.addf %0, %146 : vector<16x32xf32>
    %c0_44 = arith.constant 0 : index
    %c0_45 = arith.constant 0 : index
    %148 = vector.load %arg5[%c0_44, %c0_45] : memref<1x32xf32, #tpu.memory_space<vmem>>, vector<1x32xf32>
    %c0_46 = arith.constant 0 : index
    %c0_47 = arith.constant 0 : index
    %149 = vector.load %arg6[%c0_46, %c0_47] : memref<1x32xf32, #tpu.memory_space<vmem>>, vector<1x32xf32>
    %cst_48 = arith.constant dense<0.000000e+00> : vector<16xf32>
    %150 = vector.multi_reduction <add>, %147, %cst_48 [1] : vector<16x32xf32> to vector<16xf32>
    %151 = vector.shape_cast %150 : vector<16xf32> to vector<16x1xf32>
    %cst_49 = arith.constant 3.200000e+01 : f32
    %152 = vector.broadcast %cst_49 : f32 to vector<16x1xf32>
    %153 = arith.divf %151, %152 : vector<16x1xf32>
    %154 = vector.broadcast %153 : vector<16x1xf32> to vector<16x32xf32>
    %155 = arith.subf %147, %154 : vector<16x32xf32>
    %156 = arith.mulf %155, %155 : vector<16x32xf32>
    %cst_50 = arith.constant dense<0.000000e+00> : vector<16xf32>
    %157 = vector.multi_reduction <add>, %156, %cst_50 [1] : vector<16x32xf32> to vector<16xf32>
    %158 = vector.shape_cast %157 : vector<16xf32> to vector<16x1xf32>
    %cst_51 = arith.constant 3.200000e+01 : f32
    %159 = vector.broadcast %cst_51 : f32 to vector<16x1xf32>
    %160 = arith.divf %158, %159 : vector<16x1xf32>
    %161 = vector.broadcast %153 : vector<16x1xf32> to vector<16x32xf32>
    %162 = arith.subf %147, %161 : vector<16x32xf32>
    %cst_52 = arith.constant 9.99999974E-6 : f32
    %163 = vector.broadcast %cst_52 : f32 to vector<16x1xf32>
    %164 = arith.addf %160, %163 : vector<16x1xf32>
    %165 = math.rsqrt %164 : vector<16x1xf32>
    %166 = vector.broadcast %165 : vector<16x1xf32> to vector<16x32xf32>
    %167 = arith.mulf %162, %166 : vector<16x32xf32>
    %168 = vector.broadcast %148 : vector<1x32xf32> to vector<16x32xf32>
    %169 = arith.mulf %167, %168 : vector<16x32xf32>
    %170 = vector.broadcast %149 : vector<1x32xf32> to vector<16x32xf32>
    %171 = arith.addf %169, %170 : vector<16x32xf32>
    %c0_53 = arith.constant 0 : index
    %c0_54 = arith.constant 0 : index
    %172 = vector.load %arg7[%c0_53, %c0_54] : memref<32x64xf32, #tpu.memory_space<vmem>>, vector<32x64xf32>
    %c0_55 = arith.constant 0 : index
    %c0_56 = arith.constant 0 : index
    %173 = vector.load %arg8[%c0_55, %c0_56] : memref<1x64xf32, #tpu.memory_space<vmem>>, vector<1x64xf32>
    %cst_57 = arith.constant dense<0.000000e+00> : vector<16x64xf32>
    %174 = tpu.matmul %171, %172, %cst_57 {dimension_numbers = #tpu.dot_dimension_numbers<[1], [0], [0], [1], [0, 0, 1, 1], [], []>} : vector<16x32xf32>, vector<32x64xf32>, vector<16x64xf32> -> vector<16x64xf32>
    %175 = vector.broadcast %173 : vector<1x64xf32> to vector<16x64xf32>
    %176 = arith.addf %174, %175 : vector<16x64xf32>
    %cst_58 = arith.constant 0.000000e+00 : f32
    %177 = vector.broadcast %cst_58 : f32 to vector<16x64xf32>
    %178 = arith.maximumf %176, %177 : vector<16x64xf32>
    %c0_59 = arith.constant 0 : index
    %c0_60 = arith.constant 0 : index
    %179 = vector.load %arg9[%c0_59, %c0_60] : memref<64x32xf32, #tpu.memory_space<vmem>>, vector<64x32xf32>
    %c0_61 = arith.constant 0 : index
    %c0_62 = arith.constant 0 : index
    %180 = vector.load %arg10[%c0_61, %c0_62] : memref<1x32xf32, #tpu.memory_space<vmem>>, vector<1x32xf32>
    %cst_63 = arith.constant dense<0.000000e+00> : vector<16x32xf32>
    %181 = tpu.matmul %178, %179, %cst_63 {dimension_numbers = #tpu.dot_dimension_numbers<[1], [0], [0], [1], [0, 0, 1, 1], [], []>} : vector<16x64xf32>, vector<64x32xf32>, vector<16x32xf32> -> vector<16x32xf32>
    %182 = vector.broadcast %180 : vector<1x32xf32> to vector<16x32xf32>
    %183 = arith.addf %181, %182 : vector<16x32xf32>
    %184 = arith.addf %171, %183 : vector<16x32xf32>
    %c0_64 = arith.constant 0 : index
    %c0_65 = arith.constant 0 : index
    %185 = vector.load %arg11[%c0_64, %c0_65] : memref<1x32xf32, #tpu.memory_space<vmem>>, vector<1x32xf32>
    %c0_66 = arith.constant 0 : index
    %c0_67 = arith.constant 0 : index
    %186 = vector.load %arg12[%c0_66, %c0_67] : memref<1x32xf32, #tpu.memory_space<vmem>>, vector<1x32xf32>
    %cst_68 = arith.constant dense<0.000000e+00> : vector<16xf32>
    %187 = vector.multi_reduction <add>, %184, %cst_68 [1] : vector<16x32xf32> to vector<16xf32>
    %188 = vector.shape_cast %187 : vector<16xf32> to vector<16x1xf32>
    %cst_69 = arith.constant 3.200000e+01 : f32
    %189 = vector.broadcast %cst_69 : f32 to vector<16x1xf32>
    %190 = arith.divf %188, %189 : vector<16x1xf32>
    %191 = vector.broadcast %190 : vector<16x1xf32> to vector<16x32xf32>
    %192 = arith.subf %184, %191 : vector<16x32xf32>
    %193 = arith.mulf %192, %192 : vector<16x32xf32>
    %cst_70 = arith.constant dense<0.000000e+00> : vector<16xf32>
    %194 = vector.multi_reduction <add>, %193, %cst_70 [1] : vector<16x32xf32> to vector<16xf32>
    %195 = vector.shape_cast %194 : vector<16xf32> to vector<16x1xf32>
    %cst_71 = arith.constant 3.200000e+01 : f32
    %196 = vector.broadcast %cst_71 : f32 to vector<16x1xf32>
    %197 = arith.divf %195, %196 : vector<16x1xf32>
    %198 = vector.broadcast %190 : vector<16x1xf32> to vector<16x32xf32>
    %199 = arith.subf %184, %198 : vector<16x32xf32>
    %cst_72 = arith.constant 9.99999974E-6 : f32
    %200 = vector.broadcast %cst_72 : f32 to vector<16x1xf32>
    %201 = arith.addf %197, %200 : vector<16x1xf32>
    %202 = math.rsqrt %201 : vector<16x1xf32>
    %203 = vector.broadcast %202 : vector<16x1xf32> to vector<16x32xf32>
    %204 = arith.mulf %199, %203 : vector<16x32xf32>
    %205 = vector.broadcast %185 : vector<1x32xf32> to vector<16x32xf32>
    %206 = arith.mulf %204, %205 : vector<16x32xf32>
    %207 = vector.broadcast %186 : vector<1x32xf32> to vector<16x32xf32>
    %208 = arith.addf %206, %207 : vector<16x32xf32>
    %c0_73 = arith.constant 0 : index
    %c0_74 = arith.constant 0 : index
    %209 = vector.load %arg13[%c0_73, %c0_74] : memref<16x32xf32, #tpu.memory_space<vmem>>, vector<16x32xf32>
    tpu.vector_store %arg13[%c0_73, %c0_74], %208 {strides = array<i32>} : memref<16x32xf32, #tpu.memory_space<vmem>>, vector<16x32xf32>,
    return
  }
}

</mosaic_0001>

<bundles_post_ra>
// kernel: llama_model2_forward.8
= control target key start
LH: loop header
LB: loop body
LE: loop exit
PB: predicated region body
PF: predicated region fallthrough
CT: control target
= control target key end

     0   :  { %vm18_vm0 = vcmask 261120   ;;  %s118_s0 = inlined_call_operand.vmem [shape: f32[16,32], index: 0, kind: input, shape index: {}]   ;;  %s119_s1 = inlined_call_operand.vmem [shape: f32[1,32], index: 1, kind: input, shape index: {}]   ;;  %s120_s2 = inlined_call_operand.vmem [shape: f32[1,32], index: 2, kind: input, shape index: {}]   ;;  %s121_s3 = inlined_call_operand.vmem [shape: f32[16,32], index: 3, kind: output, shape index: {}]  }
   0x1   :  { %v14_v0 = vld [vmem:[%s118_s0] sm:$0xff]  ;;  %v15_v1 = vld [vmem:[%s118_s0 + $0x8] sm:$0xff] }
   0x2   :  { %v19_v2 = vsel %vm18_vm0, %v14_v0, 0.0  ;;  %v22_v3 = vsel %vm18_vm0, %v15_v1, 0.0  ;;  %v68_v21 = vld [vmem:[%s119_s1] ss:$0 sm:$0xff] }
   0x3   :  { %20 = vadd.xlane.f32.xlu0 %v19_v2  ;;  %v69_v23 = vld [vmem:[%s120_s2] ss:$0 sm:$0xff] }
   0x7   :  { %23 = vadd.xlane.f32.xlu0 %v22_v3 }
  0x90   :  { %v21_v4 = vpop.xlane.xlu0 %20 }
  0x91   :  { %v26_v5 = vmul.f32 0.03125, %v21_v4 }
  0x93   :  { %v28_v6 = vsub.f32 %v14_v0, %v26_v5 }
  0x94   :  { %v24_v7 = vpop.xlane.xlu0 %23 }
  0x95   :  { %v27_v8 = vmul.f32 0.03125, %v24_v7  ;;  %v30_v9 = vmul.f32 %v28_v6, %v28_v6 }
  0x97   :  { %v29_v10 = vsub.f32 %v15_v1, %v27_v8  ;;  %v32_v11 = vsel %vm18_vm0, %v30_v9, 0.0 }
  0x98   :  { %33 = vadd.xlane.f32.xlu1 %v32_v11 }
  0x99   :  { %v31_v12 = vmul.f32 %v29_v10, %v29_v10 }
  0x9b   :  { %v35_v13 = vsel %vm18_vm0, %v31_v12, 0.0 }
  0x9c   :  { %36 = vadd.xlane.f32.xlu1 %v35_v13 }
 0x125   :  { %v34_v14 = vpop.xlane.xlu1 %33 }
 0x126   :  { %v38_v15 = vmul.f32 0.03125, %v34_v14 }
 0x128   :  { %v40_v16 = vadd.f32 1e-05, %v38_v15 }
 0x129   :  { %v37_v17 = vpop.xlane.xlu1 %36 }
 0x12a   :  { %70 = vrsqrt.f32 %v40_v16  ;;  %v39_v18 = vmul.f32 0.03125, %v37_v17 }
 0x12c   :  { %v41_v19 = vadd.f32 1e-05, %v39_v18 }
 0x12e   :  { %72 = vrsqrt.f32 %v41_v19 }
 0x134   :  { %v71_v20 = vpop.eup %70 }
 0x135   :  { %v44_v22 = vmul.f32 %v71_v20, %v28_v6 }
 0x137   :  { %v52_v24 = vmul.f32 %v68_v21, %v44_v22 }
 0x138   :  { %v73_v25 = vpop.eup %72 }
 0x139   :  { %v60_v26 = vadd.f32 %v69_v23, %v52_v24  ;;  %v45_v27 = vmul.f32 %v73_v25, %v29_v10 }
 0x13b   :  { %62 = vst.msk [vmem:[%s121_s3] sm:$0xff] %vm18_vm0, %v60_v26  ;;  %v53_v28 = vmul.f32 %v68_v21, %v45_v27 }
 0x13d   :  { %v61_v29 = vadd.f32 %v69_v23, %v53_v28 }
 0x13f   :  { %63 = vst.msk [vmem:[%s121_s3 + $0x8] sm:$0xff] %vm18_vm0, %v61_v29 }

// kernel: llama_model2_forward.11
= control target key start
LH: loop header
LB: loop body
LE: loop exit
PB: predicated region body
PF: predicated region fallthrough
CT: control target
= control target key end

     0   :  { %vm24_vm0 = vcmask 261120   ;;  %vm160_vm1 = vcmask 523264   ;;  %s270_s0 = inlined_call_operand.vmem [shape: f32[16,32], index: 0, kind: input, shape index: {}]   ;;  %s271_s3 = inlined_call_operand.vmem [shape: f32[32,64], index: 3, kind: input, shape index: {}]   ;;  %s272_s1 = inlined_call_operand.vmem [shape: f32[1,32], index: 1, kind: input, shape index: {}]   ;;  %s273_s2 = inlined_call_operand.vmem [shape: f32[1,32], index: 2, kind: input, shape index: {}]   ;;  %s274_s4 = inlined_call_operand.vmem [shape: f32[1,64], index: 4, kind: input, shape index: {}]   ;;  %s275_s5 = inlined_call_operand.vmem [shape: f32[16,64], index: 5, kind: output, shape index: {}]  }
   0x1   :  { %v20_v0 = vld [vmem:[%s270_s0] sm:$0xff]  ;;  %v21_v1 = vld [vmem:[%s270_s0 + $0x8] sm:$0xff]  ;;  %v70_v16 = vld [vmem:[%s271_s3 + $0x10] sm:$0xff] }
   0x2   :  { %v25_v2 = vsel %vm24_vm0, %v20_v0, 0.0  ;;  %v28_v3 = vsel %vm24_vm0, %v21_v1, 0.0  ;;  %v68_v14 = vld [vmem:[%s271_s3] sm:$0xff]  ;;  %v69_v15 = vld [vmem:[%s271_s3 + $0x8] sm:$0xff]  ;;  %v71_v18 = vld [vmem:[%s271_s3 + $0x18] sm:$0xff] }
   0x3   :  { %26 = vadd.xlane.f32.xlu0 %v25_v2  ;;  %v189_v17 = vpack.c.bf16 %v69_v15, %v68_v14  ;;  %v193_v19 = vpack.c.bf16 %v71_v18, %v70_v16  ;;  %v167_v27 = vld [vmem:[%s272_s1] ss:$0 sm:$0xff] }
   0x4   :  { %v168_v29 = vld [vmem:[%s273_s2] ss:$0 sm:$0xff] }
   0x5   :  { %190 = vmatprep.subr.bf16.mxu0 %v189_v17  ;;  %v169_v36 = vld [vmem:[%s274_s4] ss:$0 sm:$0xff] }
   0x6   :  { %192 = vmatpush3.bf16.msra.mxu0 %v189_v17 }
   0x7   :  { %29 = vadd.xlane.f32.xlu0 %v28_v3  ;;  %194 = vmatprep.subr.bf16.mxu0 %v193_v19 }
   0xa   :  { %196 = vmatpush3.bf16.msra.mxu0 %v193_v19 }
  0x90   :  { %v27_v4 = vpop.xlane.xlu0 %26 }
  0x91   :  { %v32_v5 = vmul.f32 0.03125, %v27_v4 }
  0x93   :  { %v34_v6 = vsub.f32 %v20_v0, %v32_v5 }
  0x94   :  { %v30_v7 = vpop.xlane.xlu0 %29 }
  0x95   :  { %v33_v8 = vmul.f32 0.03125, %v30_v7  ;;  %v36_v9 = vmul.f32 %v34_v6, %v34_v6 }
  0x97   :  { %v35_v10 = vsub.f32 %v21_v1, %v33_v8  ;;  %v38_v11 = vsel %vm24_vm0, %v36_v9, 0.0 }
  0x98   :  { %39 = vadd.xlane.f32.xlu1 %v38_v11 }
  0x99   :  { %v37_v12 = vmul.f32 %v35_v10, %v35_v10 }
  0x9b   :  { %v41_v13 = vsel %vm24_vm0, %v37_v12, 0.0 }
  0x9c   :  { %42 = vadd.xlane.f32.xlu1 %v41_v13 }
 0x125   :  { %v40_v20 = vpop.xlane.xlu1 %39 }
 0x126   :  { %v44_v21 = vmul.f32 0.03125, %v40_v20 }
 0x128   :  { %v46_v22 = vadd.f32 1e-05, %v44_v21 }
 0x129   :  { %v43_v23 = vpop.xlane.xlu1 %42 }
 0x12a   :  { %197 = vrsqrt.f32 %v46_v22  ;;  %v45_v24 = vmul.f32 0.03125, %v43_v23 }
 0x12c   :  { %v47_v25 = vadd.f32 1e-05, %v45_v24 }
 0x12e   :  { %199 = vrsqrt.f32 %v47_v25 }
 0x134   :  { %v198_v26 = vpop.eup %197 }
 0x135   :  { %v50_v28 = vmul.f32 %v198_v26, %v34_v6 }
 0x137   :  { %v58_v30 = vmul.f32 %v167_v27, %v50_v28 }
 0x138   :  { %v200_v31 = vpop.eup %199 }
 0x139   :  { %v51_v32 = vmul.f32 %v200_v31, %v35_v10  ;;  %v66_v33 = vadd.f32 %v168_v29, %v58_v30 }
 0x13b   :  { %v59_v34 = vmul.f32 %v167_v27, %v51_v32  ;;  %186 = vmatprep.mubr.msk.f32.mxu0 %vm24_vm0, %v66_v33 }
 0x13d   :  { %v67_v35 = vadd.f32 %v168_v29, %v59_v34 }
 0x13f   :  { %187 = vmatmul.mubr.msk.f32.vlgmr.msra.gmra.mrb[0].mxu0 %vm24_vm0, %v67_v35 }
 0x212   :  { %v188_v37 = vpop.f32.mrb[0].mxu0 }
 0x213   :  { %v157_v38 = vadd.f32 %v188_v37, %v169_v36  ;;  %v151_v39 = vpop.f32.mrb[1].mxu0 }
 0x214   :  { %v152_v40 = vadd.f32 %v169_v36, %v151_v39 }
 0x215   :  { %162 = vst.msk [vmem:[%s275_s5 + $0x8] sm:$0xff] %vm160_vm1, %v157_v38 }
 0x216   :  { %161 = vst.msk [vmem:[%s275_s5] sm:$0xff] %vm160_vm1, %v152_v40 }

// kernel: llama_model2_forward.6
= control target key start
LH: loop header
LB: loop body
LE: loop exit
PB: predicated region body
PF: predicated region fallthrough
CT: control target
= control target key end

     0   :  { %vm57_vm0 = vcmask 261120   ;;  %v2204_v8 = vmov 0.0   ;;  %vm2205_vm1 = vmmov 0   ;;  %s2207_s21 = smov 120   ;;  %s2208_s22 = smov 88   ;;  %vm143_vm2 = vcmask 64512   ;;  %s2549_s1 = inlined_call_operand.vmem [shape: f32[32,96], index: 1, kind: input, shape index: {}]   ;;  %s2550_s0 = inlined_call_operand.vmem [shape: f32[16,32], index: 0, kind: input, shape index: {}]   ;;  %s2551_s2 = inlined_call_operand.vmem [shape: f32[1,96], index: 2, kind: input, shape index: {}]   ;;  %s2552_s3 = inlined_call_operand.vmem [shape: f32[32,32], index: 3, kind: input, shape index: {}]   ;;  %s2553_s4 = inlined_call_operand.vmem [shape: f32[1,32], index: 4, kind: input, shape index: {}]   ;;  %s2554_s7 = inlined_call_operand.vmem [shape: f32[32,64], index: 7, kind: input, shape index: {}]   ;;  %s2555_s9 = inlined_call_operand.vmem [shape: f32[64,32], index: 9, kind: input, shape index: {}]   ;;  %s2556_s5 = inlined_call_operand.vmem [shape: f32[1,32], index: 5, kind: input, shape index: {}]   ;;  %s2557_s6 = inlined_call_operand.vmem [shape: f32[1,32], index: 6, kind: input, shape index: {}]   ;;  %s2558_s8 = inlined_call_operand.vmem [shape: f32[1,64], index: 8, kind: input, shape index: {}]   ;;  %s2559_s10 = inlined_call_operand.vmem [shape: f32[1,32], index: 10, kind: input, shape index: {}]   ;;  %s2560_s11 = inlined_call_operand.vmem [shape: f32[1,32], index: 11, kind: input, shape index: {}]   ;;  %s2561_s12 = inlined_call_operand.vmem [shape: f32[1,32], index: 12, kind: input, shape index: {}]   ;;  %s2562_s13 = inlined_call_operand.vmem [shape: f32[16,32], index: 13, kind: output, shape index: {}]  }
   0x1   :  { %v46_v0 = vld [vmem:[%s2549_s1] sm:$0xff]  ;;  %v47_v1 = vld [vmem:[%s2549_s1 + $0x8] sm:$0xff]  ;;  %v48_v2 = vld [vmem:[%s2549_s1 + $0x10] sm:$0xff]  ;;  %1997 = vmatprep.subr.mxu0 %v2204_v8  ;;  %1999 = vmatprep.mubr.msk.f32.mxu0 %vm2205_vm1, %v2204_v8  ;;  %s2209_s23 = smov 80   ;;  %s2210_s24 = smov 112   ;;  %vm814_vm3 = vcmask 130048  }
   0x2   :  { %v2108_v3 = vpack.c.bf16 %v47_v1, %v46_v0  ;;  %v49_v4 = vld [vmem:[%s2549_s1 + $0x18] sm:$0xff]  ;;  %v2305_v5 = vld [vmem:[%s2550_s0] sm:$0xff]  ;;  %v2312_v7 = vld [vmem:[%s2550_s0 + $0x8] sm:$0xff]  ;;  %s2206_s0 = smov 96   ;;  %s2212_s25 = smov 104   ;;  %vm816_vm4 = vcmask 195584  }
   0x3   :  { %v2112_v6 = vpack.c.bf16 %v49_v4, %v48_v2  ;;  %1984 = vmatprep.mubr.msk.f32.mxu1 %vm57_vm0, %v2305_v5  ;;  %v1876_v9 = vld [vmem:[%s2551_s2] ss:$0 sm:$0xff]  ;;  %s2211_s2 = smov 72   ;;  %s2213_s26 = smov 64   ;;  %vm1742_vm5 = vcmask 523264  }
   0x4   :  { %2109 = vmatprep.subr.bf16.mxu1 %v2108_v3  ;;  %s2214_s27 = smov 56   ;;  %s2215_s28 = smov 40  }
   0x5   :  { %2111 = vmatpush3.bf16.msra.mxu1 %v2108_v3  ;;  %s2216_s29 = smov 48   ;;  %s2217_s30 = smov 8  }
   0x6   :  { %2113 = vmatprep.subr.bf16.mxu1 %v2112_v6  ;;  %s2218_s14 = smov 16   ;;  %s2219_s15 = smov 24  }
   0x9   :  { %2115 = vmatpush3.bf16.msra.mxu1 %v2112_v6 }
   0xa   :  { %1987 = vmatprep.subr.mxu1 %v2204_v8 }
   0xc   :  { %1985 = vmatmul.mubr.msk.f32.vlgmr.msra.gmra.mrb[0].mxu1 %vm57_vm0, %v2312_v7 }
   0xd   :  { %1989 = vmatprep.mubr.msk.f32.mxu1 %vm2205_vm1, %v2204_v8 }
  0xdf   :  { %v1986_v10 = vpop.f32.mrb[0].mxu1 }
  0xe0   :  { %v130_v11 = vpop.f32.mrb[1].mxu1  ;;  %v2332_v14 = vadd.f32 %v1986_v10, %v1876_v9 }
  0xe1   :  { %v2325_v12 = vadd.f32 %v1876_v9, %v130_v11 }
  0xe2   :  { %v818_v15 = vmul.f32 0.35355338, %v2332_v14 }
  0xe3   :  { %141 = vrot.lane.b32.xlu0 %v2325_v12, %s2206_s0  ;;  %v139_v13 = vmul.f32 0.35355338, %v2325_v12 }
  0xe5   :  { %306 = vrot.lane.b32.xlu1 %v139_v13, %s2207_s21 }
  0xe7   :  { %308 = vrot.lane.b32.xlu0 %v2325_v12, %s2208_s22 }
  0xe9   :  { %473 = vrot.lane.b32.xlu1 %v2325_v12, %s2209_s23 }
  0xeb   :  { %471 = vrot.lane.b32.xlu0 %v139_v13, %s2210_s24 }
  0xed   :  { %638 = vrot.lane.b32.xlu1 %v2325_v12, %s2211_s2 }
  0xef   :  { %636 = vrot.lane.b32.xlu0 %v139_v13, %s2212_s25 }
  0xf1   :  { %820 = vrot.lane.b32.xlu1 %v2332_v14, %s2206_s0 }
  0xf3   :  { %986 = vrot.lane.b32.xlu0 %v2332_v14, %s2208_s22 }
  0xf5   :  { %984 = vrot.lane.b32.xlu1 %v818_v15, %s2207_s21 }
  0xf7   :  { %1151 = vrot.lane.b32.xlu0 %v2332_v14, %s2209_s23 }
  0xf9   :  { %1149 = vrot.lane.b32.xlu1 %v818_v15, %s2210_s24 }
  0xfb   :  { %1316 = vrot.lane.b32.xlu0 %v2332_v14, %s2211_s2 }
  0xfd   :  { %1314 = vrot.lane.b32.xlu1 %v818_v15, %s2212_s25 }
  0xff   :  { %230 = vrot.lane.b32.xlu0 %v2325_v12, %s2213_s26 }
 0x101   :  { %395 = vrot.lane.b32.xlu1 %v2325_v12, %s2214_s27 }
 0x155   :  { %v142_v16 = vpop.permute.xlu0 %141 }
 0x156   :  { %1988 = vmatpush3.xpose.msk.msra.mxu1 %vm143_vm2, %v142_v16 }
 0x157   :  { %v307_v17 = vpop.permute.xlu1 %306  ;;  %1992 = vmatprep.subr.mxu1 %v2204_v8 }
 0x159   :  { %v309_v18 = vpop.permute.xlu0 %308  ;;  %1990 = vmatmul.mubr.msk.f32.vlgmr.msra.gmra.mrb[2].mxu1 %vm143_vm2, %v139_v13 }
 0x15a   :  { %1998 = vmatpush3.xpose.msk.msra.mxu0 %vm143_vm2, %v309_v18  ;;  %1994 = vmatprep.mubr.msk.f32.mxu1 %vm2205_vm1, %v2204_v8 }
 0x15b   :  { %v474_v19 = vpop.permute.xlu1 %473  ;;  %2007 = vmatprep.subr.mxu0 %v2204_v8 }
 0x15d   :  { %v472_v20 = vpop.permute.xlu0 %471  ;;  %2000 = vmatmul.mubr.msk.f32.vlgmr.msra.gmra.mrb[0].mxu0 %vm143_vm2, %v307_v17 }
 0x15e   :  { %2008 = vmatpush3.xpose.msk.msra.mxu0 %vm143_vm2, %v474_v19  ;;  %2009 = vmatprep.mubr.msk.f32.mxu0 %vm2205_vm1, %v2204_v8 }
 0x15f   :  { %v639_v21 = vpop.permute.xlu1 %638  ;;  %2017 = vmatprep.subr.mxu0 %v2204_v8 }
 0x161   :  { %v637_v22 = vpop.permute.xlu0 %636  ;;  %2010 = vmatmul.mubr.msk.f32.vlgmr.msra.gmra.mrb[2].mxu0 %vm143_vm2, %v472_v20 }
 0x162   :  { %2018 = vmatpush3.xpose.msk.msra.mxu0 %vm143_vm2, %v639_v21  ;;  %2019 = vmatprep.mubr.msk.f32.mxu0 %vm2205_vm1, %v2204_v8 }
 0x163   :  { %v821_v23 = vpop.permute.xlu1 %820  ;;  %2027 = vmatprep.subr.mxu0 %v2204_v8 }
 0x165   :  { %v987_v24 = vpop.permute.xlu0 %986  ;;  %2020 = vmatmul.mubr.msk.f32.vlgmr.msra.gmra.mrb[4].mxu0 %vm143_vm2, %v637_v22 }
 0x166   :  { %2028 = vmatpush3.xpose.msk.msra.mxu0 %vm143_vm2, %v821_v23  ;;  %2029 = vmatprep.mubr.msk.f32.mxu0 %vm2205_vm1, %v2204_v8 }
 0x167   :  { %2037 = vmatprep.subr.mxu0 %v2204_v8  ;;  %v985_v25 = vpop.permute.xlu1 %984 }
 0x169   :  { %v1152_v26 = vpop.permute.xlu0 %1151  ;;  %2030 = vmatmul.mubr.msk.f32.vlgmr.msra.gmra.mrb[6].mxu0 %vm143_vm2, %v818_v15 }
 0x16a   :  { %2038 = vmatpush3.xpose.msk.msra.mxu0 %vm143_vm2, %v987_v24  ;;  %2039 = vmatprep.mubr.msk.f32.mxu0 %vm2205_vm1, %v2204_v8 }
 0x16b   :  { %2047 = vmatprep.subr.mxu0 %v2204_v8  ;;  %v1150_v28 = vpop.permute.xlu1 %1149 }
 0x16d   :  { %v1317_v27 = vpop.permute.xlu0 %1316  ;;  %2040 = vmatmul.mubr.msk.f32.vlgmr.msra.gmra.mrb[8].mxu0 %vm143_vm2, %v985_v25 }
 0x16e   :  { %2048 = vmatpush3.xpose.msk.msra.mxu0 %vm143_vm2, %v1152_v26  ;;  %2049 = vmatprep.mubr.msk.f32.mxu0 %vm2205_vm1, %v2204_v8 }
 0x16f   :  { %2057 = vmatprep.subr.mxu0 %v2204_v8  ;;  %v1315_v30 = vpop.permute.xlu1 %1314 }
 0x171   :  { %v231_v29 = vpop.permute.xlu0 %230  ;;  %2050 = vmatmul.mubr.msk.f32.vlgmr.msra.gmra.mrb[10].mxu0 %vm143_vm2, %v1150_v28 }
 0x172   :  { %1993 = vmatpush3.msra.mxu1 %v231_v29  ;;  %2058 = vmatpush3.xpose.msk.msra.mxu0 %vm143_vm2, %v1317_v27 }
 0x173   :  { %2059 = vmatprep.mubr.msk.f32.mxu0 %vm2205_vm1, %v2204_v8  ;;  %2002 = vmatprep.subr.mxu1 %v2204_v8  ;;  %v2393_v55 = vpop.permute.xlu1 %395 }
 0x175   :  { %2060 = vmatmul.mubr.msk.f32.vlgmr.msra.gmra.mrb[12].mxu0 %vm143_vm2, %v1315_v30 }
 0x22c   :  { %v215_v31 = vpop.f32.mrb[2].mxu1 }
 0x22d   :  { %v1991_v32 = vpop.f32.mrb[3].mxu1  ;;  %v219_v33 = vsel %vm143_vm2, %v215_v31, -inf }
 0x22e   :  { %220 = vmax.xlane.f32.xlu0 %v219_v33 }
 0x230   :  { %v380_v34 = vpop.f32.mrb[0].mxu0 }
 0x231   :  { %v2001_v35 = vpop.f32.mrb[1].mxu0  ;;  %v384_v36 = vsel %vm143_vm2, %v380_v34, -inf }
 0x232   :  { %385 = vmax.xlane.f32.xlu1 %v384_v36 }
 0x234   :  { %v545_v37 = vpop.f32.mrb[2].mxu0 }
 0x235   :  { %v2011_v38 = vpop.f32.mrb[3].mxu0  ;;  %v549_v39 = vsel %vm143_vm2, %v545_v37, -inf }
 0x236   :  { %550 = vmax.xlane.f32.xlu0 %v549_v39 }
 0x238   :  { %v710_v40 = vpop.f32.mrb[4].mxu0 }
 0x239   :  { %v2021_v41 = vpop.f32.mrb[5].mxu0  ;;  %v714_v42 = vsel %vm143_vm2, %v710_v40, -inf }
 0x23a   :  { %715 = vmax.xlane.f32.xlu0 %v714_v42 }
 0x23c   :  { %v893_v43 = vpop.f32.mrb[6].mxu0 }
 0x23d   :  { %v2031_v44 = vpop.f32.mrb[7].mxu0  ;;  %v897_v45 = vsel %vm143_vm2, %v893_v43, -inf }
 0x23e   :  { %898 = vmax.xlane.f32.xlu1 %v897_v45 }
 0x240   :  { %v1058_v46 = vpop.f32.mrb[8].mxu0 }
 0x241   :  { %v2041_v47 = vpop.f32.mrb[9].mxu0  ;;  %v1062_v48 = vsel %vm143_vm2, %v1058_v46, -inf }
 0x242   :  { %1063 = vmax.xlane.f32.xlu0 %v1062_v48 }
 0x244   :  { %v1223_v49 = vpop.f32.mrb[10].mxu0 }
 0x245   :  { %v2051_v50 = vpop.f32.mrb[11].mxu0  ;;  %v1227_v51 = vsel %vm143_vm2, %v1223_v49, -inf }
 0x246   :  { %1228 = vmax.xlane.f32.xlu1 %v1227_v51 }
 0x248   :  { %v1388_v52 = vpop.f32.mrb[12].mxu0 }
 0x249   :  { %v2061_v53 = vpop.f32.mrb[13].mxu0  ;;  %v1392_v54 = vsel %vm143_vm2, %v1388_v52, -inf }
 0x24a   :  { %1393 = vmax.xlane.f32.xlu0 %v1392_v54 }
 0x257   :  { %725 = vrot.lane.b32.xlu1 %v2325_v12, %s2215_s28 }
 0x260   :  { %560 = vrot.lane.b32.xlu0 %v2325_v12, %s2216_s29 }
 0x2bb   :  { %v221_v56 = vpop.xlane.xlu0 %220 }
 0x2bc   :  { %v222_v57 = vsub.f32 %v215_v31, %v221_v56 }
 0x2be   :  { %v223_v58 = vmul.f32 1.442695, %v222_v57 }
 0x2bf   :  { %v386_v59 = vpop.xlane.xlu1 %385 }
 0x2c0   :  { %2164 = vpow2.f32 %v223_v58  ;;  %v387_v60 = vsub.f32 %v380_v34, %v386_v59 }
 0x2c2   :  { %v388_v61 = vmul.f32 1.442695, %v387_v60 }
 0x2c3   :  { %v551_v62 = vpop.xlane.xlu0 %550 }
 0x2c4   :  { %2166 = vpow2.f32 %v388_v61  ;;  %v552_v63 = vsub.f32 %v545_v37, %v551_v62 }
 0x2c6   :  { %v553_v0 = vmul.f32 1.442695, %v552_v63 }
 0x2c7   :  { %v716_v1 = vpop.xlane.xlu0 %715 }
 0x2c8   :  { %2168 = vpow2.f32 %v553_v0  ;;  %v717_v2 = vsub.f32 %v710_v40, %v716_v1 }
 0x2ca   :  { %v2165_v3 = vpop.eup %2164  ;;  %v718_v4 = vmul.f32 1.442695, %v717_v2 }
 0x2cb   :  { %v225_v6 = vsel %vm143_vm2, %v2165_v3, 0.0  ;;  %v899_v16 = vpop.xlane.xlu1 %898 }
 0x2cc   :  { %2170 = vpow2.f32 %v718_v4  ;;  %226 = vadd.xlane.f32.xlu1 %v225_v6  ;;  %v900_v17 = vsub.f32 %v893_v43, %v899_v16  ;;  %v1497_v16 = vld [vmem:[%s2552_s3 + $0x18] sm:$0xff] }
 0x2ce   :  { %v2167_v9 = vpop.eup %2166  ;;  %v901_v21 = vmul.f32 1.442695, %v900_v17 }
 0x2cf   :  { %v390_v10 = vsel %vm143_vm2, %v2167_v9, 0.0  ;;  %v1064_v18 = vpop.xlane.xlu0 %1063 }
 0x2d0   :  { %391 = vadd.xlane.f32.xlu0 %v390_v10  ;;  %v1065_v20 = vsub.f32 %v1058_v46, %v1064_v18  ;;  %2172 = vpow2.f32 %v901_v21 }
 0x2d2   :  { %v2169_v11 = vpop.eup %2168  ;;  %v1066_v24 = vmul.f32 1.442695, %v1065_v20 }
 0x2d3   :  { %v555_v12 = vsel %vm143_vm2, %v2169_v11, 0.0  ;;  %v1229_v19 = vpop.xlane.xlu1 %1228 }
 0x2d4   :  { %556 = vadd.xlane.f32.xlu1 %v555_v12  ;;  %v1230_v22 = vsub.f32 %v1223_v49, %v1229_v19  ;;  %2174 = vpow2.f32 %v1066_v24  ;;  %v1495_v12 = vld [vmem:[%s2552_s3 + $0x8] sm:$0xff] }
 0x2d6   :  { %v2398_v13 = vpop.eup %2170  ;;  %v1231_v25 = vmul.f32 1.442695, %v1230_v22 }
 0x2d7   :  { %v720_v15 = vsel %vm143_vm2, %v2398_v13, 0.0  ;;  %v1394_v23 = vpop.xlane.xlu0 %1393  ;;  %v726_v36 = vpop.permute.xlu1 %725 }
 0x2d8   :  { %721 = vadd.xlane.f32.xlu0 %v720_v15  ;;  %v1395_v26 = vsub.f32 %v1388_v52, %v1394_v23  ;;  %2176 = vpow2.f32 %v1231_v25  ;;  %v1496_v15 = vld [vmem:[%s2552_s3 + $0x10] sm:$0xff] }
 0x2d9   :  { %v2120_v17 = vpack.c.bf16 %v1497_v16, %v1496_v15  ;;  %v1906_v15 = vld [vmem:[%s2556_s5] ss:$0 sm:$0xff] }
 0x2da   :  { %v1396_v27 = vmul.f32 1.442695, %v1395_v26  ;;  %v2173_v28 = vpop.eup %2172 }
 0x2db   :  { %v903_v30 = vsel %vm143_vm2, %v2173_v28, 0.0  ;;  %v561_v37 = vpop.permute.xlu0 %560 }
 0x2dc   :  { %2178 = vpow2.f32 %v1396_v27 }
 0x2de   :  { %v2406_v29 = vpop.eup %2174 }
 0x2df   :  { %v1068_v33 = vsel %vm143_vm2, %v2406_v29, 0.0 }
 0x2e2   :  { %v2409_v31 = vpop.eup %2176 }
 0x2e3   :  { %v1233_v32 = vsel %vm143_vm2, %v2409_v31, 0.0 }
 0x2e5   :  { %1073 = vrot.lane.b32.xlu1 %v2332_v14, %s2214_s27 }
 0x2e6   :  { %v2415_v34 = vpop.eup %2178 }
 0x2e7   :  { %v1398_v35 = vsel %vm143_vm2, %v2415_v34, 0.0 }
 0x2ee   :  { %908 = vrot.lane.b32.xlu0 %v2332_v14, %s2213_s26 }
 0x309   :  { %904 = vadd.xlane.f32.xlu1 %v903_v30 }
 0x30d   :  { %1234 = vadd.xlane.f32.xlu1 %v1233_v32  ;;  %1069 = vadd.xlane.f32.xlu0 %v1068_v33 }
 0x311   :  { %1399 = vadd.xlane.f32.xlu1 %v1398_v35 }
 0x322   :  { %1403 = vrot.lane.b32.xlu1 %v2332_v14, %s2215_s28 }
 0x323   :  { %1238 = vrot.lane.b32.xlu0 %v2332_v14, %s2216_s29 }
 0x359   :  { %v227_v38 = vpop.xlane.xlu1 %226 }
 0x35a   :  { %2180 = vrcp.f32 %v227_v38  ;;  %v1903_v38 = vld [vmem:[%s2553_s4] ss:$0 sm:$0xff] }
 0x35d   :  { %v392_v39 = vpop.xlane.xlu0 %391 }
 0x35e   :  { %2182 = vrcp.f32 %v392_v39 }
 0x361   :  { %v557_v40 = vpop.xlane.xlu1 %556 }
 0x362   :  { %2184 = vrcp.f32 %v557_v40 }
 0x364   :  { %v2181_v41 = vpop.eup %2180 }
 0x365   :  { %v229_v42 = vmul.f32 %v2181_v41, %v2165_v3  ;;  %v722_v43 = vpop.xlane.xlu0 %721  ;;  %v1074_v50 = vpop.permute.xlu1 %1073 }
 0x366   :  { %2186 = vrcp.f32 %v722_v43 }
 0x367   :  { %1995 = vmatmul.mubr.msk.f32.vlgmr.msra.gmra.mrb[4].mxu1 %vm143_vm2, %v229_v42 }
 0x368   :  { %v2183_v44 = vpop.eup %2182  ;;  %2003 = vmatpush3.msra.mxu1 %v2393_v55  ;;  %2004 = vmatprep.mubr.msk.f32.mxu1 %vm2205_vm1, %v2204_v8 }
 0x369   :  { %v394_v14 = vmul.f32 %v2183_v44, %v2167_v9  ;;  %2012 = vmatprep.subr.mxu1 %v2204_v8  ;;  %v909_v49 = vpop.permute.xlu0 %908 }
 0x36b   :  { %2005 = vmatmul.mubr.msk.f32.vlgmr.msra.gmra.mrb[6].mxu1 %vm143_vm2, %v394_v14 }
 0x36c   :  { %v2185_v45 = vpop.eup %2184  ;;  %2013 = vmatpush3.msra.mxu1 %v561_v37  ;;  %2014 = vmatprep.mubr.msk.f32.mxu1 %vm2205_vm1, %v2204_v8 }
 0x36d   :  { %v559_v46 = vmul.f32 %v2185_v45, %v2169_v11  ;;  %2022 = vmatprep.subr.mxu1 %v2204_v8 }
 0x36f   :  { %2015 = vmatmul.mubr.msk.f32.vlgmr.msra.gmra.mrb[8].mxu1 %vm143_vm2, %v559_v46 }
 0x370   :  { %v2187_v47 = vpop.eup %2186  ;;  %2023 = vmatpush3.msra.mxu1 %v726_v36  ;;  %2024 = vmatprep.mubr.msk.f32.mxu1 %vm2205_vm1, %v2204_v8 }
 0x371   :  { %v724_v48 = vmul.f32 %v2187_v47, %v2398_v13  ;;  %2032 = vmatprep.subr.mxu1 %v2204_v8 }
 0x373   :  { %2025 = vmatmul.mubr.msk.f32.vlgmr.msra.gmra.mrb[10].mxu1 %vm143_vm2, %v724_v48 }
 0x374   :  { %2033 = vmatpush3.msra.mxu1 %v909_v49  ;;  %2034 = vmatprep.mubr.msk.f32.mxu1 %vm2205_vm1, %v2204_v8 }
 0x375   :  { %2042 = vmatprep.subr.mxu1 %v2204_v8 }
 0x396   :  { %v905_v51 = vpop.xlane.xlu1 %904 }
 0x397   :  { %2188 = vrcp.f32 %v905_v51 }
 0x39a   :  { %v1235_v52 = vpop.xlane.xlu1 %1234  ;;  %v1070_v53 = vpop.xlane.xlu0 %1069 }
 0x39b   :  { %2190 = vrcp.f32 %v1070_v53 }
 0x39c   :  { %2192 = vrcp.f32 %v1235_v52 }
 0x39e   :  { %v1400_v54 = vpop.xlane.xlu1 %1399  ;;  %v1239_v60 = vpop.permute.xlu0 %1238 }
 0x39f   :  { %2194 = vrcp.f32 %v1400_v54 }
 0x3a1   :  { %v2189_v55 = vpop.eup %2188 }
 0x3a2   :  { %v907_v56 = vmul.f32 %v2189_v55, %v2173_v28  ;;  %v1404_v63 = vpop.permute.xlu1 %1403  ;;  %v1634_v55 = vld [vmem:[%s2554_s7 + $0x8] sm:$0xff] }
 0x3a4   :  { %2035 = vmatmul.mubr.msk.f32.vlgmr.msra.gmra.mrb[12].mxu1 %vm143_vm2, %v907_v56 }
 0x3a5   :  { %2043 = vmatpush3.msra.mxu1 %v1074_v50  ;;  %2044 = vmatprep.mubr.msk.f32.mxu1 %vm2205_vm1, %v2204_v8  ;;  %v2191_v57 = vpop.eup %2190 }
 0x3a6   :  { %2052 = vmatprep.subr.mxu1 %v2204_v8  ;;  %v1072_v58 = vmul.f32 %v2191_v57, %v2406_v29  ;;  %v2193_v59 = vpop.eup %2192  ;;  %v1635_v57 = vld [vmem:[%s2554_s7 + $0x10] sm:$0xff] }
 0x3a7   :  { %v1237_v61 = vmul.f32 %v2193_v59, %v2409_v31 }
 0x3a8   :  { %2045 = vmatmul.mubr.msk.f32.vlgmr.msra.gmra.mrb[14].mxu1 %vm143_vm2, %v1072_v58  ;;  %v1636_v58 = vld [vmem:[%s2554_s7 + $0x18] sm:$0xff] }
 0x3a9   :  { %2053 = vmatpush3.msra.mxu1 %v1239_v60  ;;  %2054 = vmatprep.mubr.msk.f32.mxu1 %vm2205_vm1, %v2204_v8  ;;  %v2195_v62 = vpop.eup %2194  ;;  %v2128_v59 = vpack.c.bf16 %v1636_v58, %v1635_v57  ;;  %v1727_v60 = vld [vmem:[%s2555_s9] sm:$0xff] }
 0x3aa   :  { %2062 = vmatprep.subr.mxu1 %v2204_v8  ;;  %v1402_v0 = vmul.f32 %v2195_v62, %v2415_v34  ;;  %v1729_v62 = vld [vmem:[%s2555_s9 + $0x10] sm:$0xff]  ;;  %v1914_v57 = vld [vmem:[%s2560_s11] ss:$0 sm:$0xff] }
 0x3ac   :  { %2055 = vmatmul.mubr.msk.f32.vlgmr.msra.gmra.mrb[16].mxu1 %vm143_vm2, %v1237_v61  ;;  %v1728_v61 = vld [vmem:[%s2555_s9 + $0x8] sm:$0xff] }
 0x3ad   :  { %2063 = vmatpush3.msra.mxu1 %v1404_v63  ;;  %2064 = vmatprep.mubr.msk.f32.mxu1 %vm2205_vm1, %v2204_v8  ;;  %v1494_v8 = vld [vmem:[%s2552_s3] sm:$0xff]  ;;  %v2132_v63 = vpack.c.bf16 %v1728_v61, %v1727_v60 }
 0x3ae   :  { %v2116_v13 = vpack.c.bf16 %v1495_v12, %v1494_v8  ;;  %v1915_v60 = vld [vmem:[%s2561_s12] ss:$0 sm:$0xff] }
 0x3b0   :  { %2065 = vmatmul.mubr.msk.f32.vlgmr.msra.gmra.mrb[18].mxu1 %vm143_vm2, %v1402_v0  ;;  %2117 = vmatprep.subr.bf16.mxu0 %v2116_v13  ;;  %v1730_v0 = vld [vmem:[%s2555_s9 + $0x18] sm:$0xff] }
 0x3b1   :  { %2119 = vmatpush3.bf16.msra.mxu0 %v2116_v13 }
 0x3b2   :  { %2121 = vmatprep.subr.bf16.mxu0 %v2120_v17 }
 0x3b5   :  { %2123 = vmatpush3.bf16.msra.mxu0 %v2120_v17  ;;  %v1907_v17 = vld [vmem:[%s2557_s6] ss:$0 sm:$0xff] }
 0x3b6   :  { %2133 = vmatprep.subr.bf16.mxu0 %v2132_v63 }
 0x43a   :  { %v302_v1 = vpop.f32.mrb[4].mxu1 }
 0x43b   :  { %v1996_v2 = vpop.f32.mrb[5].mxu1 }
 0x43c   :  { %v1731_v2 = vld [vmem:[%s2555_s9 + $0x20] sm:$0xff] }
 0x43e   :  { %v467_v3 = vpop.f32.mrb[6].mxu1 }
 0x43f   :  { %802 = vrot.lane.b32.xlu0 %v467_v3, %s2217_s30  ;;  %v2006_v4 = vpop.f32.mrb[7].mxu1  ;;  %v1732_v3 = vld [vmem:[%s2555_s9 + $0x28] sm:$0xff] }
 0x440   :  { %v2140_v4 = vpack.c.bf16 %v1732_v3, %v1731_v2 }
 0x442   :  { %v632_v6 = vpop.f32.mrb[8].mxu1 }
 0x443   :  { %806 = vrot.lane.b32.xlu1 %v632_v6, %s2218_s14  ;;  %v2016_v9 = vpop.f32.mrb[9].mxu1 }
 0x446   :  { %v797_v10 = vpop.f32.mrb[10].mxu1 }
 0x447   :  { %810 = vrot.lane.b32.xlu1 %v797_v10, %s2219_s15  ;;  %v2026_v11 = vpop.f32.mrb[11].mxu1 }
 0x477   :  { %v980_v18 = vpop.f32.mrb[12].mxu1 }
 0x478   :  { %v2036_v19 = vpop.f32.mrb[13].mxu1 }
 0x47b   :  { %v1145_v20 = vpop.f32.mrb[14].mxu1 }
 0x47c   :  { %1480 = vrot.lane.b32.xlu0 %v1145_v20, %s2217_s30  ;;  %v2046_v21 = vpop.f32.mrb[15].mxu1 }
 0x47f   :  { %v1310_v22 = vpop.f32.mrb[16].mxu1 }
 0x480   :  { %1484 = vrot.lane.b32.xlu0 %v1310_v22, %s2218_s14  ;;  %v2056_v23 = vpop.f32.mrb[17].mxu1 }
 0x483   :  { %v1475_v24 = vpop.f32.mrb[18].mxu1 }
 0x484   :  { %1488 = vrot.lane.b32.xlu1 %v1475_v24, %s2219_s15  ;;  %v2066_v25 = vpop.f32.mrb[19].mxu1  ;;  %v1733_v24 = vld [vmem:[%s2555_s9 + $0x30] sm:$0xff] }
 0x485   :  { %v1734_v25 = vld [vmem:[%s2555_s9 + $0x38] sm:$0xff] }
 0x4b1   :  { %v803_v26 = vpop.permute.xlu0 %802 }
 0x4b2   :  { %v813_v28 = vsel %vm143_vm2, %v302_v1, %v803_v26  ;;  %v2136_v1 = vpack.c.bf16 %v1730_v0, %v1729_v62  ;;  %v2144_v26 = vpack.c.bf16 %v1734_v25, %v1733_v24 }
 0x4b5   :  { %v807_v27 = vpop.permute.xlu1 %806 }
 0x4b6   :  { %v815_v29 = vsel %vm814_vm3, %v813_v28, %v807_v27  ;;  %v1908_v27 = vld [vmem:[%s2558_s8] ss:$0 sm:$0xff] }
 0x4b9   :  { %v811_v30 = vpop.permute.xlu1 %810 }
 0x4ba   :  { %v817_v31 = vsel %vm816_vm4, %v815_v29, %v811_v30 }
 0x4bb   :  { %2075 = vmatprep.mubr.msk.f32.mxu0 %vm57_vm0, %v817_v31 }
 0x4ee   :  { %v1481_v32 = vpop.permute.xlu0 %1480 }
 0x4ef   :  { %v1491_v34 = vsel %vm143_vm2, %v980_v18, %v1481_v32 }
 0x4f2   :  { %v1485_v33 = vpop.permute.xlu0 %1484 }
 0x4f3   :  { %v1492_v35 = vsel %vm814_vm3, %v1491_v34, %v1485_v33  ;;  %v1911_v34 = vld [vmem:[%s2559_s10] ss:$0 sm:$0xff] }
 0x4f6   :  { %v1489_v36 = vpop.permute.xlu1 %1488 }
 0x4f7   :  { %v1493_v37 = vsel %vm816_vm4, %v1492_v35, %v1489_v36 }
 0x4f8   :  { %2076 = vmatmul.mubr.msk.f32.vlgmr.msra.gmra.mrb[14].mxu0 %vm57_vm0, %v1493_v37 }
 0x4f9   :  { %2135 = vmatpush3.bf16.msra.mxu0 %v2132_v63 }
 0x4fa   :  { %2137 = vmatprep.subr.bf16.mxu0 %v2136_v1 }
 0x4fd   :  { %2139 = vmatpush3.bf16.msra.mxu0 %v2136_v1 }
 0x4fe   :  { %2141 = vmatprep.subr.bf16.mxu0 %v2140_v4 }
 0x501   :  { %2143 = vmatpush3.bf16.msra.mxu0 %v2140_v4 }
 0x502   :  { %2145 = vmatprep.subr.bf16.mxu0 %v2144_v26 }
 0x505   :  { %2147 = vmatpush3.bf16.msra.mxu0 %v2144_v26 }
 0x5cb   :  { %v2077_v39 = vpop.f32.mrb[14].mxu0 }
 0x5cc   :  { %v1583_v40 = vadd.f32 %v2077_v39, %v1903_v38  ;;  %v1577_v41 = vpop.f32.mrb[15].mxu0 }
 0x5cd   :  { %v1578_v42 = vadd.f32 %v1903_v38, %v1577_v41 }
 0x5ce   :  { %v1587_v43 = vadd.f32 %v1583_v40, %v2312_v7 }
 0x5cf   :  { %v1586_v44 = vadd.f32 %v1578_v42, %v2305_v5  ;;  %v1633_v5 = vld [vmem:[%s2554_s7] sm:$0xff] }
 0x5d0   :  { %v1593_v14 = vsel %vm57_vm0, %v1587_v43, 0.0  ;;  %v2124_v56 = vpack.c.bf16 %v1634_v55, %v1633_v5 }
 0x5d1   :  { %1594 = vadd.xlane.f32.xlu1 %v1593_v14  ;;  %v1590_v45 = vsel %vm57_vm0, %v1586_v44, 0.0 }
 0x5d2   :  { %1591 = vadd.xlane.f32.xlu0 %v1590_v45  ;;  %2125 = vmatprep.subr.bf16.mxu1 %v2124_v56 }
 0x5d3   :  { %2127 = vmatpush3.bf16.msra.mxu1 %v2124_v56 }
 0x5d4   :  { %2129 = vmatprep.subr.bf16.mxu1 %v2128_v59 }
 0x5d7   :  { %2131 = vmatpush3.bf16.msra.mxu1 %v2128_v59 }
 0x65e   :  { %v1595_v46 = vpop.xlane.xlu1 %1594 }
 0x65f   :  { %v1598_v47 = vmul.f32 0.03125, %v1595_v46  ;;  %v1592_v48 = vpop.xlane.xlu0 %1591 }
 0x660   :  { %v1597_v49 = vmul.f32 0.03125, %v1592_v48 }
 0x661   :  { %v1600_v50 = vsub.f32 %v1587_v43, %v1598_v47 }
 0x662   :  { %v1599_v51 = vsub.f32 %v1586_v44, %v1597_v49 }
 0x663   :  { %v1602_v54 = vmul.f32 %v1600_v50, %v1600_v50 }
 0x664   :  { %v1601_v52 = vmul.f32 %v1599_v51, %v1599_v51 }
 0x665   :  { %v1606_v7 = vsel %vm57_vm0, %v1602_v54, 0.0 }
 0x666   :  { %v1603_v53 = vsel %vm57_vm0, %v1601_v52, 0.0 }
 0x667   :  { %1604 = vadd.xlane.f32.xlu0 %v1603_v53 }
 0x66b   :  { %1607 = vadd.xlane.f32.xlu0 %v1606_v7 }
 0x6f4   :  { %v1605_v6 = vpop.xlane.xlu0 %1604 }
 0x6f5   :  { %v1609_v9 = vmul.f32 0.03125, %v1605_v6 }
 0x6f7   :  { %v1611_v10 = vadd.f32 1e-05, %v1609_v9 }
 0x6f8   :  { %v1608_v11 = vpop.xlane.xlu0 %1607 }
 0x6f9   :  { %2196 = vrsqrt.f32 %v1611_v10  ;;  %v1610_v8 = vmul.f32 0.03125, %v1608_v11 }
 0x6fb   :  { %v1612_v12 = vadd.f32 1e-05, %v1610_v8 }
 0x6fd   :  { %2198 = vrsqrt.f32 %v1612_v12 }
 0x703   :  { %v2197_v13 = vpop.eup %2196 }
 0x704   :  { %v1615_v16 = vmul.f32 %v2197_v13, %v1599_v51 }
 0x706   :  { %v1623_v18 = vmul.f32 %v1906_v15, %v1615_v16 }
 0x707   :  { %v2199_v19 = vpop.eup %2198 }
 0x708   :  { %v1616_v20 = vmul.f32 %v2199_v19, %v1600_v50  ;;  %v1631_v21 = vadd.f32 %v1907_v17, %v1623_v18 }
 0x70a   :  { %v1624_v22 = vmul.f32 %v1906_v15, %v1616_v20  ;;  %2086 = vmatprep.mubr.msk.f32.mxu1 %vm57_vm0, %v1631_v21 }
 0x70c   :  { %v1632_v23 = vadd.f32 %v1907_v17, %v1624_v22 }
 0x70e   :  { %2087 = vmatmul.mubr.msk.f32.vlgmr.msra.gmra.mrb[20].mxu1 %vm57_vm0, %v1632_v23 }
 0x7e1   :  { %v2088_v28 = vpop.f32.mrb[20].mxu1 }
 0x7e2   :  { %v1722_v29 = vadd.f32 %v2088_v28, %v1908_v27  ;;  %v1716_v30 = vpop.f32.mrb[21].mxu1 }
 0x7e3   :  { %v1717_v31 = vadd.f32 %v1908_v27, %v1716_v30 }
 0x7e4   :  { %v1726_v33 = vmax.f32 %v1722_v29, 0.0 }
 0x7e5   :  { %v1725_v32 = vmax.f32 %v1717_v31, 0.0 }
 0x7e7   :  { %2105 = vmatprep.mubr.msk.f32.mxu0 %vm1742_vm5, %v1725_v32 }
 0x7e8   :  { %2106 = vmatmul.mubr.msk.f32.vlgmr.msra.gmra.mrb[16].mxu0 %vm1742_vm5, %v1726_v33 }
 0x8bb   :  { %v2107_v35 = vpop.f32.mrb[16].mxu0 }
 0x8bc   :  { %v1821_v36 = vadd.f32 %v2107_v35, %v1911_v34  ;;  %v1815_v37 = vpop.f32.mrb[17].mxu0 }
 0x8bd   :  { %v1816_v38 = vadd.f32 %v1911_v34, %v1815_v37 }
 0x8be   :  { %v1825_v39 = vadd.f32 %v1821_v36, %v1632_v23 }
 0x8bf   :  { %v1824_v40 = vadd.f32 %v1816_v38, %v1631_v21 }
 0x8c0   :  { %v1831_v41 = vsel %vm57_vm0, %v1825_v39, 0.0 }
 0x8c1   :  { %1832 = vadd.xlane.f32.xlu0 %v1831_v41  ;;  %v1828_v42 = vsel %vm57_vm0, %v1824_v40, 0.0 }
 0x8c2   :  { %1829 = vadd.xlane.f32.xlu1 %v1828_v42 }
 0x94e   :  { %v1833_v43 = vpop.xlane.xlu0 %1832 }
 0x94f   :  { %v1835_v44 = vmul.f32 0.03125, %v1833_v43  ;;  %v1830_v14 = vpop.xlane.xlu1 %1829 }
 0x950   :  { %v1834_v45 = vmul.f32 0.03125, %v1830_v14 }
 0x951   :  { %v1837_v46 = vsub.f32 %v1825_v39, %v1835_v44 }
 0x952   :  { %v1836_v47 = vsub.f32 %v1824_v40, %v1834_v45 }
 0x953   :  { %v1839_v48 = vmul.f32 %v1837_v46, %v1837_v46 }
 0x954   :  { %v1838_v49 = vmul.f32 %v1836_v47, %v1836_v47 }
 0x955   :  { %v1843_v50 = vsel %vm57_vm0, %v1839_v48, 0.0 }
 0x956   :  { %1844 = vadd.xlane.f32.xlu0 %v1843_v50  ;;  %v1840_v51 = vsel %vm57_vm0, %v1838_v49, 0.0 }
 0x957   :  { %1841 = vadd.xlane.f32.xlu1 %v1840_v51 }
 0x9e3   :  { %v1845_v52 = vpop.xlane.xlu0 %1844 }
 0x9e4   :  { %v1847_v53 = vmul.f32 0.03125, %v1845_v52  ;;  %v1842_v54 = vpop.xlane.xlu1 %1841 }
 0x9e5   :  { %v1846_v7 = vmul.f32 0.03125, %v1842_v54 }
 0x9e6   :  { %v1849_v5 = vadd.f32 1e-05, %v1847_v53 }
 0x9e7   :  { %v1848_v55 = vadd.f32 1e-05, %v1846_v7 }
 0x9e8   :  { %2200 = vrsqrt.f32 %v1849_v5 }
 0x9e9   :  { %2202 = vrsqrt.f32 %v1848_v55 }
 0x9f2   :  { %v2201_v56 = vpop.eup %2200 }
 0x9f3   :  { %v2203_v58 = vpop.eup %2202  ;;  %v1853_v59 = vmul.f32 %v2201_v56, %v1837_v46 }
 0x9f4   :  { %v1852_v61 = vmul.f32 %v2203_v58, %v1836_v47 }
 0x9f5   :  { %v1861_v62 = vmul.f32 %v1914_v57, %v1853_v59 }
 0x9f6   :  { %v1860_v63 = vmul.f32 %v1914_v57, %v1852_v61 }
 0x9f7   :  { %v1869_v0 = vadd.f32 %v1915_v60, %v1861_v62 }
 0x9f8   :  { %v1868_v1 = vadd.f32 %v1915_v60, %v1860_v63 }
 0x9f9   :  { %1871 = vst.msk [vmem:[%s2562_s13 + $0x8] sm:$0xff] %vm57_vm0, %v1869_v0 }
 0x9fa   :  { %1870 = vst.msk [vmem:[%s2562_s13] sm:$0xff] %vm57_vm0, %v1868_v1 }

// kernel: llama_model2_forward.9
= control target key start
LH: loop header
LB: loop body
LE: loop exit
PB: predicated region body
PF: predicated region fallthrough
CT: control target
= control target key end

     0   :  { %vm80_vm0 = vcmask 261120   ;;  %v4172_v8 = vmov 0.0   ;;  %vm4173_vm1 = vmmov 0   ;;  %s4175_s24 = smov 120   ;;  %s4823_s25 = smov 80   ;;  %vm166_vm2 = vcmask 64512   ;;  %s4795_s2 = inlined_call_operand.vmem [shape: f32[32,96], index: 2, kind: input, shape index: {}]   ;;  %s4796_s0 = inlined_call_operand.vmem [shape: f32[16,32], index: 0, kind: input, shape index: {}]   ;;  %s4797_s3 = inlined_call_operand.vmem [shape: f32[1,96], index: 3, kind: input, shape index: {}]   ;;  %s4798_s4 = inlined_call_operand.vmem [shape: f32[32,32], index: 4, kind: input, shape index: {}]   ;;  %s4799_s5 = inlined_call_operand.vmem [shape: f32[1,32], index: 5, kind: input, shape index: {}]   ;;  %s4800_s8 = inlined_call_operand.vmem [shape: f32[32,96], index: 8, kind: input, shape index: {}]   ;;  %s4801_s1 = inlined_call_operand.vmem [shape: f32[16,32], index: 1, kind: input, shape index: {}]   ;;  %s4802_s9 = inlined_call_operand.vmem [shape: f32[1,96], index: 9, kind: input, shape index: {}]   ;;  %s4803_s6 = inlined_call_operand.vmem [shape: f32[1,32], index: 6, kind: input, shape index: {}]   ;;  %s4804_s7 = inlined_call_operand.vmem [shape: f32[1,32], index: 7, kind: input, shape index: {}]   ;;  %s4805_s10 = inlined_call_operand.vmem [shape: f32[32,32], index: 10, kind: input, shape index: {}]   ;;  %s4806_s11 = inlined_call_operand.vmem [shape: f32[1,32], index: 11, kind: input, shape index: {}]   ;;  %s4807_s14 = inlined_call_operand.vmem [shape: f32[32,64], index: 14, kind: input, shape index: {}]   ;;  %s4808_s16 = inlined_call_operand.vmem [shape: f32[64,32], index: 16, kind: input, shape index: {}]   ;;  %s4809_s12 = inlined_call_operand.vmem [shape: f32[1,32], index: 12, kind: input, shape index: {}]   ;;  %s4810_s13 = inlined_call_operand.vmem [shape: f32[1,32], index: 13, kind: input, shape index: {}]   ;;  %s4811_s15 = inlined_call_operand.vmem [shape: f32[1,64], index: 15, kind: input, shape index: {}]   ;;  %s4812_s17 = inlined_call_operand.vmem [shape: f32[1,32], index: 17, kind: input, shape index: {}]   ;;  %s4813_s18 = inlined_call_operand.vmem [shape: f32[1,32], index: 18, kind: input, shape index: {}]   ;;  %s4814_s19 = inlined_call_operand.vmem [shape: f32[1,32], index: 19, kind: input, shape index: {}]   ;;  %s4815_s20 = inlined_call_operand.vmem [shape: f32[16,32], index: 20, kind: output, shape index: {}]  }
   0x1   :  { %4827 = sst [smem:[#allocation2_spill]] %s4795_s2  ;;  %3782 = vmatprep.subr.mxu0 %v4172_v8  ;;  %3784 = vmatprep.mubr.msk.f32.mxu0 %vm4173_vm1, %v4172_v8  ;;  %s4819_s26 = smov 72   ;;  %vm837_vm3 = vcmask 130048   ;;  %vm839_vm4 = vcmask 195584   ;;  %vm3443_vm5 = vcmask 523264  }
   0x2   :  { %4828 = sst [smem:[#allocation3_spill]] %s4796_s0  ;;  %s4832_s23 = sld [smem:[#allocation2_spill]] }
   0x3   :  { %4829 = sst [smem:[#allocation4_spill]] %s4797_s3  ;;  %s4833_s29 = sld [smem:[#allocation3_spill]] }
   0x4   :  { %4830 = sst [smem:[#allocation5_spill]] %s4798_s4  ;;  %s4834_s22 = sld [smem:[#allocation4_spill]] }
   0x5   :  { %4831 = sst [smem:[#allocation6_spill]] %s4799_s5  ;;  %s4821_s3 = smov 88  }
   0x6   :  { %s4178_s4 = smov 112   ;;  %s4825_s27 = smov 104  }
   0x7   :  { %s4181_s28 = smov 64   ;;  %s4182_s5 = smov 56  }
   0x8   :  { %v69_v0 = vld [vmem:[%s4832_s23] sm:$0xff]  ;;  %v70_v1 = vld [vmem:[%s4832_s23 + $0x8] sm:$0xff]  ;;  %v71_v2 = vld [vmem:[%s4832_s23 + $0x10] sm:$0xff]  ;;  %s4184_s30 = smov 48   ;;  %s4185_s2 = smov 8  }
   0x9   :  { %v4006_v3 = vpack.c.bf16 %v70_v1, %v69_v0  ;;  %v72_v4 = vld [vmem:[%s4832_s23 + $0x18] sm:$0xff]  ;;  %v4308_v5 = vld [vmem:[%s4833_s29] sm:$0xff]  ;;  %v4315_v7 = vld [vmem:[%s4833_s29 + $0x8] sm:$0xff]  ;;  %s4174_s23 = smov 96   ;;  %s4183_s29 = smov 40  }
   0xa   :  { %v4010_v6 = vpack.c.bf16 %v72_v4, %v71_v2  ;;  %3769 = vmatprep.mubr.msk.f32.mxu1 %vm80_vm0, %v4308_v5  ;;  %v3577_v9 = vld [vmem:[%s4834_s22] ss:$0 sm:$0xff]  ;;  %s4186_s21 = smov 16   ;;  %s4187_s0 = smov 24  }
   0xb   :  { %4007 = vmatprep.subr.bf16.mxu1 %v4006_v3 }
   0xc   :  { %4009 = vmatpush3.bf16.msra.mxu1 %v4006_v3 }
   0xd   :  { %4011 = vmatprep.subr.bf16.mxu1 %v4010_v6 }
  0x10   :  { %4013 = vmatpush3.bf16.msra.mxu1 %v4010_v6 }
  0x11   :  { %3772 = vmatprep.subr.mxu1 %v4172_v8 }
  0x13   :  { %3770 = vmatmul.mubr.msk.f32.vlgmr.msra.gmra.mrb[0].mxu1 %vm80_vm0, %v4315_v7 }
  0x14   :  { %3774 = vmatprep.mubr.msk.f32.mxu1 %vm4173_vm1, %v4172_v8 }
  0xe6   :  { %v3771_v10 = vpop.f32.mrb[0].mxu1 }
  0xe7   :  { %v153_v11 = vpop.f32.mrb[1].mxu1  ;;  %v4341_v14 = vadd.f32 %v3771_v10, %v3577_v9 }
  0xe8   :  { %v4328_v12 = vadd.f32 %v3577_v9, %v153_v11 }
  0xe9   :  { %v841_v15 = vmul.f32 0.35355338, %v4341_v14 }
  0xea   :  { %164 = vrot.lane.b32.xlu0 %v4328_v12, %s4174_s23  ;;  %v162_v13 = vmul.f32 0.35355338, %v4328_v12 }
  0xec   :  { %329 = vrot.lane.b32.xlu1 %v162_v13, %s4175_s24 }
  0xee   :  { %331 = vrot.lane.b32.xlu0 %v4328_v12, %s4821_s3 }
  0xf0   :  { %496 = vrot.lane.b32.xlu1 %v4328_v12, %s4823_s25 }
  0xf2   :  { %494 = vrot.lane.b32.xlu0 %v162_v13, %s4178_s4 }
  0xf4   :  { %661 = vrot.lane.b32.xlu1 %v4328_v12, %s4819_s26 }
  0xf6   :  { %659 = vrot.lane.b32.xlu0 %v162_v13, %s4825_s27 }
  0xf8   :  { %843 = vrot.lane.b32.xlu1 %v4341_v14, %s4174_s23 }
  0xfa   :  { %1009 = vrot.lane.b32.xlu0 %v4341_v14, %s4821_s3 }
  0xfc   :  { %1007 = vrot.lane.b32.xlu1 %v841_v15, %s4175_s24 }
  0xfe   :  { %1174 = vrot.lane.b32.xlu0 %v4341_v14, %s4823_s25 }
 0x100   :  { %1172 = vrot.lane.b32.xlu1 %v841_v15, %s4178_s4 }
 0x102   :  { %1339 = vrot.lane.b32.xlu0 %v4341_v14, %s4819_s26  ;;  %s4836_s26 = sld [smem:[#allocation6_spill]] }
 0x104   :  { %1337 = vrot.lane.b32.xlu1 %v841_v15, %s4825_s27 }
 0x106   :  { %253 = vrot.lane.b32.xlu0 %v4328_v12, %s4181_s28 }
 0x108   :  { %418 = vrot.lane.b32.xlu1 %v4328_v12, %s4182_s5 }
 0x15c   :  { %v165_v16 = vpop.permute.xlu0 %164 }
 0x15d   :  { %3773 = vmatpush3.xpose.msk.msra.mxu1 %vm166_vm2, %v165_v16 }
 0x15e   :  { %v330_v17 = vpop.permute.xlu1 %329  ;;  %3777 = vmatprep.subr.mxu1 %v4172_v8 }
 0x160   :  { %v332_v18 = vpop.permute.xlu0 %331  ;;  %3775 = vmatmul.mubr.msk.f32.vlgmr.msra.gmra.mrb[2].mxu1 %vm166_vm2, %v162_v13 }
 0x161   :  { %3783 = vmatpush3.xpose.msk.msra.mxu0 %vm166_vm2, %v332_v18  ;;  %3779 = vmatprep.mubr.msk.f32.mxu1 %vm4173_vm1, %v4172_v8 }
 0x162   :  { %v497_v19 = vpop.permute.xlu1 %496  ;;  %3792 = vmatprep.subr.mxu0 %v4172_v8 }
 0x164   :  { %v495_v20 = vpop.permute.xlu0 %494  ;;  %3785 = vmatmul.mubr.msk.f32.vlgmr.msra.gmra.mrb[0].mxu0 %vm166_vm2, %v330_v17 }
 0x165   :  { %3793 = vmatpush3.xpose.msk.msra.mxu0 %vm166_vm2, %v497_v19  ;;  %3794 = vmatprep.mubr.msk.f32.mxu0 %vm4173_vm1, %v4172_v8 }
 0x166   :  { %v662_v21 = vpop.permute.xlu1 %661  ;;  %3802 = vmatprep.subr.mxu0 %v4172_v8 }
 0x168   :  { %v660_v22 = vpop.permute.xlu0 %659  ;;  %3795 = vmatmul.mubr.msk.f32.vlgmr.msra.gmra.mrb[2].mxu0 %vm166_vm2, %v495_v20 }
 0x169   :  { %3803 = vmatpush3.xpose.msk.msra.mxu0 %vm166_vm2, %v662_v21  ;;  %3804 = vmatprep.mubr.msk.f32.mxu0 %vm4173_vm1, %v4172_v8 }
 0x16a   :  { %v844_v23 = vpop.permute.xlu1 %843  ;;  %3812 = vmatprep.subr.mxu0 %v4172_v8 }
 0x16c   :  { %v1010_v24 = vpop.permute.xlu0 %1009  ;;  %3805 = vmatmul.mubr.msk.f32.vlgmr.msra.gmra.mrb[4].mxu0 %vm166_vm2, %v660_v22 }
 0x16d   :  { %3813 = vmatpush3.xpose.msk.msra.mxu0 %vm166_vm2, %v844_v23  ;;  %3814 = vmatprep.mubr.msk.f32.mxu0 %vm4173_vm1, %v4172_v8 }
 0x16e   :  { %3822 = vmatprep.subr.mxu0 %v4172_v8  ;;  %v1008_v25 = vpop.permute.xlu1 %1007 }
 0x170   :  { %v1175_v26 = vpop.permute.xlu0 %1174  ;;  %3815 = vmatmul.mubr.msk.f32.vlgmr.msra.gmra.mrb[6].mxu0 %vm166_vm2, %v841_v15 }
 0x171   :  { %3823 = vmatpush3.xpose.msk.msra.mxu0 %vm166_vm2, %v1010_v24  ;;  %3824 = vmatprep.mubr.msk.f32.mxu0 %vm4173_vm1, %v4172_v8 }
 0x172   :  { %3832 = vmatprep.subr.mxu0 %v4172_v8  ;;  %v1173_v28 = vpop.permute.xlu1 %1172 }
 0x174   :  { %v1340_v27 = vpop.permute.xlu0 %1339  ;;  %3825 = vmatmul.mubr.msk.f32.vlgmr.msra.gmra.mrb[8].mxu0 %vm166_vm2, %v1008_v25 }
 0x175   :  { %3833 = vmatpush3.xpose.msk.msra.mxu0 %vm166_vm2, %v1175_v26  ;;  %3834 = vmatprep.mubr.msk.f32.mxu0 %vm4173_vm1, %v4172_v8 }
 0x176   :  { %3842 = vmatprep.subr.mxu0 %v4172_v8  ;;  %v1338_v30 = vpop.permute.xlu1 %1337 }
 0x178   :  { %v254_v29 = vpop.permute.xlu0 %253  ;;  %3835 = vmatmul.mubr.msk.f32.vlgmr.msra.gmra.mrb[10].mxu0 %vm166_vm2, %v1173_v28 }
 0x179   :  { %3778 = vmatpush3.msra.mxu1 %v254_v29  ;;  %3843 = vmatpush3.xpose.msk.msra.mxu0 %vm166_vm2, %v1340_v27 }
 0x17a   :  { %3844 = vmatprep.mubr.msk.f32.mxu0 %vm4173_vm1, %v4172_v8  ;;  %3787 = vmatprep.subr.mxu1 %v4172_v8  ;;  %v4410_v55 = vpop.permute.xlu1 %418 }
 0x17c   :  { %3845 = vmatmul.mubr.msk.f32.vlgmr.msra.gmra.mrb[12].mxu0 %vm166_vm2, %v1338_v30 }
 0x233   :  { %v238_v31 = vpop.f32.mrb[2].mxu1 }
 0x234   :  { %v3776_v32 = vpop.f32.mrb[3].mxu1  ;;  %v242_v33 = vsel %vm166_vm2, %v238_v31, -inf }
 0x235   :  { %243 = vmax.xlane.f32.xlu0 %v242_v33 }
 0x237   :  { %v403_v34 = vpop.f32.mrb[0].mxu0 }
 0x238   :  { %v3786_v35 = vpop.f32.mrb[1].mxu0  ;;  %v407_v36 = vsel %vm166_vm2, %v403_v34, -inf }
 0x239   :  { %408 = vmax.xlane.f32.xlu1 %v407_v36 }
 0x23b   :  { %v568_v37 = vpop.f32.mrb[2].mxu0 }
 0x23c   :  { %v3796_v38 = vpop.f32.mrb[3].mxu0  ;;  %v572_v39 = vsel %vm166_vm2, %v568_v37, -inf }
 0x23d   :  { %573 = vmax.xlane.f32.xlu0 %v572_v39 }
 0x23f   :  { %v733_v40 = vpop.f32.mrb[4].mxu0 }
 0x240   :  { %v3806_v41 = vpop.f32.mrb[5].mxu0  ;;  %v737_v42 = vsel %vm166_vm2, %v733_v40, -inf }
 0x241   :  { %738 = vmax.xlane.f32.xlu0 %v737_v42 }
 0x243   :  { %v916_v43 = vpop.f32.mrb[6].mxu0 }
 0x244   :  { %v3816_v44 = vpop.f32.mrb[7].mxu0  ;;  %v920_v45 = vsel %vm166_vm2, %v916_v43, -inf }
 0x245   :  { %921 = vmax.xlane.f32.xlu1 %v920_v45 }
 0x247   :  { %v1081_v46 = vpop.f32.mrb[8].mxu0 }
 0x248   :  { %v3826_v47 = vpop.f32.mrb[9].mxu0  ;;  %v1085_v48 = vsel %vm166_vm2, %v1081_v46, -inf }
 0x249   :  { %1086 = vmax.xlane.f32.xlu0 %v1085_v48 }
 0x24b   :  { %v1246_v49 = vpop.f32.mrb[10].mxu0 }
 0x24c   :  { %v3836_v50 = vpop.f32.mrb[11].mxu0  ;;  %v1250_v51 = vsel %vm166_vm2, %v1246_v49, -inf }
 0x24d   :  { %1251 = vmax.xlane.f32.xlu1 %v1250_v51 }
 0x24f   :  { %v1411_v52 = vpop.f32.mrb[12].mxu0 }
 0x250   :  { %v3846_v53 = vpop.f32.mrb[13].mxu0  ;;  %v1415_v54 = vsel %vm166_vm2, %v1411_v52, -inf }
 0x251   :  { %1416 = vmax.xlane.f32.xlu0 %v1415_v54 }
 0x25e   :  { %748 = vrot.lane.b32.xlu1 %v4328_v12, %s4183_s29 }
 0x267   :  { %583 = vrot.lane.b32.xlu0 %v4328_v12, %s4184_s30 }
 0x2c2   :  { %v244_v56 = vpop.xlane.xlu0 %243 }
 0x2c3   :  { %v245_v57 = vsub.f32 %v238_v31, %v244_v56 }
 0x2c5   :  { %v246_v58 = vmul.f32 1.442695, %v245_v57 }
 0x2c6   :  { %v409_v59 = vpop.xlane.xlu1 %408 }
 0x2c7   :  { %4096 = vpow2.f32 %v246_v58  ;;  %v410_v60 = vsub.f32 %v403_v34, %v409_v59 }
 0x2c9   :  { %v411_v61 = vmul.f32 1.442695, %v410_v60 }
 0x2ca   :  { %v574_v62 = vpop.xlane.xlu0 %573 }
 0x2cb   :  { %4098 = vpow2.f32 %v411_v61  ;;  %v575_v63 = vsub.f32 %v568_v37, %v574_v62 }
 0x2cd   :  { %v576_v0 = vmul.f32 1.442695, %v575_v63 }
 0x2ce   :  { %v739_v1 = vpop.xlane.xlu0 %738 }
 0x2cf   :  { %4100 = vpow2.f32 %v576_v0  ;;  %v740_v2 = vsub.f32 %v733_v40, %v739_v1 }
 0x2d1   :  { %v4097_v3 = vpop.eup %4096  ;;  %v741_v4 = vmul.f32 1.442695, %v740_v2 }
 0x2d2   :  { %v248_v6 = vsel %vm166_vm2, %v4097_v3, 0.0  ;;  %v922_v16 = vpop.xlane.xlu1 %921 }
 0x2d3   :  { %4102 = vpow2.f32 %v741_v4  ;;  %249 = vadd.xlane.f32.xlu1 %v248_v6  ;;  %v923_v17 = vsub.f32 %v916_v43, %v922_v16 }
 0x2d5   :  { %v4099_v9 = vpop.eup %4098  ;;  %v924_v21 = vmul.f32 1.442695, %v923_v17 }
 0x2d6   :  { %v413_v10 = vsel %vm166_vm2, %v4099_v9, 0.0  ;;  %v1087_v18 = vpop.xlane.xlu0 %1086 }
 0x2d7   :  { %414 = vadd.xlane.f32.xlu0 %v413_v10  ;;  %v1088_v20 = vsub.f32 %v1081_v46, %v1087_v18  ;;  %4104 = vpow2.f32 %v924_v21 }
 0x2d9   :  { %v4101_v11 = vpop.eup %4100  ;;  %v1089_v24 = vmul.f32 1.442695, %v1088_v20 }
 0x2da   :  { %v578_v12 = vsel %vm166_vm2, %v4101_v11, 0.0  ;;  %v1252_v19 = vpop.xlane.xlu1 %1251 }
 0x2db   :  { %579 = vadd.xlane.f32.xlu1 %v578_v12  ;;  %v1253_v22 = vsub.f32 %v1246_v49, %v1252_v19  ;;  %4106 = vpow2.f32 %v1089_v24 }
 0x2dd   :  { %v4415_v13 = vpop.eup %4102  ;;  %v1254_v25 = vmul.f32 1.442695, %v1253_v22 }
 0x2de   :  { %v743_v15 = vsel %vm166_vm2, %v4415_v13, 0.0  ;;  %v1417_v23 = vpop.xlane.xlu0 %1416  ;;  %v749_v36 = vpop.permute.xlu1 %748 }
 0x2df   :  { %744 = vadd.xlane.f32.xlu0 %v743_v15  ;;  %v1418_v26 = vsub.f32 %v1411_v52, %v1417_v23  ;;  %4108 = vpow2.f32 %v1254_v25 }
 0x2e1   :  { %v1419_v27 = vmul.f32 1.442695, %v1418_v26  ;;  %v4105_v28 = vpop.eup %4104 }
 0x2e2   :  { %v926_v30 = vsel %vm166_vm2, %v4105_v28, 0.0  ;;  %v584_v37 = vpop.permute.xlu0 %583 }
 0x2e3   :  { %4110 = vpow2.f32 %v1419_v27 }
 0x2e5   :  { %v4423_v29 = vpop.eup %4106 }
 0x2e6   :  { %v1091_v33 = vsel %vm166_vm2, %v4423_v29, 0.0 }
 0x2e9   :  { %v4426_v31 = vpop.eup %4108 }
 0x2ea   :  { %v1256_v32 = vsel %vm166_vm2, %v4426_v31, 0.0 }
 0x2ec   :  { %1096 = vrot.lane.b32.xlu1 %v4341_v14, %s4182_s5  ;;  %s4835_s5 = sld [smem:[#allocation5_spill]] }
 0x2ed   :  { %v4432_v34 = vpop.eup %4110 }
 0x2ee   :  { %v1421_v35 = vsel %vm166_vm2, %v4432_v34, 0.0 }
 0x2f2   :  { %v1517_v12 = vld [vmem:[%s4835_s5] sm:$0xff]  ;;  %v1519_v16 = vld [vmem:[%s4835_s5 + $0x10] sm:$0xff]  ;;  %v1520_v17 = vld [vmem:[%s4835_s5 + $0x18] sm:$0xff] }
 0x2f3   :  { %v4018_v18 = vpack.c.bf16 %v1520_v17, %v1519_v16 }
 0x2f5   :  { %931 = vrot.lane.b32.xlu0 %v4341_v14, %s4181_s28 }
 0x310   :  { %927 = vadd.xlane.f32.xlu1 %v926_v30 }
 0x314   :  { %1257 = vadd.xlane.f32.xlu1 %v1256_v32  ;;  %1092 = vadd.xlane.f32.xlu0 %v1091_v33 }
 0x318   :  { %1422 = vadd.xlane.f32.xlu1 %v1421_v35 }
 0x329   :  { %1426 = vrot.lane.b32.xlu1 %v4341_v14, %s4183_s29 }
 0x32a   :  { %1261 = vrot.lane.b32.xlu0 %v4341_v14, %s4184_s30 }
 0x360   :  { %v250_v38 = vpop.xlane.xlu1 %249 }
 0x361   :  { %4112 = vrcp.f32 %v250_v38 }
 0x364   :  { %v415_v39 = vpop.xlane.xlu0 %414 }
 0x365   :  { %4114 = vrcp.f32 %v415_v39  ;;  %v3604_v39 = vld [vmem:[%s4836_s26] ss:$0 sm:$0xff] }
 0x368   :  { %v580_v40 = vpop.xlane.xlu1 %579 }
 0x369   :  { %4116 = vrcp.f32 %v580_v40 }
 0x36b   :  { %v4113_v41 = vpop.eup %4112 }
 0x36c   :  { %v252_v42 = vmul.f32 %v4113_v41, %v4097_v3  ;;  %v745_v43 = vpop.xlane.xlu0 %744  ;;  %v1097_v50 = vpop.permute.xlu1 %1096 }
 0x36d   :  { %4118 = vrcp.f32 %v745_v43 }
 0x36e   :  { %3780 = vmatmul.mubr.msk.f32.vlgmr.msra.gmra.mrb[4].mxu1 %vm166_vm2, %v252_v42 }
 0x36f   :  { %v4115_v44 = vpop.eup %4114  ;;  %3788 = vmatpush3.msra.mxu1 %v4410_v55  ;;  %3789 = vmatprep.mubr.msk.f32.mxu1 %vm4173_vm1, %v4172_v8 }
 0x370   :  { %v417_v14 = vmul.f32 %v4115_v44, %v4099_v9  ;;  %3797 = vmatprep.subr.mxu1 %v4172_v8  ;;  %v932_v49 = vpop.permute.xlu0 %931 }
 0x372   :  { %3790 = vmatmul.mubr.msk.f32.vlgmr.msra.gmra.mrb[6].mxu1 %vm166_vm2, %v417_v14 }
 0x373   :  { %v4117_v45 = vpop.eup %4116  ;;  %3798 = vmatpush3.msra.mxu1 %v584_v37  ;;  %3799 = vmatprep.mubr.msk.f32.mxu1 %vm4173_vm1, %v4172_v8 }
 0x374   :  { %v582_v46 = vmul.f32 %v4117_v45, %v4101_v11  ;;  %3807 = vmatprep.subr.mxu1 %v4172_v8 }
 0x376   :  { %3800 = vmatmul.mubr.msk.f32.vlgmr.msra.gmra.mrb[8].mxu1 %vm166_vm2, %v582_v46 }
 0x377   :  { %v4119_v47 = vpop.eup %4118  ;;  %3808 = vmatpush3.msra.mxu1 %v749_v36  ;;  %3809 = vmatprep.mubr.msk.f32.mxu1 %vm4173_vm1, %v4172_v8 }
 0x378   :  { %v747_v48 = vmul.f32 %v4119_v47, %v4415_v13  ;;  %3817 = vmatprep.subr.mxu1 %v4172_v8  ;;  %v1518_v13 = vld [vmem:[%s4835_s5 + $0x8] sm:$0xff]  ;;  %v1656_v47 = vld [vmem:[%s4800_s8] sm:$0xff] }
 0x379   :  { %v4014_v15 = vpack.c.bf16 %v1518_v13, %v1517_v12 }
 0x37a   :  { %3810 = vmatmul.mubr.msk.f32.vlgmr.msra.gmra.mrb[10].mxu1 %vm166_vm2, %v747_v48  ;;  %v1657_v48 = vld [vmem:[%s4800_s8 + $0x8] sm:$0xff] }
 0x37b   :  { %3818 = vmatpush3.msra.mxu1 %v932_v49  ;;  %3819 = vmatprep.mubr.msk.f32.mxu1 %vm4173_vm1, %v4172_v8  ;;  %v4086_v49 = vpack.i.bf16 %v1657_v48, %v1656_v47 }
 0x37c   :  { %3827 = vmatprep.subr.mxu1 %v4172_v8  ;;  %4015 = vmatprep.subr.bf16.mxu0 %v4014_v15 }
 0x37d   :  { %4017 = vmatpush3.bf16.msra.mxu0 %v4014_v15 }
 0x37e   :  { %4019 = vmatprep.subr.bf16.mxu0 %v4018_v18 }
 0x381   :  { %4021 = vmatpush3.bf16.msra.mxu0 %v4018_v18 }
 0x39d   :  { %v928_v51 = vpop.xlane.xlu1 %927 }
 0x39e   :  { %4120 = vrcp.f32 %v928_v51 }
 0x3a1   :  { %v1258_v52 = vpop.xlane.xlu1 %1257  ;;  %v1093_v53 = vpop.xlane.xlu0 %1092 }
 0x3a2   :  { %4122 = vrcp.f32 %v1093_v53 }
 0x3a3   :  { %4124 = vrcp.f32 %v1258_v52 }
 0x3a5   :  { %v1423_v54 = vpop.xlane.xlu1 %1422  ;;  %v1262_v60 = vpop.permute.xlu0 %1261 }
 0x3a6   :  { %4126 = vrcp.f32 %v1423_v54 }
 0x3a8   :  { %v4121_v55 = vpop.eup %4120 }
 0x3a9   :  { %v930_v56 = vmul.f32 %v4121_v55, %v4105_v28  ;;  %v1427_v63 = vpop.permute.xlu1 %1426 }
 0x3ab   :  { %3820 = vmatmul.mubr.msk.f32.vlgmr.msra.gmra.mrb[12].mxu1 %vm166_vm2, %v930_v56 }
 0x3ac   :  { %3828 = vmatpush3.msra.mxu1 %v1097_v50  ;;  %3829 = vmatprep.mubr.msk.f32.mxu1 %vm4173_vm1, %v4172_v8  ;;  %v4123_v57 = vpop.eup %4122 }
 0x3ad   :  { %3837 = vmatprep.subr.mxu1 %v4172_v8  ;;  %v1095_v58 = vmul.f32 %v4123_v57, %v4423_v29  ;;  %v4125_v59 = vpop.eup %4124 }
 0x3ae   :  { %v1260_v61 = vmul.f32 %v4125_v59, %v4426_v31  ;;  %v1658_v59 = vld [vmem:[%s4800_s8 + $0x10] sm:$0xff] }
 0x3af   :  { %3830 = vmatmul.mubr.msk.f32.vlgmr.msra.gmra.mrb[14].mxu1 %vm166_vm2, %v1095_v58 }
 0x3b0   :  { %3838 = vmatpush3.msra.mxu1 %v1262_v60  ;;  %3839 = vmatprep.mubr.msk.f32.mxu1 %vm4173_vm1, %v4172_v8  ;;  %v4127_v62 = vpop.eup %4126  ;;  %v1659_v60 = vld [vmem:[%s4800_s8 + $0x18] sm:$0xff] }
 0x3b1   :  { %3847 = vmatprep.subr.mxu1 %v4172_v8  ;;  %v1425_v0 = vmul.f32 %v4127_v62, %v4432_v34 }
 0x3b3   :  { %3840 = vmatmul.mubr.msk.f32.vlgmr.msra.gmra.mrb[16].mxu1 %vm166_vm2, %v1260_v61 }
 0x3b4   :  { %3848 = vmatpush3.msra.mxu1 %v1427_v63  ;;  %3849 = vmatprep.mubr.msk.f32.mxu1 %vm4173_vm1, %v4172_v8 }
 0x3b7   :  { %3850 = vmatmul.mubr.msk.f32.vlgmr.msra.gmra.mrb[18].mxu1 %vm166_vm2, %v1425_v0  ;;  %v4091_v0 = vpack.i.bf16 %v1659_v60, %v1658_v59 }
 0x441   :  { %v325_v1 = vpop.f32.mrb[4].mxu1 }
 0x442   :  { %v3781_v2 = vpop.f32.mrb[5].mxu1 }
 0x443   :  { %v4022_v2 = vpack.c.bf16 %v1657_v48, %v1656_v47 }
 0x445   :  { %v490_v3 = vpop.f32.mrb[6].mxu1  ;;  %4023 = vmatprep.subr.bf16.mxu1 %v4022_v2 }
 0x446   :  { %825 = vrot.lane.b32.xlu0 %v490_v3, %s4185_s2  ;;  %v3791_v4 = vpop.f32.mrb[7].mxu1  ;;  %v4026_v3 = vpack.c.bf16 %v1659_v60, %v1658_v59  ;;  %4025 = vmatpush3.bf16.msra.mxu1 %v4022_v2 }
 0x447   :  { %v3609_v4 = vld [vmem:[%s4802_s9] ss:$0 sm:$0xff] }
 0x448   :  { %4027 = vmatprep.subr.bf16.mxu1 %v4026_v3 }
 0x449   :  { %v655_v6 = vpop.f32.mrb[8].mxu1 }
 0x44a   :  { %829 = vrot.lane.b32.xlu1 %v655_v6, %s4186_s21  ;;  %v3801_v9 = vpop.f32.mrb[9].mxu1  ;;  %4029 = vmatpush3.bf16.msra.mxu1 %v4026_v3 }
 0x44b   :  { %3885 = vmatprep.subr.mxu1 %v4172_v8 }
 0x44d   :  { %v820_v10 = vpop.f32.mrb[10].mxu1 }
 0x44e   :  { %833 = vrot.lane.b32.xlu1 %v820_v10, %s4187_s0  ;;  %v3811_v11 = vpop.f32.mrb[11].mxu1 }
 0x47e   :  { %v1003_v19 = vpop.f32.mrb[12].mxu1 }
 0x47f   :  { %v3821_v20 = vpop.f32.mrb[13].mxu1 }
 0x482   :  { %v1168_v21 = vpop.f32.mrb[14].mxu1 }
 0x483   :  { %1503 = vrot.lane.b32.xlu0 %v1168_v21, %s4185_s2  ;;  %v3831_v22 = vpop.f32.mrb[15].mxu1 }
 0x484   :  { %v3607_v22 = vld [vmem:[%s4803_s6] ss:$0 sm:$0xff]  ;;  %s4838_s6 = smov 80  }
 0x486   :  { %v1333_v23 = vpop.f32.mrb[16].mxu1 }
 0x487   :  { %1507 = vrot.lane.b32.xlu0 %v1333_v23, %s4186_s21  ;;  %v3841_v24 = vpop.f32.mrb[17].mxu1 }
 0x48a   :  { %v1498_v25 = vpop.f32.mrb[18].mxu1 }
 0x48b   :  { %1511 = vrot.lane.b32.xlu1 %v1498_v25, %s4187_s0  ;;  %v3851_v26 = vpop.f32.mrb[19].mxu1 }
 0x48c   :  { %v3608_v26 = vld [vmem:[%s4804_s7] ss:$0 sm:$0xff]  ;;  %s4839_s7 = smov 88  }
 0x4b8   :  { %v826_v27 = vpop.permute.xlu0 %825 }
 0x4b9   :  { %v836_v29 = vsel %vm166_vm2, %v325_v1, %v826_v27  ;;  %v67_v1 = vld [vmem:[%s4801_s1] sm:$0xff] }
 0x4bc   :  { %v830_v28 = vpop.permute.xlu1 %829 }
 0x4bd   :  { %v838_v30 = vsel %vm837_vm3, %v836_v29, %v830_v28 }
 0x4c0   :  { %v834_v31 = vpop.permute.xlu1 %833 }
 0x4c1   :  { %v840_v32 = vsel %vm839_vm4, %v838_v30, %v834_v31 }
 0x4c2   :  { %3860 = vmatprep.mubr.msk.f32.mxu0 %vm80_vm0, %v840_v32 }
 0x4f5   :  { %v1504_v33 = vpop.permute.xlu0 %1503 }
 0x4f6   :  { %v1514_v35 = vsel %vm166_vm2, %v1003_v19, %v1504_v33  ;;  %v68_v19 = vld [vmem:[%s4801_s1 + $0x8] sm:$0xff]  ;;  %s4837_s1 = smov 104  }
 0x4f9   :  { %v1508_v34 = vpop.permute.xlu0 %1507 }
 0x4fa   :  { %v1515_v36 = vsel %vm837_vm3, %v1514_v35, %v1508_v34 }
 0x4fd   :  { %v1512_v37 = vpop.permute.xlu1 %1511 }
 0x4fe   :  { %v1516_v38 = vsel %vm839_vm4, %v1515_v36, %v1512_v37 }
 0x4ff   :  { %3861 = vmatmul.mubr.msk.f32.vlgmr.msra.gmra.mrb[14].mxu0 %vm80_vm0, %v1516_v38 }
 0x500   :  { %3882 = vmatprep.mubr.msk.f32.mxu0 %vm80_vm0, %v67_v1 }
 0x5d2   :  { %v3862_v40 = vpop.f32.mrb[14].mxu0 }
 0x5d3   :  { %v1606_v41 = vadd.f32 %v3862_v40, %v3604_v39  ;;  %v1600_v42 = vpop.f32.mrb[15].mxu0 }
 0x5d4   :  { %v1601_v43 = vadd.f32 %v3604_v39, %v1600_v42 }
 0x5d5   :  { %v1610_v44 = vadd.f32 %v1606_v41, %v4315_v7 }
 0x5d6   :  { %v1609_v14 = vadd.f32 %v1601_v43, %v4308_v5 }
 0x5d7   :  { %v1616_v45 = vsel %vm80_vm0, %v1610_v44, 0.0 }
 0x5d8   :  { %1617 = vadd.xlane.f32.xlu1 %v1616_v45  ;;  %v1613_v46 = vsel %vm80_vm0, %v1609_v14, 0.0 }
 0x5d9   :  { %1614 = vadd.xlane.f32.xlu0 %v1613_v46 }
 0x5e9   :  { %4087 = vrot.lane.b32.xlu1 %v4086_v49, %s4174_s23 }
 0x5ed   :  { %1764 = vrot.lane.b32.xlu1 %v3609_v4, %s4174_s23 }
 0x665   :  { %v1618_v7 = vpop.xlane.xlu1 %1617 }
 0x666   :  { %v1621_v50 = vmul.f32 0.03125, %v1618_v7  ;;  %v1615_v5 = vpop.xlane.xlu0 %1614 }
 0x667   :  { %v1620_v51 = vmul.f32 0.03125, %v1615_v5 }
 0x668   :  { %v1623_v52 = vsub.f32 %v1610_v44, %v1621_v50 }
 0x669   :  { %v1622_v53 = vsub.f32 %v1609_v14, %v1620_v51  ;;  %v4088_v58 = vpop.permute.xlu1 %4087 }
 0x66a   :  { %v1625_v54 = vmul.f32 %v1623_v52, %v1623_v52  ;;  %v4090_v61 = vunpack.i.h.bf16 %v4088_v58  ;;  %v4089_v62 = vunpack.i.l.bf16 %v4088_v58 }
 0x66b   :  { %v1624_v56 = vmul.f32 %v1622_v53, %v1622_v53 }
 0x66c   :  { %v1629_v55 = vsel %vm80_vm0, %v1625_v54, 0.0  ;;  %v4030_v63 = vpack.c.bf16 %v4090_v61, %v4089_v62 }
 0x66d   :  { %1630 = vadd.xlane.f32.xlu0 %v1629_v55  ;;  %v1626_v57 = vsel %vm80_vm0, %v1624_v56, 0.0  ;;  %v1765_v30 = vpop.permute.xlu1 %1764 }
 0x66e   :  { %4031 = vmatprep.subr.bf16.mxu0 %v4030_v63 }
 0x66f   :  { %4033 = vmatpush3.bf16.msra.mxu0 %v4030_v63 }
 0x671   :  { %1627 = vadd.xlane.f32.xlu0 %v1626_v57 }
 0x687   :  { %4092 = vrot.lane.b32.xlu0 %v4091_v0, %s4174_s23 }
 0x6fa   :  { %v1631_v6 = vpop.xlane.xlu0 %1630 }
 0x6fb   :  { %v1633_v9 = vmul.f32 0.03125, %v1631_v6 }
 0x6fd   :  { %v1635_v10 = vadd.f32 1e-05, %v1633_v9 }
 0x6fe   :  { %v1628_v11 = vpop.xlane.xlu0 %1627 }
 0x6ff   :  { %4128 = vrsqrt.f32 %v1635_v10  ;;  %v1632_v12 = vmul.f32 0.03125, %v1628_v11 }
 0x701   :  { %v1634_v13 = vadd.f32 1e-05, %v1632_v12 }
 0x702   :  { %v4093_v15 = vpop.permute.xlu0 %4092 }
 0x703   :  { %4130 = vrsqrt.f32 %v1634_v13  ;;  %v4095_v16 = vunpack.i.h.bf16 %v4093_v15  ;;  %v4094_v17 = vunpack.i.l.bf16 %v4093_v15 }
 0x705   :  { %v4034_v18 = vpack.c.bf16 %v4095_v16, %v4094_v17 }
 0x707   :  { %4035 = vmatprep.subr.bf16.mxu0 %v4034_v18 }
 0x708   :  { %4037 = vmatpush3.bf16.msra.mxu0 %v4034_v18 }
 0x709   :  { %v4129_v20 = vpop.eup %4128  ;;  %3895 = vmatprep.subr.mxu0 %v4172_v8 }
 0x70a   :  { %v1639_v21 = vmul.f32 %v4129_v20, %v1623_v52 }
 0x70b   :  { %3883 = vmatmul.mubr.msk.f32.vlgmr.msra.gmra.mrb[16].mxu0 %vm80_vm0, %v68_v19 }
 0x70c   :  { %3897 = vmatprep.mubr.msk.f32.mxu0 %vm4173_vm1, %v4172_v8  ;;  %v1647_v25 = vmul.f32 %v3607_v22, %v1639_v21 }
 0x70d   :  { %v4131_v23 = vpop.eup %4130 }
 0x70e   :  { %v1638_v24 = vmul.f32 %v4131_v23, %v1622_v53  ;;  %v4546_v29 = vadd.f32 %v3608_v26, %v1647_v25 }
 0x710   :  { %v1646_v27 = vmul.f32 %v3607_v22, %v1638_v24 }
 0x712   :  { %v4544_v28 = vadd.f32 %v3608_v26, %v1646_v27 }
 0x714   :  { %3871 = vmatprep.mubr.msk.f32.mxu1 %vm80_vm0, %v4544_v28 }
 0x715   :  { %3872 = vmatmul.mubr.msk.f32.vlgmr.msra.gmra.mrb[20].mxu1 %vm80_vm0, %v4546_v29 }
 0x716   :  { %3887 = vmatprep.mubr.msk.f32.mxu1 %vm4173_vm1, %v4172_v8 }
 0x7de   :  { %v3884_v31 = vpop.f32.mrb[16].mxu0 }
 0x7df   :  { %v1839_v32 = vpop.f32.mrb[17].mxu0  ;;  %v4565_v37 = vadd.f32 %v3884_v31, %v1765_v30 }
 0x7e0   :  { %v4554_v33 = vadd.f32 %v1839_v32, %v1765_v30 }
 0x7e2   :  { %2014 = vrot.lane.b32.xlu1 %v4554_v33, %s4175_s24  ;;  %3886 = vmatpush3.xpose.msk.msra.mxu1 %vm166_vm2, %v4554_v33 }
 0x7e3   :  { %3890 = vmatprep.subr.mxu1 %v4172_v8 }
 0x7e6   :  { %2179 = vrot.lane.b32.xlu1 %v4554_v33, %s4178_s4 }
 0x7e8   :  { %v3873_v34 = vpop.f32.mrb[20].mxu1 }
 0x7e9   :  { %v1739_v35 = vpop.f32.mrb[21].mxu1  ;;  %v1745_v39 = vadd.f32 %v3873_v34, %v3609_v4 }
 0x7ea   :  { %v1740_v36 = vadd.f32 %v3609_v4, %v1739_v35  ;;  %2344 = vrot.lane.b32.xlu1 %v4554_v33, %s4837_s1 }
 0x7eb   :  { %v2522_v40 = vmul.f32 0.35355338, %v1745_v39 }
 0x7ec   :  { %v1848_v38 = vmul.f32 0.35355338, %v1740_v36 }
 0x7ee   :  { %2688 = vrot.lane.b32.xlu1 %v4565_v37, %s4175_s24  ;;  %2012 = vrot.lane.b32.xlu0 %v1848_v38, %s4175_s24 }
 0x7ef   :  { %3888 = vmatmul.mubr.msk.f32.vlgmr.msra.gmra.mrb[22].mxu1 %vm166_vm2, %v1848_v38 }
 0x7f0   :  { %3892 = vmatprep.mubr.msk.f32.mxu1 %vm4173_vm1, %v4172_v8 }
 0x7f2   :  { %2853 = vrot.lane.b32.xlu1 %v4565_v37, %s4178_s4  ;;  %2177 = vrot.lane.b32.xlu0 %v1848_v38, %s4178_s4 }
 0x7f6   :  { %3018 = vrot.lane.b32.xlu1 %v4565_v37, %s4837_s1  ;;  %2342 = vrot.lane.b32.xlu0 %v1848_v38, %s4837_s1 }
 0x7fa   :  { %1936 = vrot.lane.b32.xlu1 %v4554_v33, %s4174_s23  ;;  %2686 = vrot.lane.b32.xlu0 %v2522_v40, %s4175_s24  ;;  %s4840_s24 = smov 72  }
 0x7fe   :  { %2851 = vrot.lane.b32.xlu0 %v2522_v40, %s4178_s4 }
 0x802   :  { %3016 = vrot.lane.b32.xlu0 %v2522_v40, %s4837_s1 }
 0x854   :  { %v2015_v41 = vpop.permute.xlu1 %2014 }
 0x855   :  { %3896 = vmatpush3.xpose.msk.msra.mxu0 %vm166_vm2, %v2015_v41 }
 0x856   :  { %3905 = vmatprep.subr.mxu0 %v4172_v8 }
 0x858   :  { %v2180_v42 = vpop.permute.xlu1 %2179 }
 0x85c   :  { %v2345_v43 = vpop.permute.xlu1 %2344 }
 0x860   :  { %v2689_v44 = vpop.permute.xlu1 %2688  ;;  %v2013_v14 = vpop.permute.xlu0 %2012 }
 0x861   :  { %3898 = vmatmul.mubr.msk.f32.vlgmr.msra.gmra.mrb[18].mxu0 %vm166_vm2, %v2013_v14 }
 0x862   :  { %3906 = vmatpush3.xpose.msk.msra.mxu0 %vm166_vm2, %v2180_v42  ;;  %3907 = vmatprep.mubr.msk.f32.mxu0 %vm4173_vm1, %v4172_v8 }
 0x863   :  { %3915 = vmatprep.subr.mxu0 %v4172_v8 }
 0x864   :  { %v2854_v45 = vpop.permute.xlu1 %2853  ;;  %v2178_v46 = vpop.permute.xlu0 %2177 }
 0x865   :  { %3908 = vmatmul.mubr.msk.f32.vlgmr.msra.gmra.mrb[20].mxu0 %vm166_vm2, %v2178_v46 }
 0x866   :  { %3916 = vmatpush3.xpose.msk.msra.mxu0 %vm166_vm2, %v2345_v43  ;;  %3917 = vmatprep.mubr.msk.f32.mxu0 %vm4173_vm1, %v4172_v8 }
 0x867   :  { %3925 = vmatprep.subr.mxu0 %v4172_v8 }
 0x868   :  { %v3019_v47 = vpop.permute.xlu1 %3018  ;;  %v2343_v48 = vpop.permute.xlu0 %2342 }
 0x869   :  { %3918 = vmatmul.mubr.msk.f32.vlgmr.msra.gmra.mrb[22].mxu0 %vm166_vm2, %v2343_v48 }
 0x86a   :  { %3926 = vmatpush3.xpose.msk.msra.mxu0 %vm166_vm2, %v4565_v37  ;;  %3927 = vmatprep.mubr.msk.f32.mxu0 %vm4173_vm1, %v4172_v8 }
 0x86b   :  { %3935 = vmatprep.subr.mxu0 %v4172_v8 }
 0x86c   :  { %v1937_v49 = vpop.permute.xlu1 %1936  ;;  %v2687_v7 = vpop.permute.xlu0 %2686 }
 0x86d   :  { %3891 = vmatpush3.msra.mxu1 %v1937_v49  ;;  %3928 = vmatmul.mubr.msk.f32.vlgmr.msra.gmra.mrb[24].mxu0 %vm166_vm2, %v2522_v40 }
 0x86e   :  { %3936 = vmatpush3.xpose.msk.msra.mxu0 %vm166_vm2, %v2689_v44  ;;  %3937 = vmatprep.mubr.msk.f32.mxu0 %vm4173_vm1, %v4172_v8 }
 0x86f   :  { %3945 = vmatprep.subr.mxu0 %v4172_v8  ;;  %3900 = vmatprep.subr.mxu1 %v4172_v8 }
 0x870   :  { %v2852_v50 = vpop.permute.xlu0 %2851 }
 0x871   :  { %3938 = vmatmul.mubr.msk.f32.vlgmr.msra.gmra.mrb[26].mxu0 %vm166_vm2, %v2687_v7 }
 0x872   :  { %3946 = vmatpush3.xpose.msk.msra.mxu0 %vm166_vm2, %v2854_v45  ;;  %3947 = vmatprep.mubr.msk.f32.mxu0 %vm4173_vm1, %v4172_v8 }
 0x873   :  { %3955 = vmatprep.subr.mxu0 %v4172_v8 }
 0x874   :  { %v3017_v5 = vpop.permute.xlu0 %3016 }
 0x875   :  { %3948 = vmatmul.mubr.msk.f32.vlgmr.msra.gmra.mrb[28].mxu0 %vm166_vm2, %v2852_v50 }
 0x876   :  { %3956 = vmatpush3.xpose.msk.msra.mxu0 %vm166_vm2, %v3019_v47  ;;  %3957 = vmatprep.mubr.msk.f32.mxu0 %vm4173_vm1, %v4172_v8 }
 0x879   :  { %3958 = vmatmul.mubr.msk.f32.vlgmr.msra.gmra.mrb[30].mxu0 %vm166_vm2, %v3017_v5 }
 0x8c2   :  { %v1921_v51 = vpop.f32.mrb[22].mxu1 }
 0x8c3   :  { %v3889_v52 = vpop.f32.mrb[23].mxu1  ;;  %v1925_v53 = vsel %vm166_vm2, %v1921_v51, -inf }
 0x8c4   :  { %1926 = vmax.xlane.f32.xlu1 %v1925_v53 }
 0x934   :  { %v2086_v54 = vpop.f32.mrb[18].mxu0 }
 0x935   :  { %v3899_v55 = vpop.f32.mrb[19].mxu0  ;;  %v2090_v56 = vsel %vm166_vm2, %v2086_v54, -inf }
 0x936   :  { %2091 = vmax.xlane.f32.xlu0 %v2090_v56 }
 0x938   :  { %v2251_v57 = vpop.f32.mrb[20].mxu0 }
 0x939   :  { %v3909_v58 = vpop.f32.mrb[21].mxu0  ;;  %v2255_v59 = vsel %vm166_vm2, %v2251_v57, -inf }
 0x93a   :  { %2256 = vmax.xlane.f32.xlu0 %v2255_v59 }
 0x93c   :  { %v2416_v60 = vpop.f32.mrb[22].mxu0 }
 0x93d   :  { %v3919_v61 = vpop.f32.mrb[23].mxu0  ;;  %v2420_v62 = vsel %vm166_vm2, %v2416_v60, -inf }
 0x93e   :  { %2421 = vmax.xlane.f32.xlu1 %v2420_v62 }
 0x940   :  { %v2595_v63 = vpop.f32.mrb[24].mxu0 }
 0x941   :  { %v3929_v0 = vpop.f32.mrb[25].mxu0  ;;  %v2599_v1 = vsel %vm166_vm2, %v2595_v63, -inf }
 0x942   :  { %2600 = vmax.xlane.f32.xlu0 %v2599_v1 }
 0x944   :  { %v2760_v2 = vpop.f32.mrb[26].mxu0 }
 0x945   :  { %v3939_v3 = vpop.f32.mrb[27].mxu0  ;;  %v2764_v4 = vsel %vm166_vm2, %v2760_v2, -inf }
 0x946   :  { %2765 = vmax.xlane.f32.xlu1 %v2764_v4 }
 0x948   :  { %v2925_v6 = vpop.f32.mrb[28].mxu0 }
 0x949   :  { %v3949_v9 = vpop.f32.mrb[29].mxu0  ;;  %v2929_v10 = vsel %vm166_vm2, %v2925_v6, -inf }
 0x94a   :  { %2930 = vmax.xlane.f32.xlu0 %v2929_v10 }
 0x94c   :  { %v3090_v11 = vpop.f32.mrb[30].mxu0 }
 0x94d   :  { %v3959_v12 = vpop.f32.mrb[31].mxu0  ;;  %v3094_v17 = vsel %vm166_vm2, %v3090_v11, -inf }
 0x951   :  { %v1927_v13 = vpop.xlane.xlu1 %1926 }
 0x952   :  { %v1928_v15 = vsub.f32 %v1921_v51, %v1927_v13 }
 0x954   :  { %v1929_v16 = vmul.f32 1.442695, %v1928_v15 }
 0x956   :  { %4132 = vpow2.f32 %v1929_v16 }
 0x957   :  { %2266 = vrot.lane.b32.xlu1 %v4554_v33, %s4838_s6 }
 0x960   :  { %2101 = vrot.lane.b32.xlu0 %v4554_v33, %s4839_s7  ;;  %v4133_v18 = vpop.eup %4132 }
 0x961   :  { %v1931_v19 = vsel %vm166_vm2, %v4133_v18, 0.0 }
 0x97b   :  { %3095 = vmax.xlane.f32.xlu1 %v3094_v17 }
 0x97f   :  { %1932 = vadd.xlane.f32.xlu0 %v1931_v19 }
 0x98c   :  { %2431 = vrot.lane.b32.xlu1 %v4554_v33, %s4840_s24 }
 0x9c3   :  { %v2092_v20 = vpop.xlane.xlu0 %2091 }
 0x9c4   :  { %v2093_v21 = vsub.f32 %v2086_v54, %v2092_v20 }
 0x9c6   :  { %v2094_v22 = vmul.f32 1.442695, %v2093_v21 }
 0x9c7   :  { %v2257_v23 = vpop.xlane.xlu0 %2256 }
 0x9c8   :  { %4134 = vpow2.f32 %v2094_v22  ;;  %v2258_v24 = vsub.f32 %v2251_v57, %v2257_v23 }
 0x9ca   :  { %v2259_v25 = vmul.f32 1.442695, %v2258_v24 }
 0x9cb   :  { %v2422_v32 = vpop.xlane.xlu1 %2421 }
 0x9cc   :  { %4136 = vpow2.f32 %v2259_v25  ;;  %v2423_v33 = vsub.f32 %v2416_v60, %v2422_v32 }
 0x9ce   :  { %v2424_v38 = vmul.f32 1.442695, %v2423_v33  ;;  %v3196_v33 = vld [vmem:[%s4805_s10] sm:$0xff] }
 0x9cf   :  { %v2601_v34 = vpop.xlane.xlu0 %2600 }
 0x9d0   :  { %v2602_v36 = vsub.f32 %v2595_v63, %v2601_v34  ;;  %4138 = vpow2.f32 %v2424_v38  ;;  %v3199_v38 = vld [vmem:[%s4805_s10 + $0x18] sm:$0xff] }
 0x9d2   :  { %v4135_v26 = vpop.eup %4134  ;;  %v2603_v41 = vmul.f32 1.442695, %v2602_v36  ;;  %v3198_v36 = vld [vmem:[%s4805_s10 + $0x10] sm:$0xff] }
 0x9d3   :  { %v2096_v27 = vsel %vm166_vm2, %v4135_v26, 0.0  ;;  %v2766_v35 = vpop.xlane.xlu1 %2765 }
 0x9d4   :  { %2097 = vadd.xlane.f32.xlu1 %v2096_v27  ;;  %v2767_v39 = vsub.f32 %v2760_v2, %v2766_v35  ;;  %4140 = vpow2.f32 %v2603_v41 }
 0x9d6   :  { %v4634_v30 = vpop.eup %4136  ;;  %v2768_v42 = vmul.f32 1.442695, %v2767_v39 }
 0x9d7   :  { %v2261_v31 = vsel %vm166_vm2, %v4634_v30, 0.0  ;;  %v2931_v40 = vpop.xlane.xlu0 %2930  ;;  %v2267_v14 = vpop.permute.xlu1 %2266 }
 0x9d8   :  { %2262 = vadd.xlane.f32.xlu0 %v2261_v31  ;;  %v2932_v43 = vsub.f32 %v2925_v6, %v2931_v40  ;;  %4142 = vpow2.f32 %v2768_v42  ;;  %v4042_v40 = vpack.c.bf16 %v3199_v38, %v3198_v36  ;;  %v3641_v38 = vld [vmem:[%s4809_s12] ss:$0 sm:$0xff] }
 0x9da   :  { %v2933_v44 = vmul.f32 1.442695, %v2932_v43  ;;  %v4139_v45 = vpop.eup %4138 }
 0x9db   :  { %v2102_v47 = vpop.permute.xlu0 %2101  ;;  %v2426_v49 = vsel %vm166_vm2, %v4139_v45, 0.0 }
 0x9dc   :  { %4144 = vpow2.f32 %v2933_v44 }
 0x9de   :  { %v4141_v46 = vpop.eup %4140 }
 0x9df   :  { %v2605_v52 = vsel %vm166_vm2, %v4141_v46, 0.0 }
 0x9e2   :  { %v4643_v7 = vpop.eup %4142 }
 0x9e3   :  { %v2770_v53 = vsel %vm166_vm2, %v4643_v7, 0.0 }
 0x9e5   :  { %2610 = vrot.lane.b32.xlu1 %v4565_v37, %s4174_s23 }
 0x9e6   :  { %v4648_v54 = vpop.eup %4144 }
 0x9e7   :  { %v2935_v55 = vsel %vm166_vm2, %v4648_v54, 0.0 }
 0x9ee   :  { %2775 = vrot.lane.b32.xlu0 %v4565_v37, %s4839_s7 }
 0xa08   :  { %v3096_v48 = vpop.xlane.xlu1 %3095 }
 0xa09   :  { %v3097_v50 = vsub.f32 %v3090_v11, %v3096_v48  ;;  %2427 = vadd.xlane.f32.xlu1 %v2426_v49 }
 0xa0b   :  { %v3098_v5 = vmul.f32 1.442695, %v3097_v50 }
 0xa0c   :  { %v1933_v51 = vpop.xlane.xlu0 %1932  ;;  %v2432_v60 = vpop.permute.xlu1 %2431 }
 0xa0d   :  { %4146 = vpow2.f32 %v3098_v5  ;;  %2606 = vadd.xlane.f32.xlu0 %v2605_v52  ;;  %2771 = vadd.xlane.f32.xlu1 %v2770_v53 }
 0xa0e   :  { %4148 = vrcp.f32 %v1933_v51 }
 0xa11   :  { %2936 = vadd.xlane.f32.xlu0 %v2935_v55 }
 0xa17   :  { %v4652_v56 = vpop.eup %4146 }
 0xa18   :  { %v4149_v57 = vpop.eup %4148  ;;  %v3100_v58 = vsel %vm166_vm2, %v4652_v56, 0.0 }
 0xa19   :  { %v1935_v59 = vmul.f32 %v4149_v57, %v4133_v18  ;;  %3101 = vadd.xlane.f32.xlu0 %v3100_v58  ;;  %v3638_v58 = vld [vmem:[%s4806_s11] ss:$0 sm:$0xff] }
 0xa1b   :  { %3893 = vmatmul.mubr.msk.f32.vlgmr.msra.gmra.mrb[24].mxu1 %vm166_vm2, %v1935_v59 }
 0xa1c   :  { %3901 = vmatpush3.msra.mxu1 %v2102_v47  ;;  %3902 = vmatprep.mubr.msk.f32.mxu1 %vm4173_vm1, %v4172_v8 }
 0xa1d   :  { %3910 = vmatprep.subr.mxu1 %v4172_v8 }
 0xa1e   :  { %2940 = vrot.lane.b32.xlu1 %v4565_v37, %s4838_s6 }
 0xa2f   :  { %3105 = vrot.lane.b32.xlu0 %v4565_v37, %s4840_s24 }
 0xa61   :  { %v2098_v61 = vpop.xlane.xlu1 %2097 }
 0xa62   :  { %4150 = vrcp.f32 %v2098_v61 }
 0xa65   :  { %v2263_v62 = vpop.xlane.xlu0 %2262  ;;  %v2611_v37 = vpop.permute.xlu1 %2610 }
 0xa66   :  { %4152 = vrcp.f32 %v2263_v62 }
 0xa69   :  { %v2776_v3 = vpop.permute.xlu0 %2775 }
 0xa6c   :  { %v4151_v63 = vpop.eup %4150 }
 0xa6d   :  { %v2100_v0 = vmul.f32 %v4151_v63, %v4135_v26 }
 0xa6f   :  { %3903 = vmatmul.mubr.msk.f32.vlgmr.msra.gmra.mrb[26].mxu1 %vm166_vm2, %v2100_v0 }
 0xa70   :  { %v4153_v1 = vpop.eup %4152  ;;  %3911 = vmatpush3.msra.mxu1 %v2267_v14  ;;  %3912 = vmatprep.mubr.msk.f32.mxu1 %vm4173_vm1, %v4172_v8 }
 0xa71   :  { %v2265_v2 = vmul.f32 %v4153_v1, %v4634_v30  ;;  %3920 = vmatprep.subr.mxu1 %v4172_v8 }
 0xa73   :  { %3913 = vmatmul.mubr.msk.f32.vlgmr.msra.gmra.mrb[28].mxu1 %vm166_vm2, %v2265_v2 }
 0xa74   :  { %3921 = vmatpush3.msra.mxu1 %v2432_v60  ;;  %3922 = vmatprep.mubr.msk.f32.mxu1 %vm4173_vm1, %v4172_v8 }
 0xa75   :  { %3930 = vmatprep.subr.mxu1 %v4172_v8 }
 0xa96   :  { %v2428_v4 = vpop.xlane.xlu1 %2427 }
 0xa97   :  { %4154 = vrcp.f32 %v2428_v4 }
 0xa9a   :  { %v2607_v6 = vpop.xlane.xlu0 %2606  ;;  %v2772_v9 = vpop.xlane.xlu1 %2771 }
 0xa9b   :  { %4156 = vrcp.f32 %v2607_v6 }
 0xa9c   :  { %4158 = vrcp.f32 %v2772_v9 }
 0xa9e   :  { %v2937_v10 = vpop.xlane.xlu0 %2936  ;;  %v2941_v20 = vpop.permute.xlu1 %2940 }
 0xa9f   :  { %4160 = vrcp.f32 %v2937_v10 }
 0xaa1   :  { %v4155_v11 = vpop.eup %4154 }
 0xaa2   :  { %v2430_v12 = vmul.f32 %v4155_v11, %v4139_v45 }
 0xaa4   :  { %3923 = vmatmul.mubr.msk.f32.vlgmr.msra.gmra.mrb[30].mxu1 %vm166_vm2, %v2430_v12 }
 0xaa5   :  { %v4157_v13 = vpop.eup %4156  ;;  %3931 = vmatpush3.msra.mxu1 %v2611_v37  ;;  %3932 = vmatprep.mubr.msk.f32.mxu1 %vm4173_vm1, %v4172_v8 }
 0xaa6   :  { %v2609_v15 = vmul.f32 %v4157_v13, %v4141_v46  ;;  %v3102_v16 = vpop.xlane.xlu0 %3101  ;;  %3940 = vmatprep.subr.mxu1 %v4172_v8  ;;  %v4159_v17 = vpop.eup %4158 }
 0xaa7   :  { %4162 = vrcp.f32 %v3102_v16  ;;  %v2774_v18 = vmul.f32 %v4159_v17, %v4643_v7  ;;  %v3336_v17 = vld [vmem:[%s4807_s14 + $0x10] sm:$0xff] }
 0xaa8   :  { %3933 = vmatmul.mubr.msk.f32.vlgmr.msra.gmra.mrb[32].mxu1 %vm166_vm2, %v2609_v15  ;;  %v3335_v15 = vld [vmem:[%s4807_s14 + $0x8] sm:$0xff] }
 0xaa9   :  { %3941 = vmatpush3.msra.mxu1 %v2776_v3  ;;  %3942 = vmatprep.mubr.msk.f32.mxu1 %vm4173_vm1, %v4172_v8  ;;  %v4161_v19 = vpop.eup %4160 }
 0xaaa   :  { %3950 = vmatprep.subr.mxu1 %v4172_v8  ;;  %v2939_v21 = vmul.f32 %v4161_v19, %v4648_v54  ;;  %v3106_v22 = vpop.permute.xlu0 %3105 }
 0xaac   :  { %3943 = vmatmul.mubr.msk.f32.vlgmr.msra.gmra.mrb[34].mxu1 %vm166_vm2, %v2774_v18  ;;  %v3337_v18 = vld [vmem:[%s4807_s14 + $0x18] sm:$0xff] }
 0xaad   :  { %3951 = vmatpush3.msra.mxu1 %v2941_v20  ;;  %3952 = vmatprep.mubr.msk.f32.mxu1 %vm4173_vm1, %v4172_v8  ;;  %v4050_v19 = vpack.c.bf16 %v3337_v18, %v3336_v17  ;;  %v3428_v20 = vld [vmem:[%s4808_s16] sm:$0xff] }
 0xaae   :  { %3960 = vmatprep.subr.mxu1 %v4172_v8  ;;  %v3649_v17 = vld [vmem:[%s4813_s18] ss:$0 sm:$0xff] }
 0xab0   :  { %3953 = vmatmul.mubr.msk.f32.vlgmr.msra.gmra.mrb[36].mxu1 %vm166_vm2, %v2939_v21  ;;  %v3429_v21 = vld [vmem:[%s4808_s16 + $0x8] sm:$0xff] }
 0xab1   :  { %v4163_v23 = vpop.eup %4162  ;;  %3961 = vmatpush3.msra.mxu1 %v3106_v22  ;;  %3962 = vmatprep.mubr.msk.f32.mxu1 %vm4173_vm1, %v4172_v8  ;;  %v3197_v8 = vld [vmem:[%s4805_s10 + $0x8] sm:$0xff]  ;;  %v3430_v22 = vld [vmem:[%s4808_s16 + $0x10] sm:$0xff] }
 0xab2   :  { %v3104_v24 = vmul.f32 %v4163_v23, %v4652_v56  ;;  %v4038_v34 = vpack.c.bf16 %v3197_v8, %v3196_v33  ;;  %v4054_v23 = vpack.c.bf16 %v3429_v21, %v3428_v20  ;;  %v3650_v20 = vld [vmem:[%s4814_s19] ss:$0 sm:$0xff] }
 0xab4   :  { %3963 = vmatmul.mubr.msk.f32.vlgmr.msra.gmra.mrb[38].mxu1 %vm166_vm2, %v3104_v24  ;;  %4039 = vmatprep.subr.bf16.mxu0 %v4038_v34  ;;  %v3431_v24 = vld [vmem:[%s4808_s16 + $0x18] sm:$0xff] }
 0xab5   :  { %4041 = vmatpush3.bf16.msra.mxu0 %v4038_v34 }
 0xab6   :  { %4043 = vmatprep.subr.bf16.mxu0 %v4042_v40 }
 0xab9   :  { %4045 = vmatpush3.bf16.msra.mxu0 %v4042_v40 }
 0xaba   :  { %4055 = vmatprep.subr.bf16.mxu0 %v4054_v23 }
 0xaee   :  { %v2008_v25 = vpop.f32.mrb[24].mxu1 }
 0xaef   :  { %v3894_v26 = vpop.f32.mrb[25].mxu1 }
 0xaf0   :  { %v3432_v26 = vld [vmem:[%s4808_s16 + $0x20] sm:$0xff] }
 0xb42   :  { %v2173_v27 = vpop.f32.mrb[26].mxu1 }
 0xb43   :  { %2508 = vrot.lane.b32.xlu1 %v2173_v27, %s4185_s2  ;;  %v3904_v30 = vpop.f32.mrb[27].mxu1  ;;  %v3433_v27 = vld [vmem:[%s4808_s16 + $0x28] sm:$0xff] }
 0xb44   :  { %v4062_v30 = vpack.c.bf16 %v3433_v27, %v3432_v26 }
 0xb46   :  { %v2338_v31 = vpop.f32.mrb[28].mxu1 }
 0xb47   :  { %2512 = vrot.lane.b32.xlu0 %v2338_v31, %s4186_s21  ;;  %v3914_v32 = vpop.f32.mrb[29].mxu1 }
 0xb77   :  { %v2503_v35 = vpop.f32.mrb[30].mxu1 }
 0xb78   :  { %2516 = vrot.lane.b32.xlu0 %v2503_v35, %s4187_s0  ;;  %v3924_v39 = vpop.f32.mrb[31].mxu1 }
 0xb7b   :  { %v2682_v41 = vpop.f32.mrb[32].mxu1 }
 0xb7c   :  { %v3934_v42 = vpop.f32.mrb[33].mxu1 }
 0xb7d   :  { %v3642_v42 = vld [vmem:[%s4810_s13] ss:$0 sm:$0xff] }
 0xb7f   :  { %v2847_v43 = vpop.f32.mrb[34].mxu1 }
 0xb80   :  { %3182 = vrot.lane.b32.xlu1 %v2847_v43, %s4185_s2  ;;  %v3944_v44 = vpop.f32.mrb[35].mxu1 }
 0xb83   :  { %v3012_v14 = vpop.f32.mrb[36].mxu1 }
 0xb84   :  { %3186 = vrot.lane.b32.xlu1 %v3012_v14, %s4186_s21  ;;  %v3954_v45 = vpop.f32.mrb[37].mxu1 }
 0xb87   :  { %v3177_v46 = vpop.f32.mrb[38].mxu1 }
 0xb88   :  { %3190 = vrot.lane.b32.xlu0 %v3177_v46, %s4187_s0  ;;  %v3964_v47 = vpop.f32.mrb[39].mxu1  ;;  %v3434_v46 = vld [vmem:[%s4808_s16 + $0x30] sm:$0xff] }
 0xb89   :  { %v3435_v47 = vld [vmem:[%s4808_s16 + $0x38] sm:$0xff] }
 0xbb5   :  { %v2509_v48 = vpop.permute.xlu1 %2508 }
 0xbb6   :  { %v2519_v7 = vsel %vm166_vm2, %v2008_v25, %v2509_v48  ;;  %v4058_v25 = vpack.c.bf16 %v3431_v24, %v3430_v22  ;;  %v4066_v48 = vpack.c.bf16 %v3435_v47, %v3434_v46 }
 0xbb9   :  { %v2513_v49 = vpop.permute.xlu0 %2512 }
 0xbba   :  { %v2520_v50 = vsel %vm837_vm3, %v2519_v7, %v2513_v49  ;;  %v3643_v49 = vld [vmem:[%s4811_s15] ss:$0 sm:$0xff] }
 0xbea   :  { %v2517_v5 = vpop.permute.xlu0 %2516 }
 0xbeb   :  { %v2521_v51 = vsel %vm839_vm4, %v2520_v50, %v2517_v5 }
 0xbec   :  { %3973 = vmatprep.mubr.msk.f32.mxu0 %vm80_vm0, %v2521_v51 }
 0xbf2   :  { %v3183_v52 = vpop.permute.xlu1 %3182 }
 0xbf3   :  { %v3193_v54 = vsel %vm166_vm2, %v2682_v41, %v3183_v52 }
 0xbf6   :  { %v3187_v53 = vpop.permute.xlu1 %3186 }
 0xbf7   :  { %v3194_v55 = vsel %vm837_vm3, %v3193_v54, %v3187_v53  ;;  %v3646_v54 = vld [vmem:[%s4812_s17] ss:$0 sm:$0xff] }
 0xbfa   :  { %v3191_v56 = vpop.permute.xlu0 %3190 }
 0xbfb   :  { %v3195_v57 = vsel %vm839_vm4, %v3194_v55, %v3191_v56 }
 0xbfc   :  { %3974 = vmatmul.mubr.msk.f32.vlgmr.msra.gmra.mrb[32].mxu0 %vm80_vm0, %v3195_v57 }
 0xbfd   :  { %4057 = vmatpush3.bf16.msra.mxu0 %v4054_v23 }
 0xbfe   :  { %4059 = vmatprep.subr.bf16.mxu0 %v4058_v25 }
 0xc01   :  { %4061 = vmatpush3.bf16.msra.mxu0 %v4058_v25 }
 0xc02   :  { %4063 = vmatprep.subr.bf16.mxu0 %v4062_v30 }
 0xc05   :  { %4065 = vmatpush3.bf16.msra.mxu0 %v4062_v30 }
 0xc06   :  { %4067 = vmatprep.subr.bf16.mxu0 %v4066_v48 }
 0xc09   :  { %4069 = vmatpush3.bf16.msra.mxu0 %v4066_v48 }
 0xccf   :  { %v3975_v59 = vpop.f32.mrb[32].mxu0 }
 0xcd0   :  { %v3285_v60 = vadd.f32 %v3975_v59, %v3638_v58  ;;  %v3279_v61 = vpop.f32.mrb[33].mxu0 }
 0xcd1   :  { %v3280_v62 = vadd.f32 %v3638_v58, %v3279_v61 }
 0xcd2   :  { %v3289_v63 = vadd.f32 %v3285_v60, %v4546_v29 }
 0xcd3   :  { %v3288_v0 = vadd.f32 %v3280_v62, %v4544_v28  ;;  %v3334_v28 = vld [vmem:[%s4807_s14] sm:$0xff] }
 0xcd4   :  { %v3295_v1 = vsel %vm80_vm0, %v3289_v63, 0.0  ;;  %v4046_v16 = vpack.c.bf16 %v3335_v15, %v3334_v28 }
 0xcd5   :  { %3296 = vadd.xlane.f32.xlu0 %v3295_v1  ;;  %v3292_v2 = vsel %vm80_vm0, %v3288_v0, 0.0 }
 0xcd6   :  { %3293 = vadd.xlane.f32.xlu1 %v3292_v2  ;;  %4047 = vmatprep.subr.bf16.mxu1 %v4046_v16 }
 0xcd7   :  { %4049 = vmatpush3.bf16.msra.mxu1 %v4046_v16 }
 0xcd8   :  { %4051 = vmatprep.subr.bf16.mxu1 %v4050_v19 }
 0xcdb   :  { %4053 = vmatpush3.bf16.msra.mxu1 %v4050_v19 }
 0xd62   :  { %v3297_v37 = vpop.xlane.xlu0 %3296 }
 0xd63   :  { %v3299_v3 = vmul.f32 0.03125, %v3297_v37  ;;  %v3294_v4 = vpop.xlane.xlu1 %3293 }
 0xd64   :  { %v3298_v6 = vmul.f32 0.03125, %v3294_v4 }
 0xd65   :  { %v3301_v9 = vsub.f32 %v3289_v63, %v3299_v3 }
 0xd66   :  { %v3300_v10 = vsub.f32 %v3288_v0, %v3298_v6 }
 0xd67   :  { %v3303_v11 = vmul.f32 %v3301_v9, %v3301_v9 }
 0xd68   :  { %v3302_v12 = vmul.f32 %v3300_v10, %v3300_v10 }
 0xd69   :  { %v3307_v13 = vsel %vm80_vm0, %v3303_v11, 0.0 }
 0xd6a   :  { %3308 = vadd.xlane.f32.xlu1 %v3307_v13  ;;  %v3304_v29 = vsel %vm80_vm0, %v3302_v12, 0.0 }
 0xd6b   :  { %3305 = vadd.xlane.f32.xlu0 %v3304_v29 }
 0xdf7   :  { %v3309_v31 = vpop.xlane.xlu1 %3308 }
 0xdf8   :  { %v3311_v32 = vmul.f32 0.03125, %v3309_v31  ;;  %v3306_v33 = vpop.xlane.xlu0 %3305 }
 0xdf9   :  { %v3310_v8 = vmul.f32 0.03125, %v3306_v33 }
 0xdfa   :  { %v3313_v34 = vadd.f32 1e-05, %v3311_v32 }
 0xdfb   :  { %v3312_v35 = vadd.f32 1e-05, %v3310_v8 }
 0xdfc   :  { %4164 = vrsqrt.f32 %v3313_v34 }
 0xdfd   :  { %4166 = vrsqrt.f32 %v3312_v35 }
 0xe06   :  { %v4165_v36 = vpop.eup %4164 }
 0xe07   :  { %v4167_v39 = vpop.eup %4166  ;;  %v3317_v40 = vmul.f32 %v4165_v36, %v3301_v9 }
 0xe08   :  { %v3316_v41 = vmul.f32 %v4167_v39, %v3300_v10 }
 0xe09   :  { %v3325_v43 = vmul.f32 %v3641_v38, %v3317_v40 }
 0xe0a   :  { %v3324_v44 = vmul.f32 %v3641_v38, %v3316_v41 }
 0xe0b   :  { %v3333_v45 = vadd.f32 %v3642_v42, %v3325_v43 }
 0xe0c   :  { %v3332_v14 = vadd.f32 %v3642_v42, %v3324_v44 }
 0xe0e   :  { %3984 = vmatprep.mubr.msk.f32.mxu1 %vm80_vm0, %v3332_v14 }
 0xe0f   :  { %3985 = vmatmul.mubr.msk.f32.vlgmr.msra.gmra.mrb[40].mxu1 %vm80_vm0, %v3333_v45 }
 0xee2   :  { %v3986_v7 = vpop.f32.mrb[40].mxu1 }
 0xee3   :  { %v3423_v50 = vadd.f32 %v3986_v7, %v3643_v49  ;;  %v3417_v5 = vpop.f32.mrb[41].mxu1 }
 0xee4   :  { %v3418_v51 = vadd.f32 %v3643_v49, %v3417_v5 }
 0xee5   :  { %v3427_v53 = vmax.f32 %v3423_v50, 0.0 }
 0xee6   :  { %v3426_v52 = vmax.f32 %v3418_v51, 0.0 }
 0xee8   :  { %4003 = vmatprep.mubr.msk.f32.mxu0 %vm3443_vm5, %v3426_v52 }
 0xee9   :  { %4004 = vmatmul.mubr.msk.f32.vlgmr.msra.gmra.mrb[34].mxu0 %vm3443_vm5, %v3427_v53 }
 0xfbc   :  { %v4005_v55 = vpop.f32.mrb[34].mxu0 }
 0xfbd   :  { %v3522_v56 = vadd.f32 %v4005_v55, %v3646_v54  ;;  %v3516_v57 = vpop.f32.mrb[35].mxu0 }
 0xfbe   :  { %v3517_v58 = vadd.f32 %v3646_v54, %v3516_v57 }
 0xfbf   :  { %v3526_v59 = vadd.f32 %v3522_v56, %v3333_v45 }
 0xfc0   :  { %v3525_v60 = vadd.f32 %v3517_v58, %v3332_v14 }
 0xfc1   :  { %v3532_v61 = vsel %vm80_vm0, %v3526_v59, 0.0 }
 0xfc2   :  { %3533 = vadd.xlane.f32.xlu1 %v3532_v61  ;;  %v3529_v62 = vsel %vm80_vm0, %v3525_v60, 0.0 }
 0xfc3   :  { %3530 = vadd.xlane.f32.xlu0 %v3529_v62 }
0x104f   :  { %v3534_v63 = vpop.xlane.xlu1 %3533 }
0x1050   :  { %v3536_v0 = vmul.f32 0.03125, %v3534_v63  ;;  %v3531_v1 = vpop.xlane.xlu0 %3530 }
0x1051   :  { %v3535_v2 = vmul.f32 0.03125, %v3531_v1 }
0x1052   :  { %v3538_v37 = vsub.f32 %v3526_v59, %v3536_v0 }
0x1053   :  { %v3537_v3 = vsub.f32 %v3525_v60, %v3535_v2 }
0x1054   :  { %v3540_v4 = vmul.f32 %v3538_v37, %v3538_v37 }
0x1055   :  { %v3539_v6 = vmul.f32 %v3537_v3, %v3537_v3 }
0x1056   :  { %v3544_v9 = vsel %vm80_vm0, %v3540_v4, 0.0 }
0x1057   :  { %3545 = vadd.xlane.f32.xlu1 %v3544_v9  ;;  %v3541_v10 = vsel %vm80_vm0, %v3539_v6, 0.0 }
0x1058   :  { %3542 = vadd.xlane.f32.xlu0 %v3541_v10 }
0x10e4   :  { %v3546_v11 = vpop.xlane.xlu1 %3545 }
0x10e5   :  { %v3548_v12 = vmul.f32 0.03125, %v3546_v11  ;;  %v3543_v13 = vpop.xlane.xlu0 %3542 }
0x10e6   :  { %v3547_v29 = vmul.f32 0.03125, %v3543_v13 }
0x10e7   :  { %v3550_v28 = vadd.f32 1e-05, %v3548_v12 }
0x10e8   :  { %v3549_v15 = vadd.f32 1e-05, %v3547_v29 }
0x10e9   :  { %4168 = vrsqrt.f32 %v3550_v28 }
0x10ea   :  { %4170 = vrsqrt.f32 %v3549_v15 }
0x10f3   :  { %v4169_v16 = vpop.eup %4168 }
0x10f4   :  { %v4171_v18 = vpop.eup %4170  ;;  %v3554_v19 = vmul.f32 %v4169_v16, %v3538_v37 }
0x10f5   :  { %v3553_v21 = vmul.f32 %v4171_v18, %v3537_v3 }
0x10f6   :  { %v3562_v22 = vmul.f32 %v3649_v17, %v3554_v19 }
0x10f7   :  { %v3561_v23 = vmul.f32 %v3649_v17, %v3553_v21 }
0x10f8   :  { %v3570_v24 = vadd.f32 %v3650_v20, %v3562_v22 }
0x10f9   :  { %v3569_v25 = vadd.f32 %v3650_v20, %v3561_v23 }
0x10fa   :  { %3572 = vst.msk [vmem:[%s4815_s20 + $0x8] sm:$0xff] %vm80_vm0, %v3570_v24 }
0x10fb   :  { %3571 = vst.msk [vmem:[%s4815_s20] sm:$0xff] %vm80_vm0, %v3569_v25 }

</bundles_post_ra>
